<compile_context>
chip_gen: v7x
topology: tpu7x:2x2x1
jax: 0.10.0
libtpu: 0.0.40
codegen_flags: <defaults>
</compile_context>

<pallas_src>
import functools
import itertools
import numpy as np

import jax
import jax.numpy as jnp
from jax import lax
from jax.experimental import pallas as pl
from jax.experimental.pallas import tpu as pltpu


def _round_up(x, m):
    return ((x + m - 1) // m) * m


# ----------------------------------------------------------------------------
# Pallas kernel: fused
#   main = relu(patches @ (W1*s1) + b1)            (3x3x3 conv + folded BN + ReLU)
#   ds   = patches[:, :inc] @ (Wd*s2) + b2          (1x1 conv on the centre tap)
#   out  = relu(main + ds)
# ----------------------------------------------------------------------------
def _resblock_kernel(xp_ref, w1_ref, wd_ref, b1_ref, b2_ref, o_ref,
                     *, inc, ds_on_vpu):
    xp = xp_ref[...]                                           # (tm, K1) bf16
    # main branch: conv as im2col matmul (BN scale folded into w1), bias, ReLU
    main = jnp.dot(xp, w1_ref[...], preferred_element_type=jnp.float32)
    main = jnp.maximum(main + b1_ref[...], 0.0)

    # downsample branch: 1x1 conv on the CENTRE TAP of the same patch tile.
    # Taps are ordered centre-first so the slice is lane-aligned at column 0.
    if ds_on_vpu:
        # small inc: inc broadcast-FMAs on the VPU (MXU push/drain not worth it)
        xc = xp[:, :inc].astype(jnp.float32)                   # (tm, inc)
        wd = wd_ref[...].astype(jnp.float32)                   # (inc, outc_p)
        ds = b2_ref[...]
        for c in range(inc):
            ds = ds + xc[:, c:c + 1] * wd[c:c + 1, :]
    else:
        ds = jnp.dot(xp[:, :inc], wd_ref[...],
                     preferred_element_type=jnp.float32) + b2_ref[...]

    # residual add + final ReLU; store bf16 (lane-dense, halves output stream)
    o_ref[...] = jnp.maximum(main + ds, 0.0).astype(o_ref.dtype)


def _fused_resblock_matmul(x_patches, w1_mat, wd_mat, b1, b2,
                           *, inc, tm, ds_on_vpu):
    M, K1 = x_patches.shape
    K2, outc_p = wd_mat.shape
    assert M % tm == 0                      # wrapper guarantees via minimal pad
    grid = (M // tm,)

    kernel = functools.partial(_resblock_kernel, inc=inc, ds_on_vpu=ds_on_vpu)

    flops = 2 * M * (K1 + K2) * outc_p
    bytes_accessed = (M * K1 * 2                       # bf16 patch stream
                      + K1 * outc_p * 2 + K2 * outc_p * 2
                      + 2 * outc_p * 4
                      + M * outc_p * 2)                # bf16 output

    # VMEM actually needed per step (double-buffered in/out + resident weights)
    vmem_need = (2 * tm * K1 * 2 + 2 * tm * outc_p * 2
                 + K1 * outc_p * 2 + K2 * outc_p * 2 + 2 * outc_p * 4)
    vmem_limit = int(min(48 * 1024 * 1024,             # headroom on v7x 64 MiB/TC
                         max(4 * 1024 * 1024, 2 * vmem_need)))

    return pl.pallas_call(
        kernel,
        out_shape=jax.ShapeDtypeStruct((M, outc_p), jnp.bfloat16),
        grid_spec=pltpu.PrefetchScalarGridSpec(
            num_scalar_prefetch=0,
            grid=grid,
            in_specs=[
                pl.BlockSpec((tm, K1), lambda i: (i, 0)),      # im2col patches
                pl.BlockSpec((K1, outc_p), lambda i: (0, 0)),  # main weight (resident)
                pl.BlockSpec((K2, outc_p), lambda i: (0, 0)),  # downsample weight
                pl.BlockSpec((1, outc_p), lambda i: (0, 0)),   # BN1 bias (scale folded)
                pl.BlockSpec((1, outc_p), lambda i: (0, 0)),   # BN2 bias (scale folded)
            ],
            out_specs=pl.BlockSpec((tm, outc_p), lambda i: (i, 0)),
        ),
        compiler_params=pltpu.CompilerParams(
            dimension_semantics=("parallel",),     # v7x: 2 TCs shard this axis
            vmem_limit_bytes=vmem_limit),
        cost_estimate=pl.CostEstimate(flops=flops, transcendentals=0,
                                      bytes_accessed=bytes_accessed),
    )(x_patches, w1_mat, wd_mat, b1, b2)


# ----------------------------------------------------------------------------
# Glue: im2col patch extraction + BN folding + layout plumbing
# ----------------------------------------------------------------------------
def _im2col_3d(x_cl, ks, stride, dilation, tap_order, pad_taps):
    # x_cl: [N, Dp, Hp, Wp, C] channels-last bf16, already padded.
    N, Dp, Hp, Wp, C = x_cl.shape
    Do = (Dp - dilation * (ks - 1) - 1) // stride + 1
    Ho = (Hp - dilation * (ks - 1) - 1) // stride + 1
    Wo = (Wp - dilation * (ks - 1) - 1) // stride + 1
    patches = []
    for kd, kh, kw in tap_order:
        sl = x_cl[:,
                  kd * dilation: kd * dilation + (Do - 1) * stride + 1: stride,
                  kh * dilation: kh * dilation + (Ho - 1) * stride + 1: stride,
                  kw * dilation: kw * dilation + (Wo - 1) * stride + 1: stride,
                  :]
        patches.append(sl)
    if pad_taps:                       # zero taps: lane-pads K1 at stack time
        patches.extend([jnp.zeros_like(patches[0])] * pad_taps)
    p = jnp.stack(patches, axis=-2)    # [N, Do, Ho, Wo, n_taps+pad, C]
    M = N * Do * Ho * Wo
    return p.reshape(M, p.shape[-2] * C), (N, Do, Ho, Wo)


def _fold_bn(gamma, beta, mean, var, eps=1e-5):
    scale = gamma / jnp.sqrt(var + eps)
    shift = beta - mean * scale
    return (scale.reshape(1, -1).astype(jnp.float32),
            shift.reshape(1, -1).astype(jnp.float32))


def _pick_tm(M, target=1024):
    # multiple of 16 (bf16 sublane packing); guarantee >= 2 grid steps when
    # possible so both v7x TensorCores get work.
    tm = min(target, _round_up(M, 16))
    if tm >= M and M > 16:
        tm = _round_up(pl.cdiv(M, 2), 16)
    return max(tm, 16)


def residual_block_forward(x_ncdhw, params, *, ks=3, stride=1, dilation=1,
                           row_tile=1024):
    """x_ncdhw: [N, C, D, H, W] float32. Returns [N, outc, Do, Ho, Wo] float32."""
    assert ks % 2 == 1, "ks must be odd for the fused centre-tap residual path"

    inc = x_ncdhw.shape[1]
    w1 = params["w1"]                       # [outc, inc, ks, ks, ks]
    outc = w1.shape[0]

    if "wd" not in params and not (inc == outc and stride == 1):
        raise ValueError("Identity downsample requires inc == outc and stride == 1")

    pad = dilation * (ks - 1) // 2
    # output grid of the 'same'-padded main conv must equal that of the
    # pad-0 strided 1x1 downsample (holds since 2*pad == dilation*(ks-1))
    for n in x_ncdhw.shape[2:]:
        assert (n + 2 * pad - dilation * (ks - 1) - 1) // stride + 1 \
            == (n - 1) // stride + 1

    # ---- channels-last + bf16 BEFORE padding / im2col (one fused pass) ----
    # NOTE: if the caller can stay channels-last end-to-end, this transpose and
    # the one at the bottom disappear (each is a full-activation XLA pass).
    x_cl = jnp.transpose(x_ncdhw.astype(jnp.bfloat16), (0, 2, 3, 4, 1))
    x_pad = jnp.pad(x_cl, ((0, 0), (pad, pad), (pad, pad), (pad, pad), (0, 0)))

    # tap ordering: centre tap FIRST (downsample branch reads lane-aligned
    # columns [0, inc)), remaining taps lexicographic.
    centre = (ks // 2, ks // 2, ks // 2)
    taps = [centre] + [t for t in itertools.product(range(ks), repeat=3)
                       if t != centre]
    n_taps = len(taps)

    # pad K1 to a multiple of 128 via zero taps (only when inc divides deficit)
    K1_raw = n_taps * inc
    k_deficit = _round_up(K1_raw, 128) - K1_raw
    pad_taps = k_deficit // inc if (k_deficit % inc == 0) else 0

    x_patches, (N, Do, Ho, Wo) = _im2col_3d(x_pad, ks, stride, dilation,
                                            taps, pad_taps)
    M, K1 = x_patches.shape

    # ---- fold BN scales into the weight matrices (one-time, tiny) ----
    s1, b1 = _fold_bn(params["bn1_gamma"], params["bn1_beta"],
                      params["bn1_mean"], params["bn1_var"])
    perm = np.array([kd * ks * ks + kh * ks + kw for kd, kh, kw in taps])
    w1_rows = jnp.transpose(w1, (2, 3, 4, 1, 0)).reshape(n_taps, inc, outc)
    w1_mat = w1_rows[perm].reshape(n_taps * inc, outc).astype(jnp.float32) * s1
    if pad_taps:
        w1_mat = jnp.pad(w1_mat, ((0, pad_taps * inc), (0, 0)))

    if "wd" in params:
        s2, b2 = _fold_bn(params["bn2_gamma"], params["bn2_beta"],
                          params["bn2_mean"], params["bn2_var"])
        wd_mat = jnp.transpose(params["wd"], (1, 0)).astype(jnp.float32) * s2
    else:
        # nn.Identity() downsample (inc == outc and stride == 1, asserted above)
        wd_mat = jnp.eye(inc, dtype=jnp.float32)
        b2 = jnp.zeros((1, outc), jnp.float32)

    # ---- lane-dense output: pad outc to a multiple of 128 ----
    outc_p = _round_up(outc, 128)
    if outc_p > outc:
        pc = outc_p - outc
        w1_mat = jnp.pad(w1_mat, ((0, 0), (0, pc)))
        wd_mat = jnp.pad(wd_mat, ((0, 0), (0, pc)))
        b1 = jnp.pad(b1, ((0, 0), (0, pc)))
        b2 = jnp.pad(b2, ((0, 0), (0, pc)))

    # ---- row tiling: large tm, >=2 grid steps, minimal bf16 pad on M ----
    tm = _pick_tm(M, row_tile)
    M_pad = _round_up(M, tm)
    if M_pad > M:
        x_patches = jnp.pad(x_patches, ((0, M_pad - M), (0, 0)))

    out_flat = _fused_resblock_matmul(
        x_patches,                              # already bf16
        w1_mat.astype(jnp.bfloat16),
        wd_mat.astype(jnp.bfloat16),
        b1, b2,
        inc=inc, tm=tm, ds_on_vpu=(inc <= 16))

    out = out_flat[:M, :outc].reshape(N, Do, Ho, Wo, outc)      # bf16
    # back to NCDHW; final f32 cast on the small, un-amplified output
    return jnp.transpose(out, (0, 4, 1, 2, 3)).astype(jnp.float32)


# ----------------------------------------------------------------------------
# Pure-JAX reference (lax.conv_general_dilated) for correctness check
# ----------------------------------------------------------------------------
def _reference_forward(x, params, *, ks=3, stride=1, dilation=1, eps=1e-5):
    pad = dilation * (ks - 1) // 2
    main = lax.conv_general_dilated(
        x, params["w1"], window_strides=(stride,) * 3,
        padding=[(pad, pad)] * 3, rhs_dilation=(dilation,) * 3,
        dimension_numbers=("NCDHW", "OIDHW", "NCDHW"))
    s1 = params["bn1_gamma"] / jnp.sqrt(params["bn1_var"] + eps)
    main = main * s1[None, :, None, None, None] + \
        (params["bn1_beta"] - params["bn1_mean"] * s1)[None, :, None, None, None]
    main = jnp.maximum(main, 0.0)

    if "wd" in params:
        wd5 = params["wd"][:, :, None, None, None]
        ds = lax.conv_general_dilated(
            x, wd5, window_strides=(stride,) * 3, padding=[(0, 0)] * 3,
            dimension_numbers=("NCDHW", "OIDHW", "NCDHW"))
        s2 = params["bn2_gamma"] / jnp.sqrt(params["bn2_var"] + eps)
        ds = ds * s2[None, :, None, None, None] + \
            (params["bn2_beta"] - params["bn2_mean"] * s2)[None, :, None, None, None]
    else:
        ds = x
    return jnp.maximum(main + ds, 0.0)


# ----------------------------------------------------------------------------
# Main
# ----------------------------------------------------------------------------
if __name__ == "__main__":
    def make_params(key, inc, outc, ks, with_downsample=True):
        kk = jax.random.split(key, 11)
        p = {
            "w1": 0.1 * jax.random.normal(kk[0], (outc, inc, ks, ks, ks), jnp.float32),
            "bn1_gamma": 1.0 + 0.1 * jax.random.normal(kk[2], (outc,), jnp.float32),
            "bn1_beta": 0.1 * jax.random.normal(kk[3], (outc,), jnp.float32),
            "bn1_mean": 0.1 * jax.random.normal(kk[4], (outc,), jnp.float32),
            "bn1_var": jnp.abs(jax.random.normal(kk[5], (outc,), jnp.float32)) + 0.5,
        }
        if with_downsample:
            p.update({
                "wd": 0.1 * jax.random.normal(kk[1], (outc, inc), jnp.float32),
                "bn2_gamma": 1.0 + 0.1 * jax.random.normal(kk[6], (outc,), jnp.float32),
                "bn2_beta": 0.1 * jax.random.normal(kk[7], (outc,), jnp.float32),
                "bn2_mean": 0.1 * jax.random.normal(kk[8], (outc,), jnp.float32),
                "bn2_var": jnp.abs(jax.random.normal(kk[9], (outc,), jnp.float32)) + 0.5,
            })
        return p

    key = jax.random.PRNGKey(0)
    k0, k1, k2, kx0, kx1, kx2 = jax.random.split(key, 6)
    ks = 3

    # case 1: conv downsample (inc != outc), stride=1; M=1024 -> tm=512, grid=2
    N, inc, outc, D = 2, 4, 8, 8
    x = jax.random.normal(kx0, (N, inc, D, D, D), jnp.float32)
    params = make_params(k0, inc, outc, ks, with_downsample=True)
    fwd = jax.jit(functools.partial(residual_block_forward,
                                    ks=ks, stride=1, dilation=1))
    out = jax.block_until_ready(fwd(x, params))
    ref = jax.block_until_ready(
        _reference_forward(x, params, ks=ks, stride=1, dilation=1))
    # bf16 streams + bf16 output (f32 accumulation) -> loosened tolerance
    np.testing.assert_allclose(np.asarray(out), np.asarray(ref),
                               rtol=2.5e-2, atol=6e-2)

    # case 2: nn.Identity() downsample (inc == outc, stride == 1)
    x2 = jax.random.normal(kx1, (1, 8, D, D, D), jnp.float32)
    params2 = make_params(k1, 8, 8, ks, with_downsample=False)
    out2 = jax.block_until_ready(fwd(x2, params2))
    ref2 = jax.block_until_ready(
        _reference_forward(x2, params2, ks=ks, stride=1, dilation=1))
    np.testing.assert_allclose(np.asarray(out2), np.asarray(ref2),
                               rtol=2.5e-2, atol=6e-2)

    # case 3: stride=2 with odd spatial size (checks strided downsample-grid
    # equivalence and the ragged last row-tile path)
    x3 = jax.random.normal(kx2, (1, 4, 5, 5, 5), jnp.float32)
    params3 = make_params(k2, 4, 8, ks, with_downsample=True)
    fwd3 = jax.jit(functools.partial(residual_block_forward,
                                     ks=ks, stride=2, dilation=1))
    out3 = jax.block_until_ready(fwd3(x3, params3))
    ref3 = jax.block_until_ready(
        _reference_forward(x3, params3, ks=ks, stride=2, dilation=1))
    np.testing.assert_allclose(np.asarray(out3), np.asarray(ref3),
                               rtol=2.5e-2, atol=6e-2)

    print("KERNEL_OK")
</pallas_src>

<mosaic_0001>
module attributes {stable_mosaic.version = 11 : i64} {
  func.func @_resblock_kernel(%arg0: i32, %arg1: memref<512x128xbf16, #tpu.memory_space<vmem>>, %arg2: memref<128x128xbf16, #tpu.memory_space<vmem>>, %arg3: memref<4x128xbf16, #tpu.memory_space<vmem>>, %arg4: memref<1x128xf32, #tpu.memory_space<vmem>>, %arg5: memref<1x128xf32, #tpu.memory_space<vmem>>, %arg6: memref<512x128xbf16, #tpu.memory_space<vmem>>) attributes {dimension_semantics = [#tpu.dimension_semantics<parallel>], iteration_bounds = array<i64: 2>, scalar_prefetch = 0 : i64, scratch_operands = 0 : i64, tpu.core_type = #tpu.core_type<tc>, window_params = [{transform_indices = @transform_0, window_bounds = array<i64: 512, 128>}, {pipeline_mode = #tpu.pipeline_mode<synchronous>, transform_indices = @transform_1, window_bounds = array<i64: 128, 128>}, {pipeline_mode = #tpu.pipeline_mode<synchronous>, transform_indices = @transform_2, window_bounds = array<i64: 4, 128>}, {pipeline_mode = #tpu.pipeline_mode<synchronous>, transform_indices = @transform_3, window_bounds = array<i64: 1, 128>}, {pipeline_mode = #tpu.pipeline_mode<synchronous>, transform_indices = @transform_4, window_bounds = array<i64: 1, 128>}, {transform_indices = @transform_5, window_bounds = array<i64: 512, 128>}]} {
    %c0 = arith.constant 0 : index
    %c0_0 = arith.constant 0 : index
    %0 = vector.load %arg1[%c0, %c0_0] : memref<512x128xbf16, #tpu.memory_space<vmem>>, vector<512x128xbf16>
    %c0_1 = arith.constant 0 : index
    %c0_2 = arith.constant 0 : index
    %1 = vector.load %arg2[%c0_1, %c0_2] : memref<128x128xbf16, #tpu.memory_space<vmem>>, vector<128x128xbf16>
    %cst = arith.constant dense<0.000000e+00> : vector<512x128xf32>
    %2 = tpu.matmul %0, %1, %cst {dimension_numbers = #tpu.dot_dimension_numbers<[1], [0], [0], [1], [0, 0, 1, 1], [], []>} : vector<512x128xbf16>, vector<128x128xbf16>, vector<512x128xf32> -> vector<512x128xf32>
    %c0_3 = arith.constant 0 : index
    %c0_4 = arith.constant 0 : index
    %3 = vector.load %arg4[%c0_3, %c0_4] : memref<1x128xf32, #tpu.memory_space<vmem>>, vector<1x128xf32>
    %4 = vector.broadcast %3 : vector<1x128xf32> to vector<512x128xf32>
    %5 = arith.addf %2, %4 : vector<512x128xf32>
    %cst_5 = arith.constant 0.000000e+00 : f32
    %6 = vector.broadcast %cst_5 : f32 to vector<512x128xf32>
    %7 = arith.maximumf %5, %6 : vector<512x128xf32>
    %8 = vector.extract_strided_slice %0 {offsets = [0, 0], sizes = [512, 4], strides = [1, 1]} : vector<512x128xbf16> to vector<512x4xbf16>
    %9 = arith.extf %8 : vector<512x4xbf16> to vector<512x4xf32>
    %c0_6 = arith.constant 0 : index
    %c0_7 = arith.constant 0 : index
    %10 = vector.load %arg3[%c0_6, %c0_7] : memref<4x128xbf16, #tpu.memory_space<vmem>>, vector<4x128xbf16>
    %11 = arith.extf %10 : vector<4x128xbf16> to vector<4x128xf32>
    %c0_8 = arith.constant 0 : index
    %c0_9 = arith.constant 0 : index
    %12 = vector.load %arg5[%c0_8, %c0_9] : memref<1x128xf32, #tpu.memory_space<vmem>>, vector<1x128xf32>
    %13 = vector.extract_strided_slice %9 {offsets = [0, 0], sizes = [512, 1], strides = [1, 1]} : vector<512x4xf32> to vector<512x1xf32>
    %14 = vector.extract_strided_slice %11 {offsets = [0, 0], sizes = [1, 128], strides = [1, 1]} : vector<4x128xf32> to vector<1x128xf32>
    %15 = vector.broadcast %13 : vector<512x1xf32> to vector<512x128xf32>
    %16 = vector.broadcast %14 : vector<1x128xf32> to vector<512x128xf32>
    %17 = arith.mulf %15, %16 : vector<512x128xf32>
    %18 = vector.broadcast %12 : vector<1x128xf32> to vector<512x128xf32>
    %19 = arith.addf %18, %17 : vector<512x128xf32>
    %20 = vector.extract_strided_slice %9 {offsets = [0, 1], sizes = [512, 1], strides = [1, 1]} : vector<512x4xf32> to vector<512x1xf32>
    %21 = vector.extract_strided_slice %11 {offsets = [1, 0], sizes = [1, 128], strides = [1, 1]} : vector<4x128xf32> to vector<1x128xf32>
    %22 = vector.broadcast %20 : vector<512x1xf32> to vector<512x128xf32>
    %23 = vector.broadcast %21 : vector<1x128xf32> to vector<512x128xf32>
    %24 = arith.mulf %22, %23 : vector<512x128xf32>
    %25 = arith.addf %19, %24 : vector<512x128xf32>
    %26 = vector.extract_strided_slice %9 {offsets = [0, 2], sizes = [512, 1], strides = [1, 1]} : vector<512x4xf32> to vector<512x1xf32>
    %27 = vector.extract_strided_slice %11 {offsets = [2, 0], sizes = [1, 128], strides = [1, 1]} : vector<4x128xf32> to vector<1x128xf32>
    %28 = vector.broadcast %26 : vector<512x1xf32> to vector<512x128xf32>
    %29 = vector.broadcast %27 : vector<1x128xf32> to vector<512x128xf32>
    %30 = arith.mulf %28, %29 : vector<512x128xf32>
    %31 = arith.addf %25, %30 : vector<512x128xf32>
    %32 = vector.extract_strided_slice %9 {offsets = [0, 3], sizes = [512, 1], strides = [1, 1]} : vector<512x4xf32> to vector<512x1xf32>
    %33 = vector.extract_strided_slice %11 {offsets = [3, 0], sizes = [1, 128], strides = [1, 1]} : vector<4x128xf32> to vector<1x128xf32>
    %34 = vector.broadcast %32 : vector<512x1xf32> to vector<512x128xf32>
    %35 = vector.broadcast %33 : vector<1x128xf32> to vector<512x128xf32>
    %36 = arith.mulf %34, %35 : vector<512x128xf32>
    %37 = arith.addf %31, %36 : vector<512x128xf32>
    %38 = arith.addf %7, %37 : vector<512x128xf32>
    %cst_10 = arith.constant 0.000000e+00 : f32
    %39 = vector.broadcast %cst_10 : f32 to vector<512x128xf32>
    %40 = arith.maximumf %38, %39 : vector<512x128xf32>
    %41 = arith.truncf %40 : vector<512x128xf32> to vector<512x128xbf16>
    %c0_11 = arith.constant 0 : index
    %c0_12 = arith.constant 0 : index
    %42 = vector.load %arg6[%c0_11, %c0_12] : memref<512x128xbf16, #tpu.memory_space<vmem>>, vector<512x128xbf16>
    tpu.vector_store %arg6[%c0_11, %c0_12], %41 {strides = array<i32>} : memref<512x128xbf16, #tpu.memory_space<vmem>>, vector<512x128xbf16>,
    return
  }
  func.func @transform_0(%arg0: i32) -> (i32, i32) {
    %c0_i32 = arith.constant 0 : i32
    %c0_i32_0 = arith.constant 0 : i32
    return %arg0, %c0_i32 : i32, i32
  }
  func.func @transform_1(%arg0: i32) -> (i32, i32) {
    %c0_i32 = arith.constant 0 : i32
    %c0_i32_0 = arith.constant 0 : i32
    %c0_i32_1 = arith.constant 0 : i32
    return %c0_i32, %c0_i32_0 : i32, i32
  }
  func.func @transform_2(%arg0: i32) -> (i32, i32) {
    %c0_i32 = arith.constant 0 : i32
    %c0_i32_0 = arith.constant 0 : i32
    %c0_i32_1 = arith.constant 0 : i32
    return %c0_i32, %c0_i32_0 : i32, i32
  }
  func.func @transform_3(%arg0: i32) -> (i32, i32) {
    %c0_i32 = arith.constant 0 : i32
    %c0_i32_0 = arith.constant 0 : i32
    %c0_i32_1 = arith.constant 0 : i32
    return %c0_i32, %c0_i32_0 : i32, i32
  }
  func.func @transform_4(%arg0: i32) -> (i32, i32) {
    %c0_i32 = arith.constant 0 : i32
    %c0_i32_0 = arith.constant 0 : i32
    %c0_i32_1 = arith.constant 0 : i32
    return %c0_i32, %c0_i32_0 : i32, i32
  }
  func.func @transform_5(%arg0: i32) -> (i32, i32) {
    %c0_i32 = arith.constant 0 : i32
    %c0_i32_0 = arith.constant 0 : i32
    return %arg0, %c0_i32 : i32, i32
  }
}

</mosaic_0001>

<bundles_post_ra>
// kernel: residual_block_forward.1
= control target key start
LH: loop header
LB: loop body
LE: loop exit
PB: predicated region body
PF: predicated region fallthrough
CT: control target
= control target key end

     0   :  { %s4385_s18 = smov 0   ;;  %s6271_s0 = inlined_call_operand.vmem [shape: bf16[1024,128], index: 0, kind: input, shape index: {}]   ;;  %s6272_s1 = inlined_call_operand.vmem [shape: bf16[128,128], index: 1, kind: input, shape index: {}]   ;;  %s6273_s2 = inlined_call_operand.vmem [shape: bf16[4,128], index: 2, kind: input, shape index: {}]   ;;  %s6274_s3 = inlined_call_operand.vmem [shape: f32[1,128], index: 3, kind: input, shape index: {}]   ;;  %s6275_s4 = inlined_call_operand.vmem [shape: f32[1,128], index: 4, kind: input, shape index: {}]   ;;  %s6276_s5 = inlined_call_operand.vmem [shape: bf16[1024,128], index: 5, kind: output, shape index: {}]  }
   0x1 LB: > { %s3102_s19 = sadd.s32 4294967295, %s4349_s18   ;;  %p3106_p0 = scmp.ge.s32.totalorder %s4349_s18, 1  ;;  %s4349_s18 = sphi %s4385_s18, %s15_s18  }
   0x2   : > { %p188_p1 = scmp.lt.s32.totalorder %s4349_s18, 3 }
   0x4   : > { %p189_p2 = pnand %p3106_p0, %p188_p1 }
   0x6   : > { %192 = sbr.rel (%p189_p2) target bundleno = 466 (0x1d2), region = 40 }
   0xd   : > { %s3107_s20 = sshll.u32 %s3102_s19, 6  ;;  %v4351_v0 = vmov 0   ;;  %v4270_v1 = vld [vmem:[%s6272_s1] sm:$0xff]   ;;  %v4271_v2 = vld [vmem:[%s6272_s1 + $0x8] sm:$0xff]   ;;  %v4272_v3 = vld [vmem:[%s6272_s1 + $0x10] sm:$0xff]  }
   0xe   : > { %3633 = vset.pattern.permute.xlu1 %v4351_v0  ;;  %3622 = vset.pattern.permute.xlu0 %v4351_v0  ;;  %p217_p3 = scmp.lt.s32.totalorder %s3107_s20, 127  ;;  %v4273_v20 = vld [vmem:[%s6272_s1 + $0x18] sm:$0xff]   ;;  %v4274_v29 = vld [vmem:[%s6272_s1 + $0x20] sm:$0xff]   ;;  %v4275_v38 = vld [vmem:[%s6272_s1 + $0x28] sm:$0xff]  }
   0xf   : > { %3514 = vmatprep.subr.bf16.mxu0 %v4270_v1  ;;  %3594 = vmatprep.subr.bf16.mxu1 %v4270_v1  ;;  %v4276_v47 = vld [vmem:[%s6272_s1 + $0x30] sm:$0xff]   ;;  %v4277_v56 = vld [vmem:[%s6272_s1 + $0x38] sm:$0xff]  }
  0x10   : > { %s6718_s20 = smov (!%p217_p3, %s3107_s20), 127  ;;  %3515 = vmatpush3.bf16.msra.mxu0 %v4270_v1  ;;  %3602 = vmatpush3.bf16.msra.mxu1 %v4270_v1 }
  0x11   : > { %s3108_s25 = sshll.u32 %s6718_s20, 2  ;;  %3516 = vmatprep.subr.bf16.mxu0 %v4271_v2  ;;  %3595 = vmatprep.subr.bf16.mxu1 %v4271_v2 }
  0x12   : > { %s4410_s30 = scalar_lea.vmem %s6271_s0, %s3108_s25  ;;  %s5951_s27 = scalar_lea.vmem %s6276_s5, %s3108_s25 }
  0x13   : > { %v4413_v4 = vld [vmem:[%s4410_s30 + $0x10] sm:$0xff]   ;;  %v4416_v5 = vld [vmem:[%s4410_s30] sm:$0xff]   ;;  %v4419_v6 = vld [vmem:[%s4410_s30 + $0x18] sm:$0xff]  }
  0x14   : > { %v913_v7 = vunpack.c.l.bf16 %v4413_v4  ;;  %v914_v8 = vunpack.c.h.bf16 %v4413_v4  ;;  %v909_v9 = vunpack.c.l.bf16 %v4416_v5  ;;  %v910_v10 = vunpack.c.h.bf16 %v4416_v5  ;;  %v4426_v11 = vld [vmem:[%s4410_s30 + $0x8] sm:$0xff]   ;;  %3517 = vmatpush3.bf16.msra.mxu0 %v4271_v2  ;;  %3603 = vmatpush3.bf16.msra.mxu1 %v4271_v2  ;;  %v4436_v17 = vld [vmem:[%s4410_s30 + $0x20] sm:$0xff]   ;;  %v4456_v27 = vld [vmem:[%s4410_s30 + $0x38] sm:$0xff]  }
  0x15   : > { %v4429_v12 = vld [vmem:[%s4410_s30 + $0x28] sm:$0xff]   ;;  %v915_v13 = vunpack.c.l.bf16 %v4419_v6  ;;  %v916_v14 = vunpack.c.h.bf16 %v4419_v6  ;;  %v911_v15 = vunpack.c.l.bf16 %v4426_v11  ;;  %v912_v16 = vunpack.c.h.bf16 %v4426_v11  ;;  %3518 = vmatprep.subr.bf16.mxu0 %v4272_v3  ;;  %3596 = vmatprep.subr.bf16.mxu1 %v4272_v3  ;;  %v4459_v28 = vld [vmem:[%s4410_s30 + $0x30] sm:$0xff]   ;;  %v4478_v37 = vld [vmem:[%s4410_s30 + $0x40] sm:$0xff]  }
  0x16   : > { %v4438_v18 = vpack.i.bf16 %v914_v8, %v913_v7  ;;  %v4440_v19 = vpack.i.bf16 %v910_v10, %v909_v9  ;;  %v919_v21 = vunpack.c.l.bf16 %v4429_v12  ;;  %v920_v22 = vunpack.c.h.bf16 %v4429_v12  ;;  %v4475_v36 = vld [vmem:[%s4410_s30 + $0x48] sm:$0xff]   ;;  %v4494_v45 = vld [vmem:[%s4410_s30 + $0x58] sm:$0xff]   ;;  %v4497_v46 = vld [vmem:[%s4410_s30 + $0x50] sm:$0xff]   ;;  %3530 = vmatprep.mubr.bf16.mxu0 %v4416_v5 }
  0x17   : > { %v4449_v23 = vpack.i.bf16 %v916_v14, %v915_v13  ;;  %v4451_v24 = vpack.i.bf16 %v912_v16, %v911_v15  ;;  %v917_v25 = vunpack.c.l.bf16 %v4436_v17  ;;  %v918_v26 = vunpack.c.h.bf16 %v4436_v17  ;;  %v4513_v54 = vld [vmem:[%s4410_s30 + $0x68] sm:$0xff]   ;;  %v4516_v55 = vld [vmem:[%s4410_s30 + $0x60] sm:$0xff]   ;;  %v4532_v63 = vld [vmem:[%s4410_s30 + $0x78] sm:$0xff]  }
  0x18   : > { %3635 = vperm.xlu1 %3633, %v4438_v18   ;;  %3624 = vperm.xlu0 %3622, %v4440_v19   ;;  %v4464_v30 = vpack.i.bf16 %v920_v22, %v919_v21  ;;  %v923_v31 = vunpack.c.l.bf16 %v4456_v27  ;;  %v924_v33 = vunpack.c.h.bf16 %v4456_v27  ;;  %v921_v34 = vunpack.c.l.bf16 %v4459_v28  ;;  %v4535_v0 = vld [vmem:[%s4410_s30 + $0x70] sm:$0xff]   ;;  %v263_v10 = vld [vmem:[%s4410_s30 + $0x88] sm:$0xff]   ;;  %v261_v13 = vld [vmem:[%s4410_s30 + $0x80] sm:$0xff]  }
  0x19   : > { %3519 = vmatpush3.bf16.msra.mxu0 %v4272_v3  ;;  %3604 = vmatpush3.bf16.msra.mxu1 %v4272_v3  ;;  %v4469_v32 = vpack.i.bf16 %v918_v26, %v917_v25  ;;  %v922_v35 = vunpack.c.h.bf16 %v4459_v28  ;;  %v927_v39 = vunpack.c.l.bf16 %v4475_v36  ;;  %v928_v40 = vunpack.c.h.bf16 %v4475_v36  ;;  %v267_v25 = vld [vmem:[%s4410_s30 + $0x98] sm:$0xff]   ;;  %v265_v26 = vld [vmem:[%s4410_s30 + $0x90] sm:$0xff]  }
  0x1a   : > { %3520 = vmatprep.subr.bf16.mxu0 %v4273_v20  ;;  %3597 = vmatprep.subr.bf16.mxu1 %v4273_v20  ;;  %v4487_v41 = vpack.i.bf16 %v924_v33, %v923_v31  ;;  %v925_v43 = vunpack.c.l.bf16 %v4478_v37  ;;  %v926_v44 = vunpack.c.h.bf16 %v4478_v37  ;;  %v931_v49 = vunpack.c.l.bf16 %v4494_v45 }
  0x1b   : > { %v4489_v42 = vpack.i.bf16 %v922_v35, %v921_v34  ;;  %v4502_v48 = vpack.i.bf16 %v928_v40, %v927_v39  ;;  %v932_v51 = vunpack.c.h.bf16 %v4494_v45  ;;  %v929_v52 = vunpack.c.l.bf16 %v4497_v46  ;;  %v269_v39 = vld [vmem:[%s4410_s30 + $0xa0] sm:$0xff]   ;;  %3562 = vmatprep.mubr.bf16.mxu1 %v261_v13 }
  0x1c   : > { %3640 = vperm.xlu1 %3633, %v4449_v23   ;;  %3629 = vperm.xlu0 %3622, %v4451_v24   ;;  %v4507_v50 = vpack.i.bf16 %v926_v44, %v925_v43  ;;  %v930_v53 = vunpack.c.h.bf16 %v4497_v46  ;;  %v935_v57 = vunpack.c.l.bf16 %v4513_v54  ;;  %v936_v58 = vunpack.c.h.bf16 %v4513_v54 }
  0x1d   : > { %3521 = vmatpush3.bf16.msra.mxu0 %v4273_v20  ;;  %3605 = vmatpush3.bf16.msra.mxu1 %v4273_v20  ;;  %v4525_v59 = vpack.i.bf16 %v932_v51, %v931_v49  ;;  %v933_v61 = vunpack.c.l.bf16 %v4516_v55  ;;  %v934_v62 = vunpack.c.h.bf16 %v4516_v55  ;;  %v939_v2 = vunpack.c.l.bf16 %v4532_v63  ;;  %v275_v49 = vld [vmem:[%s4410_s30 + $0xb8] sm:$0xff]   ;;  %v273_v51 = vld [vmem:[%s4410_s30 + $0xb0] sm:$0xff]  }
  0x1e   : > { %3522 = vmatprep.subr.bf16.mxu0 %v4274_v29  ;;  %3598 = vmatprep.subr.bf16.mxu1 %v4274_v29  ;;  %6325 = vst [vmem:[#allocation2_spill] sm:$0xff] %v4507_v50  ;;  %v4527_v60 = vpack.i.bf16 %v930_v53, %v929_v52  ;;  %v4537_v1 = vpack.i.bf16 %v936_v58, %v935_v57  ;;  %v940_v3 = vunpack.c.h.bf16 %v4532_v63  ;;  %v937_v8 = vunpack.c.l.bf16 %v4535_v0 }
  0x1f   : > { %6326 = vst [vmem:[#allocation3_spill] sm:$0xff] %v4525_v59  ;;  %v4543_v7 = vpack.i.bf16 %v934_v62, %v933_v61  ;;  %v938_v9 = vunpack.c.h.bf16 %v4535_v0  ;;  %v943_v14 = vunpack.c.l.bf16 %v263_v10  ;;  %v944_v15 = vunpack.c.h.bf16 %v263_v10  ;;  %v279_v62 = vld [vmem:[%s4410_s30 + $0xc8] sm:$0xff]  }
  0x20   : > { %3650 = vperm.xlu1 %3633, %v4464_v30   ;;  %3645 = vperm.xlu0 %3622, %v4469_v32   ;;  %6327 = vst [vmem:[#allocation4_spill] sm:$0xff] %v4527_v60  ;;  %6328 = vst [vmem:[#allocation5_spill] sm:$0xff] %v4537_v1  ;;  %v4552_v16 = vpack.i.bf16 %v940_v3, %v939_v2  ;;  %v941_v21 = vunpack.c.l.bf16 %v261_v13  ;;  %v942_v22 = vunpack.c.h.bf16 %v261_v13  ;;  %v948_v31 = vunpack.c.h.bf16 %v267_v25  ;;  %v277_v2 = vld [vmem:[%s4410_s30 + $0xc0] sm:$0xff]   ;;  %v283_v13 = vld [vmem:[%s4410_s30 + $0xd8] sm:$0xff]  }
  0x21   : > { %3523 = vmatpush3.bf16.msra.mxu0 %v4274_v29  ;;  %3606 = vmatpush3.bf16.msra.mxu1 %v4274_v29  ;;  %6329 = vst [vmem:[#allocation6_spill] sm:$0xff] %v4543_v7  ;;  %v4554_v20 = vpack.i.bf16 %v938_v9, %v937_v8  ;;  %v4560_v5 = vpack.i.bf16 %v944_v15, %v943_v14  ;;  %v947_v29 = vunpack.c.l.bf16 %v267_v25  ;;  %v945_v33 = vunpack.c.l.bf16 %v265_v26  ;;  %v281_v14 = vld [vmem:[%s4410_s30 + $0xd0] sm:$0xff]  }
  0x22   : > { %3524 = vmatprep.subr.bf16.mxu0 %v4275_v38  ;;  %3599 = vmatprep.subr.bf16.mxu1 %v4275_v38  ;;  %6330 = vst [vmem:[#allocation7_spill] sm:$0xff] %v4552_v16  ;;  %v4564_v34 = vpack.i.bf16 %v942_v22, %v941_v21  ;;  %v946_v35 = vunpack.c.h.bf16 %v265_v26  ;;  %v949_v44 = vunpack.c.l.bf16 %v269_v39  ;;  %v955_v53 = vunpack.c.l.bf16 %v275_v49 }
  0x23   : > { %6331 = vst [vmem:[#allocation8_spill] sm:$0xff] %v4554_v20  ;;  %6332 = vst [vmem:[#allocation9_spill] sm:$0xff] %v4560_v5  ;;  %v956_v57 = vunpack.c.h.bf16 %v275_v49  ;;  %v953_v58 = vunpack.c.l.bf16 %v273_v51  ;;  %v954_v61 = vunpack.c.h.bf16 %v273_v51  ;;  %v960_v3 = vunpack.c.h.bf16 %v279_v62 }
  0x24   : > { %3660 = vperm.xlu1 %3633, %v4487_v41   ;;  %3655 = vperm.xlu0 %3622, %v4489_v42   ;;  %6333 = vst [vmem:[#allocation10_spill] sm:$0xff] %v4564_v34  ;;  %v4572_v43 = vpack.i.bf16 %v946_v35, %v945_v33  ;;  %v957_v9 = vunpack.c.l.bf16 %v277_v2  ;;  %v963_v21 = vunpack.c.l.bf16 %v283_v13  ;;  %v285_v33 = vld [vmem:[%s4410_s30 + $0xe0] sm:$0xff]  }
  0x25   : > { %3525 = vmatpush3.bf16.msra.mxu0 %v4275_v38  ;;  %3607 = vmatpush3.bf16.msra.mxu1 %v4275_v38  ;;  %v271_v38 = vld [vmem:[%s4410_s30 + $0xa8] sm:$0xff]   ;;  %v4590_v8 = vpack.i.bf16 %v954_v61, %v953_v58 }
  0x26   : > { %3526 = vmatprep.subr.bf16.mxu0 %v4276_v47  ;;  %3600 = vmatprep.subr.bf16.mxu1 %v4276_v47  ;;  %v952_v40 = vunpack.c.h.bf16 %v271_v38  ;;  %6335 = vst [vmem:[#allocation12_spill] sm:$0xff] %v4572_v43 }
  0x27   : > { %6339 = vst [vmem:[#allocation16_spill] sm:$0xff] %v4590_v8 }
  0x28   : > { %3670 = vperm.xlu1 %3633, %v4502_v48   ;;  %3665 = vperm.xlu0 %3622, %v4507_v50  }
  0x29   : > { %3527 = vmatpush3.bf16.msra.mxu0 %v4276_v47  ;;  %3608 = vmatpush3.bf16.msra.mxu1 %v4276_v47  ;;  %v950_v47 = vunpack.c.h.bf16 %v269_v39 }
  0x2a   : > { %3528 = vmatprep.subr.bf16.mxu0 %v4277_v56  ;;  %3601 = vmatprep.subr.bf16.mxu1 %v4277_v56 }
  0x2c   : > { %3680 = vperm.xlu1 %3633, %v4525_v59   ;;  %3675 = vperm.xlu0 %3622, %v4527_v60  }
  0x2d   : > { %3529 = vmatpush3.bf16.msra.mxu0 %v4277_v56  ;;  %3609 = vmatpush3.bf16.msra.mxu1 %v4277_v56  ;;  %v4582_v56 = vpack.i.bf16 %v950_v47, %v949_v44  ;;  %v291_v44 = vld [vmem:[%s4410_s30 + $0xf8] sm:$0xff]   ;;  %v289_v47 = vld [vmem:[%s4410_s30 + $0xf0] sm:$0xff]  }
  0x2e   : > { %v972_v58 = vunpack.c.h.bf16 %v291_v44  ;;  %v969_v61 = vunpack.c.l.bf16 %v289_v47 }
  0x2f   : > { %6337 = vst [vmem:[#allocation14_spill] sm:$0xff] %v4582_v56 }
  0x30   : > { %3690 = vperm.xlu1 %3633, %v4537_v1   ;;  %3685 = vperm.xlu0 %3622, %v4543_v7  }
  0x31   : > { %3531 = vmatmul.mubr.bf16.vlgmr.msra.gmra.mrb[0].mxu0 %v4426_v11  ;;  %v951_v11 = vunpack.c.l.bf16 %v271_v38  ;;  %3563 = vmatmul.mubr.bf16.vlgmr.msra.gmra.mrb[0].mxu1 %v263_v10  ;;  %v958_v10 = vunpack.c.h.bf16 %v277_v2 }
  0x32   : > { %3534 = vmatprep.mubr.bf16.mxu0 %v4413_v4  ;;  %v4570_v4 = vpack.i.bf16 %v948_v31, %v947_v29  ;;  %3566 = vmatprep.mubr.bf16.mxu1 %v265_v26  ;;  %v961_v26 = vunpack.c.l.bf16 %v281_v14  ;;  %v962_v29 = vunpack.c.h.bf16 %v281_v14  ;;  %v287_v31 = vld [vmem:[%s4410_s30 + $0xe8] sm:$0xff]  }
  0x33   : > { %v4578_v52 = vpack.i.bf16 %v952_v40, %v951_v11  ;;  %v4600_v22 = vpack.i.bf16 %v958_v10, %v957_v9  ;;  %v968_v35 = vunpack.c.h.bf16 %v287_v31  ;;  %v965_v11 = vunpack.c.l.bf16 %v285_v33 }
  0x34   : > { %3700 = vperm.xlu1 %3633, %v4552_v16   ;;  %3695 = vperm.xlu0 %3622, %v4554_v20   ;;  %6334 = vst [vmem:[#allocation11_spill] sm:$0xff] %v4570_v4  ;;  %v966_v40 = vunpack.c.h.bf16 %v285_v33 }
  0x35   : > { %6336 = vst [vmem:[#allocation13_spill] sm:$0xff] %v4578_v52  ;;  %6340 = vst [vmem:[#allocation17_spill] sm:$0xff] %v4600_v22 }
  0x38   : > { %3710 = vperm.xlu1 %3633, %v4560_v5   ;;  %3705 = vperm.xlu0 %3622, %v4564_v34  }
  0x39   : > { %3535 = vmatmul.mubr.bf16.gmra.mrb[4].mxu0 %v4419_v6  ;;  %v959_v6 = vunpack.c.l.bf16 %v279_v62  ;;  %3567 = vmatmul.mubr.bf16.gmra.mrb[4].mxu1 %v267_v25  ;;  %v964_v25 = vunpack.c.h.bf16 %v283_v13 }
  0x3a   : > { %3538 = vmatprep.mubr.bf16.mxu0 %v4436_v17  ;;  %v4588_v17 = vpack.i.bf16 %v956_v57, %v955_v53  ;;  %3570 = vmatprep.mubr.bf16.mxu1 %v269_v39  ;;  %v4608_v39 = vpack.i.bf16 %v962_v29, %v961_v26  ;;  %v4618_v57 = vpack.i.bf16 %v966_v40, %v965_v11 }
  0x3b   : > { %v4596_v15 = vpack.i.bf16 %v960_v3, %v959_v6  ;;  %v970_v6 = vunpack.c.h.bf16 %v289_v47 }
  0x3c   : > { %3720 = vperm.xlu1 %3633, %v4570_v4   ;;  %3715 = vperm.xlu0 %3622, %v4572_v43   ;;  %6338 = vst [vmem:[#allocation15_spill] sm:$0xff] %v4588_v17  ;;  %6342 = vst [vmem:[#allocation19_spill] sm:$0xff] %v4608_v39 }
  0x3d   : > { %6344 = vst [vmem:[#allocation21_spill] sm:$0xff] %v4618_v57 }
  0x40   : > { %3730 = vperm.xlu1 %3633, %v4578_v52   ;;  %3725 = vperm.xlu0 %3622, %v4582_v56  }
  0x41   : > { %3539 = vmatmul.mubr.bf16.gmra.mrb[8].mxu0 %v4429_v12  ;;  %v967_v12 = vunpack.c.l.bf16 %v287_v31  ;;  %3571 = vmatmul.mubr.bf16.gmra.mrb[8].mxu1 %v271_v38  ;;  %v971_v38 = vunpack.c.l.bf16 %v291_v44 }
  0x42   : > { %3542 = vmatprep.mubr.bf16.mxu0 %v4459_v28  ;;  %v4606_v28 = vpack.i.bf16 %v964_v25, %v963_v21  ;;  %3574 = vmatprep.mubr.bf16.mxu1 %v273_v51  ;;  %v4352_v51 = vmov 1  }
  0x43   : > { %v4614_v53 = vpack.i.bf16 %v968_v35, %v967_v12 }
  0x44   : > { %3740 = vperm.xlu1 %3633, %v4588_v17   ;;  %3735 = vperm.xlu0 %3622, %v4590_v8   ;;  %6341 = vst [vmem:[#allocation18_spill] sm:$0xff] %v4606_v28 }
  0x45   : > { %6343 = vst [vmem:[#allocation20_spill] sm:$0xff] %v4614_v53 }
  0x48   : > { %3750 = vperm.xlu1 %3633, %v4596_v15   ;;  %3745 = vperm.xlu0 %3622, %v4600_v22  }
  0x49   : > { %3543 = vmatmul.mubr.bf16.gmra.mrb[12].mxu0 %v4456_v27  ;;  %3575 = vmatmul.mubr.bf16.gmra.mrb[12].mxu1 %v275_v49  ;;  %v4622_v27 = vpack.i.bf16 %v972_v58, %v971_v38  ;;  %v973_v49 = vld [vmem:[%s6273_s2] sm:$0x3] }
  0x4a   : > { %3546 = vmatprep.mubr.bf16.mxu0 %v4478_v37  ;;  %v4624_v37 = vpack.i.bf16 %v970_v6, %v969_v61  ;;  %3578 = vmatprep.mubr.bf16.mxu1 %v277_v2  ;;  %v4680_v3 = vunpack.c.l.bf16 %v973_v49 }
  0x4b   : > { %6345 = vst [vmem:[#allocation22_spill] sm:$0xff] %v4622_v27 }
  0x4c   : > { %3760 = vperm.xlu1 %3633, %v4606_v28   ;;  %3755 = vperm.xlu0 %3622, %v4608_v39   ;;  %6346 = vst [vmem:[#allocation23_spill] sm:$0xff] %v4624_v37 }
  0x50   : > { %3770 = vperm.xlu1 %3633, %v4614_v53   ;;  %3765 = vperm.xlu0 %3622, %v4618_v57  }
  0x51   : > { %3547 = vmatmul.mubr.bf16.gmra.mrb[16].mxu0 %v4475_v36  ;;  %3579 = vmatmul.mubr.bf16.gmra.mrb[16].mxu1 %v279_v62 }
  0x52   : > { %3550 = vmatprep.mubr.bf16.mxu0 %v4497_v46  ;;  %3582 = vmatprep.mubr.bf16.mxu1 %v281_v14  ;;  %v4353_v46 = vmov 2  }
  0x54   : > { %3780 = vperm.xlu1 %3633, %v4622_v27   ;;  %3775 = vperm.xlu0 %3622, %v4624_v37  }
  0x58   : > { %3790 = vset.pattern.permute.xlu1 %v4352_v51  ;;  %3784 = vset.pattern.permute.xlu0 %v4352_v51 }
  0x59   : > { %3792 = vperm.xlu1 %3790, %v4451_v24   ;;  %3786 = vperm.xlu0 %3784, %v4440_v19  }
  0x5a   : > { %3551 = vmatmul.mubr.bf16.gmra.mrb[20].mxu0 %v4494_v45  ;;  %3583 = vmatmul.mubr.bf16.gmra.mrb[20].mxu1 %v283_v13 }
  0x5b   : > { %3554 = vmatprep.mubr.bf16.mxu0 %v4516_v55  ;;  %3586 = vmatprep.mubr.bf16.mxu1 %v285_v33 }
  0x5d   : > { %3797 = vperm.xlu1 %3790, %v4438_v18   ;;  %3802 = vperm.xlu0 %3784, %v4449_v23  }
  0x61   : > { %3807 = vperm.xlu1 %3790, %v4469_v32   ;;  %3812 = vperm.xlu0 %3784, %v4464_v30  }
  0x62   : > { %3555 = vmatmul.mubr.bf16.gmra.mrb[24].mxu0 %v4513_v54  ;;  %3587 = vmatmul.mubr.bf16.gmra.mrb[24].mxu1 %v287_v31  ;;  %v1296_v54 = vlaneseq }
  0x63   : > { %3558 = vmatprep.mubr.bf16.mxu0 %v4535_v0  ;;  %3590 = vmatprep.mubr.bf16.mxu1 %v289_v47 }
  0x64   : > { %v4669_v0 = vshrl.u32 %v1296_v54, 7 }
  0x65   : > { %3817 = vperm.xlu1 %3790, %v4489_v42   ;;  %3822 = vperm.xlu0 %3784, %v4487_v41  }
  0x66   : > { %v1298_v9 = vsub.s32 0, %v4669_v0  ;;  %v1692_v26 = vsub.s32 1, %v4669_v0  ;;  %v2080_v51 = vsub.s32 2, %v4669_v0 }
  0x68   : > { %v4690_v14 = vrot.slane %v4680_v3, %v1298_v9  ;;  %v4706_v33 = vrot.slane %v4680_v3, %v1692_v26 }
  0x69   : > { %3827 = vperm.xlu1 %3790, %v4507_v50   ;;  %3832 = vperm.xlu0 %3784, %v4502_v48  }
  0x6a   : > { %3559 = vmatmul.mubr.bf16.gmra.mrb[28].mxu0 %v4532_v63  ;;  %3591 = vmatmul.mubr.bf16.gmra.mrb[28].mxu1 %v291_v44 }
  0x6d   : > { %3837 = vperm.xlu1 %3790, %v4527_v60   ;;  %3842 = vperm.xlu0 %3784, %v4525_v59  }
  0x71   : > { %3847 = vperm.xlu1 %3790, %v4543_v7   ;;  %3852 = vperm.xlu0 %3784, %v4537_v1  }
  0x75   : > { %3857 = vperm.xlu1 %3790, %v4554_v20   ;;  %3862 = vperm.xlu0 %3784, %v4552_v16  }
  0x79   : > { %3867 = vperm.xlu1 %3790, %v4564_v34   ;;  %3872 = vperm.xlu0 %3784, %v4560_v5  }
  0x7d   : > { %3877 = vperm.xlu1 %3790, %v4572_v43   ;;  %3882 = vperm.xlu0 %3784, %v4570_v4  }
  0x81   : > { %3887 = vperm.xlu1 %3790, %v4582_v56   ;;  %3892 = vperm.xlu0 %3784, %v4578_v52  }
  0x85   : > { %3897 = vperm.xlu1 %3790, %v4590_v8   ;;  %3902 = vperm.xlu0 %3784, %v4588_v17  }
  0x89   : > { %3907 = vperm.xlu1 %3790, %v4600_v22   ;;  %3912 = vperm.xlu0 %3784, %v4596_v15  }
  0x8d   : > { %3917 = vperm.xlu1 %3790, %v4608_v39   ;;  %3922 = vperm.xlu0 %3784, %v4606_v28  }
  0x91   : > { %3927 = vperm.xlu1 %3790, %v4618_v57   ;;  %3932 = vperm.xlu0 %3784, %v4614_v53  }
  0x95   : > { %3937 = vperm.xlu1 %3790, %v4624_v37   ;;  %3942 = vperm.xlu0 %3784, %v4622_v27  }
  0x97   : > { %v3636_v36 = vpop.permute.xlu1 %3635  ;;  %v3625_v45 = vpop.permute.xlu0 %3624 }
  0x98   : > { %v3638_v11 = vunpack.i.h.bf16 %v3636_v36  ;;  %v3637_v40 = vunpack.i.l.bf16 %v3636_v36  ;;  %v3627_v44 = vunpack.i.h.bf16 %v3625_v45  ;;  %v3626_v47 = vunpack.i.l.bf16 %v3625_v45  ;;  %v4726_v36 = vld [vmem:[%s6275_s4] ss:$0 sm:$0xff] }
  0x99   : > { %3946 = vset.pattern.permute.xlu1 %v4353_v46  ;;  %3952 = vset.pattern.permute.xlu0 %v4353_v46 }
  0x9a   : > { %3948 = vperm.xlu1 %3946, %v4440_v19   ;;  %3954 = vperm.xlu0 %3952, %v4451_v24   ;;  %v1305_v46 = vmul.f32 %v3638_v11, %v4690_v14  ;;  %v1304_v54 = vmul.f32 %v3637_v40, %v4690_v14  ;;  %v1301_v45 = vmul.f32 %v3627_v44, %v4690_v14 }
  0x9b   : > { %v3641_v55 = vpop.permute.xlu1 %3640  ;;  %v3630_v63 = vpop.permute.xlu0 %3629  ;;  %v1300_v49 = vmul.f32 %v3626_v47, %v4690_v14  ;;  %v4740_v44 = vrot.slane %v4680_v3, %v2080_v51 }
  0x9c   : > { %v3643_v61 = vunpack.i.h.bf16 %v3641_v55  ;;  %v3642_v6 = vunpack.i.l.bf16 %v3641_v55  ;;  %v3632_v9 = vunpack.i.h.bf16 %v3630_v63  ;;  %v3631_v26 = vunpack.i.l.bf16 %v3630_v63 }
  0x9d   : > { %6347 = vst [vmem:[#allocation24_spill] sm:$0xff] %v4740_v44  ;;  %v4743_v47 = vadd.f32 %v4726_v36, %v1305_v46  ;;  %v4746_v63 = vadd.f32 %v4726_v36, %v1304_v54 }
  0x9e   : > { %3959 = vperm.xlu1 %3946, %v4438_v18   ;;  %3969 = vperm.xlu0 %3952, %v4469_v32   ;;  %v1302_v51 = vmul.f32 %v3631_v26, %v4690_v14 }
  0x9f   : > { %v4676_v62 = vpop.permute.xlu1 %3650  ;;  %v4678_v2 = vpop.permute.xlu0 %3645  ;;  %6348 = vst [vmem:[#allocation25_spill] sm:$0xff] %v4746_v63 }
  0xa0   : > { %v3653_v55 = vunpack.i.h.bf16 %v4676_v62  ;;  %v3647_v54 = vunpack.i.l.bf16 %v4678_v2 }
  0xa2   : > { %3964 = vperm.xlu1 %3946, %v4449_v23   ;;  %3979 = vperm.xlu0 %3952, %v4489_v42   ;;  %v1311_v46 = vmul.f32 %v3653_v55, %v4690_v14 }
  0xa3   : > { %v4685_v10 = vpop.permute.xlu1 %3660  ;;  %v4687_v13 = vpop.permute.xlu0 %3655 }
  0xa4   : > { %v3662_v44 = vunpack.i.l.bf16 %v4685_v10  ;;  %v3658_v55 = vunpack.i.h.bf16 %v4687_v13 }
  0xa6   : > { %3974 = vperm.xlu1 %3946, %v4464_v30   ;;  %3989 = vperm.xlu0 %3952, %v4507_v50  }
  0xa7   : > { %v4694_v21 = vpop.permute.xlu1 %3670  ;;  %v4696_v25 = vpop.permute.xlu0 %3665 }
  0xa8   : > { %v3672_v50 = vunpack.i.l.bf16 %v4694_v21 }
  0xaa   : > { %3984 = vperm.xlu1 %3946, %v4487_v41   ;;  %3999 = vperm.xlu0 %3952, %v4527_v60   ;;  %v3652_v60 = vunpack.i.l.bf16 %v4676_v62  ;;  %v3663_v62 = vunpack.i.h.bf16 %v4685_v10 }
  0xab   : > { %v4701_v29 = vpop.permute.xlu1 %3680  ;;  %v4703_v31 = vpop.permute.xlu0 %3675 }
  0xae   : > { %3994 = vperm.xlu1 %3946, %v4502_v48   ;;  %4009 = vperm.xlu0 %3952, %v4543_v7   ;;  %v1306_v7 = vmul.f32 %v3642_v6, %v4690_v14  ;;  %v1303_v6 = vmul.f32 %v3632_v9, %v4690_v14 }
  0xaf   : > { %v4710_v12 = vpop.permute.xlu1 %3690  ;;  %v4712_v35 = vpop.permute.xlu0 %3685 }
  0xb0   : > { %v4772_v26 = vadd.f32 %v4726_v36, %v1306_v7  ;;  %v4781_v63 = vadd.f32 %v4726_v36, %v1303_v6  ;;  %v3668_v7 = vunpack.i.h.bf16 %v4696_v25 }
  0xb2   : > { %4004 = vperm.xlu1 %3946, %v4525_v59   ;;  %4019 = vperm.xlu0 %3952, %v4554_v20   ;;  %v1307_v20 = vmul.f32 %v3643_v61, %v4690_v14  ;;  %v4754_v61 = vadd.f32 %v4726_v36, %v1300_v49  ;;  %6350 = vst [vmem:[#allocation27_spill] sm:$0xff] %v4772_v26  ;;  %v3667_v26 = vunpack.i.l.bf16 %v4696_v25 }
  0xb3   : > { %v4716_v38 = vpop.permute.xlu1 %3700  ;;  %v4718_v58 = vpop.permute.xlu0 %3695 }
  0xb4   : > { %v4769_v9 = vadd.f32 %v4726_v36, %v1307_v20  ;;  %v4784_v20 = vadd.f32 %v4726_v36, %v1302_v51 }
  0xb6   : > { %4014 = vperm.xlu1 %3946, %v4537_v1   ;;  %4029 = vperm.xlu0 %3952, %v4564_v34   ;;  %v3648_v34 = vunpack.i.h.bf16 %v4678_v2  ;;  %v4751_v1 = vadd.f32 %v4726_v36, %v1301_v45  ;;  %6349 = vst [vmem:[#allocation26_spill] sm:$0xff] %v4769_v9  ;;  %v3657_v2 = vunpack.i.l.bf16 %v4687_v13  ;;  %v1315_v13 = vmul.f32 %v3663_v62, %v4690_v14 }
  0xb7   : > { %v4733_v11 = vpop.permute.xlu1 %3710  ;;  %v4735_v40 = vpop.permute.xlu0 %3705  ;;  %v1313_v9 = vmul.f32 %v3658_v55, %v4690_v14 }
  0xb8   : > { %v1309_v10 = vmul.f32 %v3648_v34, %v4690_v14  ;;  %v1308_v34 = vmul.f32 %v3647_v54, %v4690_v14  ;;  %v1312_v25 = vmul.f32 %v3657_v2, %v4690_v14 }
  0xba   : > { %4024 = vperm.xlu1 %3946, %v4552_v16   ;;  %4039 = vperm.xlu0 %3952, %v4572_v43   ;;  %v1310_v16 = vmul.f32 %v3652_v60, %v4690_v14  ;;  %v3673_v43 = vunpack.i.h.bf16 %v4694_v21  ;;  %v4790_v60 = vadd.f32 %v4726_v36, %v1311_v46  ;;  %v1314_v21 = vmul.f32 %v3662_v44, %v4690_v14 }
  0xbb   : > { %v4764_v45 = vpop.permute.xlu1 %3720  ;;  %v4766_v49 = vpop.permute.xlu0 %3715  ;;  %v4804_v54 = vadd.f32 %v4726_v36, %v1309_v10  ;;  %v1318_v44 = vmul.f32 %v3672_v50, %v4690_v14  ;;  %v4817_v10 = vadd.f32 %v4726_v36, %v1315_v13  ;;  %v3683_v50 = vunpack.i.h.bf16 %v4701_v29 }
  0xbc   : > { %6351 = vst [vmem:[#allocation28_spill] sm:$0xff] %v4790_v60  ;;  %v4801_v46 = vadd.f32 %v4726_v36, %v1310_v16  ;;  %v1319_v62 = vmul.f32 %v3673_v43, %v4690_v14  ;;  %v1316_v60 = vmul.f32 %v3667_v26, %v4690_v14  ;;  %v4814_v16 = vadd.f32 %v4726_v36, %v1308_v34 }
  0xbd   : > { %v4820_v43 = vadd.f32 %v4726_v36, %v1314_v21  ;;  %v3682_v21 = vunpack.i.l.bf16 %v4701_v29  ;;  %v1323_v29 = vmul.f32 %v3683_v50, %v4690_v14 }
  0xbe   : > { %4034 = vperm.xlu1 %3946, %v4560_v5   ;;  %4049 = vperm.xlu0 %3952, %v4582_v56   ;;  %v1317_v56 = vmul.f32 %v3668_v7, %v4690_v14  ;;  %v4830_v7 = vadd.f32 %v4726_v36, %v1312_v25 }
  0xbf   : > { %v4796_v6 = vpop.permute.xlu1 %3730  ;;  %v3726_v51 = vpop.permute.xlu0 %3725  ;;  %6352 = vst [vmem:[#allocation29_spill] sm:$0xff] %v4820_v43  ;;  %v4841_v43 = vadd.f32 %v4726_v36, %v1319_v62 }
  0xc0   : > { %v3728_v59 = vunpack.i.h.bf16 %v3726_v51  ;;  %v3727_v5 = vunpack.i.l.bf16 %v3726_v51  ;;  %v3678_v51 = vunpack.i.h.bf16 %v4703_v31  ;;  %v4847_v25 = vadd.f32 %v4726_v36, %v1317_v56 }
  0xc1   : > { %6355 = vst [vmem:[#allocation32_spill] sm:$0xff] %v4841_v43 }
  0xc2   : > { %v1341_v55 = vmul.f32 %v3728_v59, %v4690_v14  ;;  %v1340_v2 = vmul.f32 %v3727_v5, %v4690_v14  ;;  %4044 = vperm.xlu1 %3946, %v4570_v4   ;;  %4059 = vperm.xlu0 %3952, %v4590_v8   ;;  %v4827_v5 = vadd.f32 %v4726_v36, %v1313_v9 }
  0xc3   : > { %v4824_v26 = vpop.permute.xlu1 %3740  ;;  %v3736_v59 = vpop.permute.xlu0 %3735  ;;  %v4844_v9 = vadd.f32 %v4726_v36, %v1318_v44  ;;  %6357 = vst [vmem:[#allocation34_spill] sm:$0xff] %v4847_v25 }
  0xc4   : > { %v4833_v34 = vadd.f32 %v4726_v36, %v1341_v55  ;;  %v4836_v13 = vadd.f32 %v4726_v36, %v1340_v2  ;;  %v3738_v8 = vunpack.i.h.bf16 %v3736_v59  ;;  %v3737_v4 = vunpack.i.l.bf16 %v3736_v59 }
  0xc5   : > { %6356 = vst [vmem:[#allocation33_spill] sm:$0xff] %v4844_v9  ;;  %v4850_v55 = vadd.f32 %v4726_v36, %v1316_v60  ;;  %v3677_v2 = vunpack.i.l.bf16 %v4703_v31  ;;  %v1322_v60 = vmul.f32 %v3682_v21, %v4690_v14  ;;  %v3693_v21 = vunpack.i.h.bf16 %v4710_v12 }
  0xc6   : > { %6353 = vst [vmem:[#allocation30_spill] sm:$0xff] %v4833_v34  ;;  %6354 = vst [vmem:[#allocation31_spill] sm:$0xff] %v4836_v13  ;;  %4054 = vperm.xlu1 %3946, %v4578_v52   ;;  %v1345_v59 = vmul.f32 %v3738_v8, %v4690_v14  ;;  %v1344_v62 = vmul.f32 %v3737_v4, %v4690_v14  ;;  %4069 = vperm.xlu0 %3952, %v4600_v22  }
  0xc7   : > { %v3751_v44 = vpop.permute.xlu1 %3750  ;;  %v3746_v34 = vpop.permute.xlu0 %3745  ;;  %v1321_v52 = vmul.f32 %v3678_v51, %v4690_v14  ;;  %v3692_v51 = vunpack.i.l.bf16 %v4710_v12  ;;  %v4894_v25 = vadd.f32 %v4726_v36, %v1322_v60 }
  0xc8   : > { %v3753_v13 = vunpack.i.h.bf16 %v3751_v44  ;;  %v3752_v56 = vunpack.i.l.bf16 %v3751_v44  ;;  %v3748_v9 = vunpack.i.h.bf16 %v3746_v34  ;;  %v3747_v43 = vunpack.i.l.bf16 %v3746_v34 }
  0xc9   : > { %v4861_v50 = vadd.f32 %v4726_v36, %v1345_v59  ;;  %v4864_v31 = vadd.f32 %v4726_v36, %v1344_v62  ;;  %v4872_v34 = vmul.f32 %v3677_v2, %v4690_v14  ;;  %v3688_v59 = vunpack.i.h.bf16 %v4712_v35 }
  0xca   : > { %v1351_v4 = vmul.f32 %v3753_v13, %v4690_v14  ;;  %v1350_v8 = vmul.f32 %v3752_v56, %v4690_v14  ;;  %v1349_v22 = vmul.f32 %v3748_v9, %v4690_v14  ;;  %v1348_v44 = vmul.f32 %v3747_v43, %v4690_v14  ;;  %4064 = vperm.xlu1 %3946, %v4588_v17  }
  0xcb   : > { %6358 = vst [vmem:[#allocation35_spill] sm:$0xff] %v4861_v50  ;;  %6359 = vst [vmem:[#allocation36_spill] sm:$0xff] %v4864_v31  ;;  %4079 = vperm.xlu0 %3952, %v4608_v39   ;;  %v3761_v13 = vpop.permute.xlu1 %3760  ;;  %v3756_v62 = vpop.permute.xlu0 %3755  ;;  %v4891_v39 = vadd.f32 %v4726_v36, %v1323_v29 }
  0xcc   : > { %v4879_v56 = vadd.f32 %v4726_v36, %v1351_v4  ;;  %v4882_v43 = vadd.f32 %v4726_v36, %v1350_v8  ;;  %v4885_v9 = vadd.f32 %v4726_v36, %v1349_v22  ;;  %v4888_v2 = vadd.f32 %v4726_v36, %v1348_v44 }
  0xcd   : > { %v3763_v50 = vunpack.i.h.bf16 %v3761_v13  ;;  %v3762_v12 = vunpack.i.l.bf16 %v3761_v13  ;;  %v3758_v31 = vunpack.i.h.bf16 %v3756_v62  ;;  %v3757_v17 = vunpack.i.l.bf16 %v3756_v62 }
  0xce   : > { %6360 = vst [vmem:[#allocation37_spill] sm:$0xff] %v4879_v56  ;;  %6361 = vst [vmem:[#allocation38_spill] sm:$0xff] %v4882_v43  ;;  %v4897_v4 = vadd.f32 %v4726_v36, %v1321_v52  ;;  %v3687_v8 = vunpack.i.l.bf16 %v4712_v35  ;;  %4074 = vperm.xlu1 %3946, %v4596_v15  }
  0xcf   : > { %6362 = vst [vmem:[#allocation39_spill] sm:$0xff] %v4885_v9  ;;  %6363 = vst [vmem:[#allocation40_spill] sm:$0xff] %v4888_v2  ;;  %v1355_v22 = vmul.f32 %v3763_v50, %v4690_v14  ;;  %v1354_v44 = vmul.f32 %v3762_v12, %v4690_v14  ;;  %v1353_v13 = vmul.f32 %v3758_v31, %v4690_v14  ;;  %4089 = vperm.xlu0 %3952, %v4618_v57   ;;  %v3771_v29 = vpop.permute.xlu1 %3770  ;;  %v3766_v60 = vpop.permute.xlu0 %3765 }
  0xd0   : > { %v1352_v62 = vmul.f32 %v3757_v17, %v4690_v14  ;;  %v3773_v43 = vunpack.i.h.bf16 %v3771_v29  ;;  %v3772_v56 = vunpack.i.l.bf16 %v3771_v29  ;;  %v3768_v52 = vunpack.i.h.bf16 %v3766_v60 }
  0xd1   : > { %v3767_v9 = vunpack.i.l.bf16 %v3766_v60  ;;  %v4907_v35 = vadd.f32 %v4726_v36, %v1355_v22  ;;  %v4910_v2 = vadd.f32 %v4726_v36, %v1354_v44  ;;  %v4913_v50 = vadd.f32 %v4726_v36, %v1353_v13 }
  0xd2   : > { %v4916_v31 = vadd.f32 %v4726_v36, %v1352_v62  ;;  %v1359_v17 = vmul.f32 %v3773_v43, %v4690_v14  ;;  %v1358_v12 = vmul.f32 %v3772_v56, %v4690_v14  ;;  %v1357_v29 = vmul.f32 %v3768_v52, %v4690_v14  ;;  %4084 = vperm.xlu1 %3946, %v4606_v28  }
  0xd3   : > { %6364 = vst [vmem:[#allocation41_spill] sm:$0xff] %v4907_v35  ;;  %6365 = vst [vmem:[#allocation42_spill] sm:$0xff] %v4910_v2  ;;  %v1356_v60 = vmul.f32 %v3767_v9, %v4690_v14  ;;  %v1327_v22 = vmul.f32 %v3693_v21, %v4690_v14  ;;  %v1326_v44 = vmul.f32 %v3692_v51, %v4690_v14  ;;  %4099 = vperm.xlu0 %3952, %v4624_v37   ;;  %v3781_v62 = vpop.permute.xlu1 %3780  ;;  %v3776_v43 = vpop.permute.xlu0 %3775 }
  0xd4   : > { %6366 = vst [vmem:[#allocation43_spill] sm:$0xff] %v4913_v50  ;;  %6367 = vst [vmem:[#allocation44_spill] sm:$0xff] %v4916_v31  ;;  %v1325_v13 = vmul.f32 %v3688_v59, %v4690_v14  ;;  %v1324_v57 = vmul.f32 %v3687_v8, %v4690_v14  ;;  %v4929_v56 = vadd.f32 %v4726_v36, %v1359_v17  ;;  %v3783_v51 = vunpack.i.h.bf16 %v3781_v62 }
  0xd5   : > { %v4932_v52 = vadd.f32 %v4726_v36, %v1358_v12  ;;  %v4935_v9 = vadd.f32 %v4726_v36, %v1357_v29  ;;  %v4938_v21 = vadd.f32 %v4726_v36, %v1356_v60  ;;  %v3782_v59 = vunpack.i.l.bf16 %v3781_v62 }
  0xd6   : > { %6368 = vst [vmem:[#allocation45_spill] sm:$0xff] %v4929_v56  ;;  %v3778_v2 = vunpack.i.h.bf16 %v3776_v43  ;;  %v3777_v8 = vunpack.i.l.bf16 %v3776_v43  ;;  %v3703_v37 = vunpack.i.h.bf16 %v4716_v38  ;;  %v3702_v35 = vunpack.i.l.bf16 %v4716_v38  ;;  %4094 = vperm.xlu1 %3946, %v4614_v53  }
  0xd7   : > { %6369 = vst [vmem:[#allocation46_spill] sm:$0xff] %v4932_v52  ;;  %6370 = vst [vmem:[#allocation47_spill] sm:$0xff] %v4935_v9  ;;  %v3698_v17 = vunpack.i.h.bf16 %v4718_v58  ;;  %v3697_v56 = vunpack.i.l.bf16 %v4718_v58  ;;  %v1363_v12 = vmul.f32 %v3783_v51, %v4690_v14  ;;  %v1362_v29 = vmul.f32 %v3782_v59, %v4690_v14 }
  0xd8   : > { %6371 = vst [vmem:[#allocation48_spill] sm:$0xff] %v4938_v21  ;;  %v1361_v60 = vmul.f32 %v3778_v2, %v4690_v14  ;;  %v1360_v62 = vmul.f32 %v3777_v8, %v4690_v14  ;;  %v4354_v52 = vmov 3   ;;  %v3713_v43 = vunpack.i.h.bf16 %v4733_v11  ;;  %v4954_v21 = vpop.permute.xlu1 %3792  ;;  %v4956_v51 = vpop.permute.xlu0 %3786 }
  0xd9   : > { %4108 = vset.pattern.permute.xlu0 %v4354_v52  ;;  %v3712_v38 = vunpack.i.l.bf16 %v4733_v11  ;;  %v3708_v9 = vunpack.i.h.bf16 %v4735_v40  ;;  %v3707_v58 = vunpack.i.l.bf16 %v4735_v40  ;;  %v4959_v2 = vadd.f32 %v4726_v36, %v1363_v12 }
  0xda   : > { %4110 = vperm.xlu0 %4108, %v4440_v19   ;;  %v4962_v59 = vadd.f32 %v4726_v36, %v1362_v29  ;;  %v4965_v8 = vadd.f32 %v4726_v36, %v1361_v60  ;;  %v4968_v11 = vadd.f32 %v4726_v36, %v1360_v62  ;;  %v4972_v40 = vadd.f32 %v4726_v36, %v4872_v34 }
  0xdb   : > { %6372 = vst [vmem:[#allocation49_spill] sm:$0xff] %v4959_v2  ;;  %v4975_v19 = vadd.f32 %v4726_v36, %v1327_v22  ;;  %v1331_v50 = vmul.f32 %v3703_v37, %v4690_v14  ;;  %v1330_v12 = vmul.f32 %v3702_v35, %v4690_v14  ;;  %4104 = vperm.xlu1 %3946, %v4622_v27   ;;  %v3794_v27 = vunpack.i.l.bf16 %v4954_v21 }
  0xdc   : > { %6373 = vst [vmem:[#allocation50_spill] sm:$0xff] %v4962_v59  ;;  %6374 = vst [vmem:[#allocation51_spill] sm:$0xff] %v4965_v8  ;;  %v4981_v29 = vadd.f32 %v4726_v36, %v1326_v44  ;;  %v1329_v60 = vmul.f32 %v3698_v17, %v4690_v14  ;;  %v1328_v62 = vmul.f32 %v3697_v56, %v4690_v14  ;;  %v3723_v59 = vunpack.i.h.bf16 %v4764_v45  ;;  %v4995_v44 = vpop.permute.xlu1 %3797  ;;  %v4997_v2 = vpop.permute.xlu0 %3802 }
  0xdd   : > { %6375 = vst [vmem:[#allocation52_spill] sm:$0xff] %v4968_v11  ;;  %v4987_v34 = vadd.f32 %v4726_v36, %v1325_v13  ;;  %v4990_v22 = vadd.f32 %v4726_v36, %v1324_v57  ;;  %v1335_v37 = vmul.f32 %v3713_v43, %v4690_v14  ;;  %v1334_v35 = vmul.f32 %v3712_v38, %v4690_v14 }
  0xde   : > { %4126 = vperm.xlu0 %4108, %v4449_v23   ;;  %v1333_v56 = vmul.f32 %v3708_v9, %v4690_v14  ;;  %v1332_v17 = vmul.f32 %v3707_v58, %v4690_v14  ;;  %v3722_v13 = vunpack.i.l.bf16 %v4764_v45  ;;  %v3718_v8 = vunpack.i.h.bf16 %v4766_v49 }
  0xdf   : > { %v5004_v57 = vadd.f32 %v4726_v36, %v1331_v50  ;;  %v5007_v43 = vadd.f32 %v4726_v36, %v1330_v12  ;;  %v3717_v23 = vunpack.i.l.bf16 %v4766_v49  ;;  %v3733_v38 = vunpack.i.h.bf16 %v4796_v6  ;;  %4114 = vset.pattern.permute.xlu1 %v4354_v52 }
  0xe0   : > { %v5012_v11 = vadd.f32 %v4726_v36, %v1329_v60  ;;  %v5015_v9 = vadd.f32 %v4726_v36, %v1328_v62  ;;  %v1339_v45 = vmul.f32 %v3723_v59, %v4690_v14  ;;  %v3732_v58 = vunpack.i.l.bf16 %v4796_v6  ;;  %4116 = vperm.xlu1 %4114, %v4451_v24   ;;  %v5029_v60 = vpop.permute.xlu1 %3807  ;;  %v5031_v62 = vpop.permute.xlu0 %3812 }
  0xe1   : > { %v5021_v50 = vadd.f32 %v4726_v36, %v1335_v37  ;;  %v5024_v49 = vadd.f32 %v4726_v36, %v1334_v35  ;;  %v3743_v52 = vunpack.i.h.bf16 %v4824_v26  ;;  %v3742_v12 = vunpack.i.l.bf16 %v4824_v26 }
  0xe2   : > { %4136 = vperm.xlu0 %4108, %v4464_v30   ;;  %v5034_v6 = vadd.f32 %v4726_v36, %v1333_v56  ;;  %v5037_v24 = vadd.f32 %v4726_v36, %v1332_v17  ;;  %v1338_v59 = vmul.f32 %v3722_v13, %v4690_v14  ;;  %v1337_v37 = vmul.f32 %v3718_v8, %v4690_v14 }
  0xe3   : > { %v1336_v35 = vmul.f32 %v3717_v23, %v4690_v14  ;;  %v1343_v26 = vmul.f32 %v3733_v38, %v4690_v14  ;;  %v3795_v30 = vunpack.i.h.bf16 %v4954_v21  ;;  %v5046_v31 = vadd.f32 %v4726_v36, %v1339_v45 }
  0xe4   : > { %v1342_v56 = vmul.f32 %v3732_v58, %v4690_v14  ;;  %v3789_v17 = vunpack.i.h.bf16 %v4956_v51  ;;  %v3788_v53 = vunpack.i.l.bf16 %v4956_v51  ;;  %4121 = vperm.xlu1 %4114, %v4438_v18   ;;  %v1347_v8 = vmul.f32 %v3743_v52, %v4690_v14  ;;  %v3818_v21 = vpop.permute.xlu1 %3817  ;;  %v3823_v38 = vpop.permute.xlu0 %3822 }
  0xe5   : > { %v1346_v13 = vmul.f32 %v3742_v12, %v4690_v14  ;;  %v3800_v23 = vunpack.i.h.bf16 %v4995_v44  ;;  %v2468_v45 = vsub.s32 3, %v4669_v0  ;;  %v5058_v58 = vadd.f32 %v4726_v36, %v1338_v59 }
  0xe6   : > { %4146 = vperm.xlu0 %4108, %v4487_v41   ;;  %v5061_v28 = vadd.f32 %v4726_v36, %v1337_v37  ;;  %v3799_v18 = vunpack.i.l.bf16 %v4995_v44  ;;  %v3805_v51 = vunpack.i.h.bf16 %v4997_v2  ;;  %v5066_v14 = vadd.f32 %v4726_v36, %v1336_v35 }
  0xe7   : > { %v5069_v52 = vadd.f32 %v4726_v36, %v1343_v26  ;;  %v1697_v41 = vmul.f32 %v3795_v30, %v4706_v33  ;;  %v1696_v0 = vmul.f32 %v3794_v27, %v4706_v33  ;;  %v5074_v12 = vadd.f32 %v4726_v36, %v1342_v56 }
  0xe8   : > { %v1695_v59 = vmul.f32 %v3789_v17, %v4706_v33  ;;  %v1694_v37 = vmul.f32 %v3788_v53, %v4706_v33  ;;  %v3804_v44 = vunpack.i.l.bf16 %v4997_v2  ;;  %4131 = vperm.xlu1 %4114, %v4469_v32   ;;  %v5081_v35 = vadd.f32 %v4726_v36, %v1347_v8  ;;  %v3828_v27 = vpop.permute.xlu1 %3827  ;;  %v3833_v56 = vpop.permute.xlu0 %3832 }
  0xe9   : > { %v5084_v26 = vadd.f32 %v4726_v36, %v1346_v13  ;;  %v1699_v30 = vmul.f32 %v3800_v23, %v4706_v33  ;;  %v5089_v17 = vrot.slane %v4680_v3, %v2468_v45  ;;  %v1698_v53 = vmul.f32 %v3799_v18, %v4706_v33 }
  0xea   : > { %4156 = vperm.xlu0 %4108, %v4502_v48   ;;  %v1701_v2 = vmul.f32 %v3805_v51, %v4706_v33  ;;  %v3810_v32 = vunpack.i.h.bf16 %v5029_v60  ;;  %v3809_v8 = vunpack.i.l.bf16 %v5029_v60  ;;  %v5096_v36 = vadd.f32 %v1696_v0, %v4784_v20  ;;  %v6379_v0 = vld [vmem:[#allocation3_spill] sm:$0xff] }
  0xeb   : > { %6376 = vst [vmem:[#allocation53_spill] sm:$0xff] %v5089_v17  ;;  %v5099_v13 = vadd.f32 %v1697_v41, %v4781_v63  ;;  %v3815_v48 = vunpack.i.h.bf16 %v5031_v62  ;;  %v3814_v23 = vunpack.i.l.bf16 %v5031_v62  ;;  %v5104_v3 = vadd.f32 %v1694_v37, %v4754_v61  ;;  %v6380_v61 = vld [vmem:[#allocation25_spill] sm:$0xff] }
  0xec   : > { %v5107_v45 = vadd.f32 %v1695_v59, %v4751_v1  ;;  %v1700_v18 = vmul.f32 %v3804_v44, %v4706_v33  ;;  %v3819_v51 = vunpack.i.l.bf16 %v3818_v21  ;;  %4141 = vperm.xlu1 %4114, %v4489_v42   ;;  %v5112_v20 = vadd.f32 %v1699_v30, %v4743_v47  ;;  %v3838_v62 = vpop.permute.xlu1 %3837  ;;  %v3843_v17 = vpop.permute.xlu0 %3842  ;;  %v6382_v1 = vld [vmem:[#allocation26_spill] sm:$0xff] }
  0xed   : > { %v3820_v63 = vunpack.i.h.bf16 %v3818_v21  ;;  %v3825_v60 = vunpack.i.h.bf16 %v3823_v38  ;;  %v3824_v41 = vunpack.i.l.bf16 %v3823_v38  ;;  %v5116_v37 = vadd.f32 %v1698_v53, %v6380_v61 }
  0xee   : > { %6377 = vst [vmem:[#allocation54_spill] sm:$0xff] %v5107_v45  ;;  %6378 = vst [vmem:[#allocation55_spill] sm:$0xff] %v5112_v20  ;;  %4166 = vperm.xlu0 %4108, %v6379_v0   ;;  %v5119_v59 = vadd.f32 %v1701_v2, %v6382_v1  ;;  %v1703_v44 = vmul.f32 %v3810_v32, %v4706_v33  ;;  %v1702_v42 = vmul.f32 %v3809_v8, %v4706_v33  ;;  %v6384_v20 = vld [vmem:[#allocation27_spill] sm:$0xff]  ;;  %v6386_v1 = vld [vmem:[#allocation5_spill] sm:$0xff] }
  0xef   : > { %6381 = vst [vmem:[#allocation3_spill] sm:$0xff] %v5116_v37  ;;  %v1705_v47 = vmul.f32 %v3815_v48, %v4706_v33  ;;  %v1704_v21 = vmul.f32 %v3814_v23, %v4706_v33  ;;  %v3830_v30 = vunpack.i.h.bf16 %v3828_v27  ;;  %v3829_v38 = vunpack.i.l.bf16 %v3828_v27  ;;  %v6385_v37 = vld [vmem:[#allocation2_spill] sm:$0xff] }
  0xf0   : > { %6383 = vst [vmem:[#allocation25_spill] sm:$0xff] %v5119_v59  ;;  %v5126_v0 = vadd.f32 %v1700_v18, %v6384_v20  ;;  %v1706_v45 = vmul.f32 %v3819_v51, %v4706_v33  ;;  %v3835_v53 = vunpack.i.h.bf16 %v3833_v56  ;;  %v3834_v61 = vunpack.i.l.bf16 %v3833_v56  ;;  %4151 = vperm.xlu1 %4114, %v6385_v37   ;;  %v3848_v23 = vpop.permute.xlu1 %3847  ;;  %v3853_v27 = vpop.permute.xlu0 %3852  ;;  %v6387_v37 = vld [vmem:[#allocation28_spill] sm:$0xff] }
  0xf1   : > { %v1707_v2 = vmul.f32 %v3820_v63, %v4706_v33  ;;  %v1709_v32 = vmul.f32 %v3825_v60, %v4706_v33  ;;  %v1708_v8 = vmul.f32 %v3824_v41, %v4706_v33  ;;  %v3839_v48 = vunpack.i.l.bf16 %v3838_v62 }
  0xf2   : > { %4176 = vperm.xlu0 %4108, %v6386_v1   ;;  %v5135_v18 = vadd.f32 %v1702_v42, %v4814_v16  ;;  %v5138_v51 = vadd.f32 %v1703_v44, %v4804_v54  ;;  %v3840_v56 = vunpack.i.h.bf16 %v3838_v62  ;;  %v3845_v20 = vunpack.i.h.bf16 %v3843_v17  ;;  %v6388_v62 = vld [vmem:[#allocation4_spill] sm:$0xff] }
  0xf3   : > { %v5141_v59 = vadd.f32 %v1705_v47, %v6387_v37  ;;  %v5144_v63 = vadd.f32 %v1704_v21, %v4801_v46  ;;  %v1711_v60 = vmul.f32 %v3830_v30, %v4706_v33  ;;  %v1710_v41 = vmul.f32 %v3829_v38, %v4706_v33  ;;  %v6390_v47 = vld [vmem:[#allocation29_spill] sm:$0xff] }
  0xf4   : > { %v5149_v1 = vadd.f32 %v1706_v45, %v4830_v7  ;;  %v1713_v16 = vmul.f32 %v3835_v53, %v4706_v33  ;;  %v1712_v54 = vmul.f32 %v3834_v61, %v4706_v33  ;;  %v3844_v44 = vunpack.i.l.bf16 %v3843_v17  ;;  %4161 = vperm.xlu1 %4114, %v6388_v62   ;;  %v6392_v7 = vld [vmem:[#allocation7_spill] sm:$0xff]  ;;  %v3858_v45 = vpop.permute.xlu1 %3857  ;;  %v3863_v38 = vpop.permute.xlu0 %3862  ;;  %v6394_v62 = vld [vmem:[#allocation32_spill] sm:$0xff] }
  0xf5   : > { %v5155_v42 = vadd.f32 %v1707_v2, %v4827_v5  ;;  %v5158_v46 = vadd.f32 %v1709_v32, %v4817_v10  ;;  %v5161_v21 = vadd.f32 %v1708_v8, %v6390_v47  ;;  %v1714_v30 = vmul.f32 %v3839_v48, %v4706_v33  ;;  %v6393_v10 = vld [vmem:[#allocation34_spill] sm:$0xff]  ;;  %v6395_v47 = vld [vmem:[#allocation33_spill] sm:$0xff] }
  0xf6   : > { %4186 = vperm.xlu0 %4108, %v6392_v7   ;;  %v1715_v53 = vmul.f32 %v3840_v56, %v4706_v33  ;;  %v1717_v17 = vmul.f32 %v3845_v20, %v4706_v33  ;;  %v3850_v61 = vunpack.i.h.bf16 %v3848_v23  ;;  %v3849_v37 = vunpack.i.l.bf16 %v3848_v23  ;;  %v6396_v20 = vld [vmem:[#allocation6_spill] sm:$0xff] }
  0xf7   : > { %6389 = vst [vmem:[#allocation26_spill] sm:$0xff] %v5158_v46  ;;  %6391 = vst [vmem:[#allocation27_spill] sm:$0xff] %v5161_v21  ;;  %v5168_v5 = vadd.f32 %v1710_v41, %v4850_v55  ;;  %v5171_v2 = vadd.f32 %v1711_v60, %v6393_v10  ;;  %v3855_v32 = vunpack.i.h.bf16 %v3853_v27  ;;  %v3854_v8 = vunpack.i.l.bf16 %v3853_v27  ;;  %v6397_v10 = vld [vmem:[#allocation9_spill] sm:$0xff] }
  0xf8   : > { %v5174_v48 = vadd.f32 %v1713_v16, %v6394_v62  ;;  %v5177_v7 = vadd.f32 %v1712_v54, %v6395_v47  ;;  %v1716_v56 = vmul.f32 %v3844_v44, %v4706_v33  ;;  %v3860_v46 = vunpack.i.h.bf16 %v3858_v45  ;;  %4171 = vperm.xlu1 %4114, %v6396_v20   ;;  %v3868_v27 = vpop.permute.xlu1 %3867  ;;  %v3873_v21 = vpop.permute.xlu0 %3872 }
  0xf9   : > { %v5182_v23 = vadd.f32 %v1714_v30, %v4972_v40  ;;  %v3859_v55 = vunpack.i.l.bf16 %v3858_v45  ;;  %v3865_v41 = vunpack.i.h.bf16 %v3863_v38  ;;  %v3864_v60 = vunpack.i.l.bf16 %v3863_v38 }
  0xfa   : > { %4196 = vperm.xlu0 %4108, %v6397_v10   ;;  %v5186_v16 = vadd.f32 %v1715_v53, %v4897_v4  ;;  %v5189_v54 = vadd.f32 %v1717_v17, %v4891_v39  ;;  %v1719_v44 = vmul.f32 %v3850_v61, %v4706_v33  ;;  %v1718_v62 = vmul.f32 %v3849_v37, %v4706_v33  ;;  %v6399_v10 = vld [vmem:[#allocation8_spill] sm:$0xff] }
  0xfb   : > { %v1721_v40 = vmul.f32 %v3855_v32, %v4706_v33  ;;  %v1720_v30 = vmul.f32 %v3854_v8, %v4706_v33  ;;  %v3870_v45 = vunpack.i.h.bf16 %v3868_v27  ;;  %v3869_v38 = vunpack.i.l.bf16 %v3868_v27  ;;  %v6400_v32 = vld [vmem:[#allocation11_spill] sm:$0xff] }
  0xfc   : > { %6398 = vst [vmem:[#allocation2_spill] sm:$0xff] %v5189_v54  ;;  %v5196_v47 = vadd.f32 %v1716_v56, %v4894_v25  ;;  %v1723_v20 = vmul.f32 %v3860_v46, %v4706_v33  ;;  %v3875_v4 = vunpack.i.h.bf16 %v3873_v21  ;;  %v3874_v53 = vunpack.i.l.bf16 %v3873_v21  ;;  %4181 = vperm.xlu1 %4114, %v6399_v10   ;;  %v3878_v8 = vpop.permute.xlu1 %3877  ;;  %v3883_v27 = vpop.permute.xlu0 %3882 }
  0xfd   : > { %v1722_v39 = vmul.f32 %v3859_v55, %v4706_v33  ;;  %v1725_v17 = vmul.f32 %v3865_v41, %v4706_v33  ;;  %v1724_v61 = vmul.f32 %v3864_v60, %v4706_v33  ;;  %v1727_v37 = vmul.f32 %v3870_v45, %v4706_v33 }
  0xfe   : > { %4206 = vperm.xlu0 %4108, %v6400_v32   ;;  %v1726_v25 = vmul.f32 %v3869_v38, %v4706_v33  ;;  %v3880_v56 = vunpack.i.h.bf16 %v3878_v8  ;;  %v3879_v46 = vunpack.i.l.bf16 %v3878_v8  ;;  %v3885_v54 = vunpack.i.h.bf16 %v3883_v27  ;;  %v6401_v8 = vld [vmem:[#allocation10_spill] sm:$0xff] }
  0xff   : > { %v5207_v21 = vadd.f32 %v1718_v62, %v4990_v22  ;;  %v5210_v55 = vadd.f32 %v1719_v44, %v4987_v34  ;;  %v5213_v41 = vadd.f32 %v1721_v40, %v4975_v19  ;;  %v5216_v60 = vadd.f32 %v1720_v30, %v4981_v29  ;;  %v6402_v44 = vld [vmem:[#allocation13_spill] sm:$0xff] }
 0x100   : > { %v1729_v45 = vmul.f32 %v3875_v4, %v4706_v33  ;;  %v1728_v10 = vmul.f32 %v3874_v53, %v4706_v33  ;;  %v1730_v38 = vmul.f32 %v3879_v46, %v4706_v33  ;;  %v3884_v32 = vunpack.i.l.bf16 %v3883_v27  ;;  %4191 = vperm.xlu1 %4114, %v6401_v8   ;;  %v3888_v62 = vpop.permute.xlu1 %3887  ;;  %v3893_v40 = vpop.permute.xlu0 %3892 }
 0x101   : > { %v5223_v22 = vadd.f32 %v1722_v39, %v5015_v9  ;;  %v5226_v34 = vadd.f32 %v1723_v20, %v5012_v11  ;;  %v5229_v19 = vadd.f32 %v1725_v17, %v5004_v57  ;;  %v5232_v29 = vadd.f32 %v1724_v61, %v5007_v43  ;;  %v6404_v61 = vld [vmem:[#allocation12_spill] sm:$0xff] }
 0x102   : > { %4216 = vperm.xlu0 %4108, %v6402_v44   ;;  %v5236_v30 = vadd.f32 %v1726_v25, %v5037_v24  ;;  %v5239_v4 = vadd.f32 %v1727_v37, %v5034_v6  ;;  %v1731_v9 = vmul.f32 %v3880_v56, %v4706_v33  ;;  %v1733_v11 = vmul.f32 %v3885_v54, %v4706_v33  ;;  %v6407_v44 = vld [vmem:[#allocation31_spill] sm:$0xff] }
 0x103   : > { %v3890_v20 = vunpack.i.h.bf16 %v3888_v62  ;;  %v3889_v57 = vunpack.i.l.bf16 %v3888_v62  ;;  %v3895_v53 = vunpack.i.h.bf16 %v3893_v40  ;;  %v3894_v39 = vunpack.i.l.bf16 %v3893_v40  ;;  %v6409_v40 = vld [vmem:[#allocation30_spill] sm:$0xff] }
 0x104   : > { %v5244_v43 = vadd.f32 %v1729_v45, %v5021_v50  ;;  %v5247_v17 = vadd.f32 %v1728_v10, %v5024_v49  ;;  %v5250_v24 = vadd.f32 %v1730_v38, %v5066_v14  ;;  %v1732_v6 = vmul.f32 %v3884_v32, %v4706_v33  ;;  %4201 = vperm.xlu1 %4114, %v6404_v61   ;;  %v6405_v50 = vld [vmem:[#allocation15_spill] sm:$0xff]  ;;  %v3898_v56 = vpop.permute.xlu1 %3897  ;;  %v3903_v49 = vpop.permute.xlu0 %3902 }
 0x105   : > { %v1735_v37 = vmul.f32 %v3890_v20, %v4706_v33  ;;  %v1734_v54 = vmul.f32 %v3889_v57, %v4706_v33  ;;  %v1737_v27 = vmul.f32 %v3895_v53, %v4706_v33  ;;  %v1736_v25 = vmul.f32 %v3894_v39, %v4706_v33  ;;  %v3532_v38 = vpop.f32.mrb[0].mxu0  ;;  %v5274_v57 = vld [vmem:[%s6274_s3] ss:$0 sm:$0xff] }
 0x106   : > { %6403 = vst [vmem:[#allocation5_spill] sm:$0xff] %v5244_v43  ;;  %4226 = vperm.xlu0 %4108, %v6405_v50   ;;  %v3900_v46 = vunpack.i.h.bf16 %v3898_v56  ;;  %v3899_v45 = vunpack.i.l.bf16 %v3898_v56  ;;  %v3905_v14 = vunpack.i.h.bf16 %v3903_v49  ;;  %v3904_v10 = vunpack.i.l.bf16 %v3903_v49  ;;  %v590_v53 = vpop.f32.mrb[1].mxu0 }
 0x107   : > { %v5260_v32 = vadd.f32 %v1731_v9, %v5061_v28  ;;  %v5263_v8 = vadd.f32 %v1733_v11, %v5046_v31  ;;  %v5266_v62 = vadd.f32 %v1734_v54, %v6407_v44  ;;  %v5269_v20 = vadd.f32 %v1735_v37, %v6409_v40  ;;  %v6411_v11 = vld [vmem:[#allocation14_spill] sm:$0xff]  ;;  %v3533_v61 = vpop.f32.mrb[2].mxu0  ;;  %v5306_v40 = vpop.f32.mrb[0].mxu1 }
 0x108   : > { %v1739_v39 = vmul.f32 %v3900_v46, %v4706_v33  ;;  %v1738_v28 = vmul.f32 %v3899_v45, %v4706_v33  ;;  %v1741_v9 = vmul.f32 %v3905_v14, %v4706_v33  ;;  %v1740_v31 = vmul.f32 %v3904_v10, %v4706_v33  ;;  %4211 = vperm.xlu1 %4114, %v6411_v11   ;;  %v3908_v56 = vpop.permute.xlu1 %3907  ;;  %v3913_v49 = vpop.permute.xlu0 %3912  ;;  %v6416_v45 = vld [vmem:[#allocation36_spill] sm:$0xff]  ;;  %v6418_v10 = vld [vmem:[#allocation35_spill] sm:$0xff] }
 0x109   : > { %6406 = vst [vmem:[#allocation28_spill] sm:$0xff] %v5263_v8  ;;  %6408 = vst [vmem:[#allocation4_spill] sm:$0xff] %v5266_v62  ;;  %v5282_v37 = vadd.f32 %v1732_v6, %v5058_v58  ;;  %v5285_v54 = vadd.f32 %v1737_v27, %v5069_v52  ;;  %v5288_v50 = vadd.f32 %v1736_v25, %v5074_v12  ;;  %v593_v12 = vpop.f32.mrb[3].mxu0  ;;  %v3910_v6 = vunpack.i.h.bf16 %v3908_v56 }
 0x10a   : > { %6410 = vst [vmem:[#allocation29_spill] sm:$0xff] %v5269_v20  ;;  %4236 = vperm.xlu0 %4108, %v4596_v15   ;;  %v5292_v46 = vadd.f32 %v3532_v38, %v5274_v57  ;;  %v5295_v14 = vadd.f32 %v1738_v28, %v6416_v45  ;;  %v5298_v44 = vadd.f32 %v1739_v39, %v6418_v10  ;;  %v3909_v15 = vunpack.i.l.bf16 %v3908_v56  ;;  %v6424_v39 = vld [vmem:[#allocation16_spill] sm:$0xff] }
 0x10b   : > { %6412 = vst [vmem:[#allocation7_spill] sm:$0xff] %v5282_v37  ;;  %6413 = vst [vmem:[#allocation34_spill] sm:$0xff] %v5285_v54  ;;  %v5301_v58 = vadd.f32 %v5274_v57, %v590_v53  ;;  %v5304_v52 = vadd.f32 %v3533_v61, %v5274_v57  ;;  %v3915_v27 = vunpack.i.h.bf16 %v3913_v49  ;;  %v3914_v25 = vunpack.i.l.bf16 %v3913_v49  ;;  %v5319_v61 = vpop.f32.mrb[1].mxu1 }
 0x10c   : > { %6414 = vst [vmem:[#allocation32_spill] sm:$0xff] %v5288_v50  ;;  %6415 = vst [vmem:[#allocation33_spill] sm:$0xff] %v5292_v46  ;;  %v5309_v38 = vadd.f32 %v1741_v9, %v5081_v35  ;;  %v5312_v28 = vadd.f32 %v1740_v31, %v5084_v26  ;;  %4221 = vperm.xlu1 %4114, %v6424_v39   ;;  %v5317_v11 = vadd.f32 %v5274_v57, %v593_v12  ;;  %v6426_v9 = vld [vmem:[#allocation18_spill] sm:$0xff]  ;;  %v3918_v26 = vpop.permute.xlu1 %3917  ;;  %v3923_v31 = vpop.permute.xlu0 %3922 }
 0x10d   : > { %6417 = vst [vmem:[#allocation6_spill] sm:$0xff] %v5295_v14  ;;  %6419 = vst [vmem:[#allocation9_spill] sm:$0xff] %v5298_v44  ;;  %v1743_v56 = vmul.f32 %v3910_v6, %v4706_v33  ;;  %v1742_v49 = vmul.f32 %v3909_v15, %v4706_v33  ;;  %v1745_v45 = vmul.f32 %v3915_v27, %v4706_v33  ;;  %v3920_v10 = vunpack.i.h.bf16 %v3918_v26  ;;  %v3536_v12 = vpop.f32.mrb[4].mxu0  ;;  %v6429_v6 = vld [vmem:[#allocation39_spill] sm:$0xff]  ;;  %v6431_v27 = vld [vmem:[#allocation37_spill] sm:$0xff] }
 0x10e   : > { %6420 = vst [vmem:[#allocation8_spill] sm:$0xff] %v5301_v58  ;;  %6421 = vst [vmem:[#allocation11_spill] sm:$0xff] %v5304_v52  ;;  %v1744_v35 = vmul.f32 %v3914_v25, %v4706_v33  ;;  %4246 = vperm.xlu0 %4108, %v6426_v9   ;;  %v3919_v39 = vunpack.i.l.bf16 %v3918_v26  ;;  %v3925_v53 = vunpack.i.h.bf16 %v3923_v31  ;;  %v3924_v46 = vunpack.i.l.bf16 %v3923_v31  ;;  %v6433_v25 = vld [vmem:[#allocation38_spill] sm:$0xff]  ;;  %v606_v44 = vpop.f32.mrb[5].mxu0 }
 0x10f   : > { %6422 = vst [vmem:[#allocation10_spill] sm:$0xff] %v5309_v38  ;;  %6423 = vst [vmem:[#allocation13_spill] sm:$0xff] %v5312_v28  ;;  %v5326_v38 = vpop.f32.mrb[2].mxu1  ;;  %v6427_v28 = vld [vmem:[#allocation40_spill] sm:$0xff]  ;;  %v5332_v15 = vadd.f32 %v1743_v56, %v6429_v6  ;;  %v5335_v50 = vadd.f32 %v1745_v45, %v6431_v27  ;;  %v1747_v26 = vmul.f32 %v3920_v10, %v4706_v33  ;;  %v3537_v56 = vpop.f32.mrb[6].mxu0 }
 0x110   : > { %6425 = vst [vmem:[#allocation12_spill] sm:$0xff] %v5317_v11  ;;  %v5329_v54 = vadd.f32 %v1742_v49, %v6427_v28  ;;  %v5338_v9 = vadd.f32 %v1744_v35, %v6433_v25  ;;  %v5340_v14 = vpop.f32.mrb[3].mxu1  ;;  %v1746_v31 = vmul.f32 %v3919_v39, %v4706_v33  ;;  %v1749_v8 = vmul.f32 %v3925_v53, %v4706_v33  ;;  %v6435_v49 = vld [vmem:[#allocation17_spill] sm:$0xff]  ;;  %v6436_v6 = vld [vmem:[#allocation20_spill] sm:$0xff]  ;;  %v3928_v45 = vpop.permute.xlu1 %3927 }
 0x111   : > { %6430 = vst [vmem:[#allocation31_spill] sm:$0xff] %v5332_v15  ;;  %6432 = vst [vmem:[#allocation30_spill] sm:$0xff] %v5335_v50  ;;  %v1748_v28 = vmul.f32 %v3924_v46, %v4706_v33  ;;  %4231 = vperm.xlu1 %4114, %v6435_v49   ;;  %v3933_v27 = vpop.permute.xlu0 %3932  ;;  %v5352_v10 = vadd.f32 %v3536_v12, %v5274_v57  ;;  %v6438_v39 = vld [vmem:[#allocation44_spill] sm:$0xff]  ;;  %v6440_v46 = vld [vmem:[#allocation43_spill] sm:$0xff]  ;;  %v609_v35 = vpop.f32.mrb[7].mxu0  ;;  %v3930_v58 = vunpack.i.h.bf16 %v3928_v45  ;;  %v3929_v25 = vunpack.i.l.bf16 %v3928_v45 }
 0x112   : > { %6428 = vst [vmem:[#allocation15_spill] sm:$0xff] %v5329_v54  ;;  %6434 = vst [vmem:[#allocation14_spill] sm:$0xff] %v5338_v9  ;;  %4256 = vperm.xlu0 %4108, %v6436_v6   ;;  %v5355_v53 = vadd.f32 %v1746_v31, %v6438_v39  ;;  %v5358_v9 = vadd.f32 %v1747_v26, %v6440_v46  ;;  %v6442_v49 = vld [vmem:[#allocation41_spill] sm:$0xff]  ;;  %v6444_v6 = vld [vmem:[#allocation42_spill] sm:$0xff]  ;;  %v3935_v52 = vunpack.i.h.bf16 %v3933_v27  ;;  %v3934_v50 = vunpack.i.l.bf16 %v3933_v27  ;;  %v5366_v11 = vpop.f32.mrb[4].mxu1 }
 0x113   : > { %6437 = vst [vmem:[#allocation36_spill] sm:$0xff] %v5352_v10  ;;  %v5361_v15 = vadd.f32 %v1749_v8, %v6442_v49  ;;  %v5364_v54 = vadd.f32 %v1748_v28, %v6444_v6  ;;  %v6446_v12 = vld [vmem:[#allocation19_spill] sm:$0xff]  ;;  %v5371_v26 = vadd.f32 %v5274_v57, %v606_v44  ;;  %v5374_v8 = vadd.f32 %v3537_v56, %v5274_v57  ;;  %v5379_v39 = vpop.f32.mrb[5].mxu1  ;;  %v6450_v6 = vld [vmem:[#allocation22_spill] sm:$0xff] }
 0x114   : > { %6439 = vst [vmem:[#allocation35_spill] sm:$0xff] %v5355_v53  ;;  %6441 = vst [vmem:[#allocation16_spill] sm:$0xff] %v5358_v9  ;;  %v5377_v28 = vadd.f32 %v5274_v57, %v609_v35  ;;  %v1751_v45 = vmul.f32 %v3930_v58, %v4706_v33  ;;  %v1750_v27 = vmul.f32 %v3929_v25, %v4706_v33  ;;  %v3938_v44 = vpop.permute.xlu1 %3937  ;;  %v3540_v35 = vpop.f32.mrb[8].mxu0  ;;  %v6451_v9 = vld [vmem:[#allocation48_spill] sm:$0xff]  ;;  %v6453_v58 = vld [vmem:[#allocation47_spill] sm:$0xff] }
 0x115   : > { %6443 = vst [vmem:[#allocation18_spill] sm:$0xff] %v5361_v15  ;;  %6445 = vst [vmem:[#allocation40_spill] sm:$0xff] %v5364_v54  ;;  %4241 = vperm.xlu1 %4114, %v6446_v12   ;;  %v1753_v46 = vmul.f32 %v3935_v52, %v4706_v33  ;;  %v1752_v49 = vmul.f32 %v3934_v50, %v4706_v33  ;;  %v3943_v12 = vpop.permute.xlu0 %3942  ;;  %v3940_v31 = vunpack.i.h.bf16 %v3938_v44  ;;  %v3939_v56 = vunpack.i.l.bf16 %v3938_v44  ;;  %v5386_v54 = vpop.f32.mrb[6].mxu1  ;;  %v6455_v52 = vld [vmem:[#allocation45_spill] sm:$0xff]  ;;  %v6457_v50 = vld [vmem:[#allocation46_spill] sm:$0xff] }
 0x116   : > { %6447 = vst [vmem:[#allocation39_spill] sm:$0xff] %v5371_v26  ;;  %6448 = vst [vmem:[#allocation37_spill] sm:$0xff] %v5374_v8  ;;  %4266 = vperm.xlu0 %4108, %v6450_v6   ;;  %v3945_v10 = vunpack.i.h.bf16 %v3943_v12  ;;  %v3944_v15 = vunpack.i.l.bf16 %v3943_v12  ;;  %v5389_v53 = vadd.f32 %v1750_v27, %v6451_v9  ;;  %v5392_v25 = vadd.f32 %v1751_v45, %v6453_v58  ;;  %v622_v20 = vpop.f32.mrb[9].mxu0  ;;  %v5400_v62 = vpop.f32.mrb[7].mxu1  ;;  %v6459_v27 = vld [vmem:[#allocation21_spill] sm:$0xff] }
 0x117   : > { %6449 = vst [vmem:[#allocation38_spill] sm:$0xff] %v5377_v28  ;;  %v5395_v37 = vadd.f32 %v1753_v46, %v6455_v52  ;;  %v5398_v6 = vadd.f32 %v1752_v49, %v6457_v50  ;;  %v1755_v44 = vmul.f32 %v3940_v31, %v4706_v33  ;;  %v1754_v12 = vmul.f32 %v3939_v56, %v4706_v33  ;;  %v3541_v45 = vpop.f32.mrb[10].mxu0  ;;  %v6463_v52 = vld [vmem:[#allocation52_spill] sm:$0xff]  ;;  %v6467_v50 = vld [vmem:[#allocation49_spill] sm:$0xff]  ;;  %v6469_v46 = vld [vmem:[#allocation50_spill] sm:$0xff] }
 0x118   : > { %6452 = vst [vmem:[#allocation17_spill] sm:$0xff] %v5389_v53  ;;  %6454 = vst [vmem:[#allocation20_spill] sm:$0xff] %v5392_v25  ;;  %v1757_v43 = vmul.f32 %v3945_v10, %v4706_v33  ;;  %v1756_v9 = vmul.f32 %v3944_v15, %v4706_v33  ;;  %v5410_v49 = vadd.f32 %v5306_v40, %v5274_v57  ;;  %v625_v56 = vpop.f32.mrb[11].mxu0  ;;  %v6465_v33 = vld [vmem:[#allocation51_spill] sm:$0xff]  ;;  %v5432_v53 = vpop.f32.mrb[8].mxu1 }
 0x119   : > { %6456 = vst [vmem:[#allocation44_spill] sm:$0xff] %v5395_v37  ;;  %6458 = vst [vmem:[#allocation43_spill] sm:$0xff] %v5398_v6  ;;  %4251 = vperm.xlu1 %4114, %v6459_v27   ;;  %v5413_v58 = vadd.f32 %v3540_v35, %v5274_v57  ;;  %v5416_v31 = vadd.f32 %v5274_v57, %v622_v20  ;;  %v5419_v10 = vadd.f32 %v1754_v12, %v6463_v52  ;;  %v3949_v40 = vpop.permute.xlu1 %3948  ;;  %v3955_v6 = vpop.permute.xlu0 %3954 }
 0x11a   : > { %6460 = vst [vmem:[#allocation41_spill] sm:$0xff] %v5410_v49  ;;  %v5422_v15 = vadd.f32 %v1755_v44, %v6465_v33  ;;  %v5425_v27 = vadd.f32 %v1757_v43, %v6467_v50  ;;  %v5428_v26 = vadd.f32 %v1756_v9, %v6469_v46  ;;  %v3951_v37 = vunpack.i.h.bf16 %v3949_v40  ;;  %v6471_v44 = vld [vmem:[#allocation23_spill] sm:$0xff]  ;;  %v5440_v46 = vpop.f32.mrb[9].mxu1  ;;  %v6473_v33 = vld [vmem:[#allocation24_spill] sm:$0xff] }
 0x11b   : > { %6461 = vst [vmem:[#allocation42_spill] sm:$0xff] %v5413_v58  ;;  %6462 = vst [vmem:[#allocation19_spill] sm:$0xff] %v5416_v31  ;;  %v3950_v35 = vunpack.i.l.bf16 %v3949_v40  ;;  %v3957_v12 = vunpack.i.h.bf16 %v3955_v6  ;;  %v3956_v52 = vunpack.i.l.bf16 %v3955_v6  ;;  %v5438_v9 = vadd.f32 %v5274_v57, %v5319_v61  ;;  %v5446_v6 = vpop.f32.mrb[10].mxu1 }
 0x11c   : > { %6464 = vst [vmem:[#allocation22_spill] sm:$0xff] %v5419_v10  ;;  %6466 = vst [vmem:[#allocation48_spill] sm:$0xff] %v5422_v15  ;;  %v2083_v50 = vmul.f32 %v3951_v37, %v6473_v33  ;;  %v3544_v28 = vpop.f32.mrb[12].mxu0  ;;  %v5451_v61 = vadd.f32 %v3541_v45, %v5274_v57  ;;  %v5455_v37 = vadd.f32 %v5326_v38, %v5274_v57  ;;  %v5467_v15 = vpop.f32.mrb[11].mxu1  ;;  %v6479_v10 = vld [vmem:[#allocation54_spill] sm:$0xff] }
 0x11d   : > { %6468 = vst [vmem:[#allocation47_spill] sm:$0xff] %v5425_v27  ;;  %6470 = vst [vmem:[#allocation45_spill] sm:$0xff] %v5428_v26  ;;  %4261 = vperm.xlu1 %4114, %v6471_v44   ;;  %v2082_v40 = vmul.f32 %v3950_v35, %v6473_v33  ;;  %v2085_v44 = vmul.f32 %v3957_v12, %v6473_v33  ;;  %v2084_v43 = vmul.f32 %v3956_v52, %v6473_v33  ;;  %v3960_v49 = vpop.permute.xlu1 %3959  ;;  %v638_v35 = vpop.f32.mrb[13].mxu0 }
 0x11e   : > { %6472 = vst [vmem:[#allocation46_spill] sm:$0xff] %v5438_v9  ;;  %6474 = vst [vmem:[#allocation21_spill] sm:$0xff] %v5451_v61  ;;  %v3962_v8 = vunpack.i.h.bf16 %v3960_v49  ;;  %v3961_v25 = vunpack.i.l.bf16 %v3960_v49  ;;  %v3970_v58 = vpop.permute.xlu0 %3969  ;;  %v5459_v31 = vadd.f32 %v5274_v57, %v625_v56  ;;  %v3545_v12 = vpop.f32.mrb[14].mxu0  ;;  %v5473_v20 = vadd.f32 %v2083_v50, %v6479_v10  ;;  %v6483_v10 = vld [vmem:[#allocation3_spill] sm:$0xff] }
 0x11f   : > { %6475 = vst [vmem:[#allocation52_spill] sm:$0xff] %v5455_v37  ;;  %v5462_v52 = vadd.f32 %v2084_v43, %v5096_v36  ;;  %v5465_v45 = vadd.f32 %v2085_v44, %v5099_v13  ;;  %v3972_v27 = vunpack.i.h.bf16 %v3970_v58  ;;  %v3971_v26 = vunpack.i.l.bf16 %v3970_v58  ;;  %v641_v38 = vpop.f32.mrb[15].mxu0 }
 0x120   : > { %6476 = vst [vmem:[#allocation51_spill] sm:$0xff] %v5459_v31  ;;  %v5470_v49 = vadd.f32 %v2082_v40, %v5104_v3  ;;  %v2087_v56 = vmul.f32 %v3962_v8, %v6473_v33  ;;  %v2086_v9 = vmul.f32 %v3961_v25, %v6473_v33  ;;  %v5482_v44 = vadd.f32 %v5274_v57, %v5340_v14  ;;  %v6481_v3 = vld [vmem:[#allocation55_spill] sm:$0xff]  ;;  %v6491_v31 = vld [vmem:[#allocation25_spill] sm:$0xff] }
 0x121   : > { %6477 = vst [vmem:[#allocation49_spill] sm:$0xff] %v5462_v52  ;;  %6478 = vst [vmem:[#allocation50_spill] sm:$0xff] %v5465_v45  ;;  %v2091_v36 = vmul.f32 %v3972_v27, %v6473_v33  ;;  %v2090_v13 = vmul.f32 %v3971_v26, %v6473_v33  ;;  %v3965_v43 = vpop.permute.xlu1 %3964  ;;  %v5490_v52 = vpop.f32.mrb[12].mxu1 }
 0x122   : > { %6480 = vst [vmem:[#allocation23_spill] sm:$0xff] %v5482_v44  ;;  %v5485_v40 = vadd.f32 %v2087_v56, %v6481_v3  ;;  %v5488_v50 = vadd.f32 %v2086_v9, %v6483_v10  ;;  %v3967_v8 = vunpack.i.h.bf16 %v3965_v43  ;;  %v3966_v45 = vunpack.i.l.bf16 %v3965_v43  ;;  %v3980_v25 = vpop.permute.xlu0 %3979  ;;  %v5498_v61 = vpop.f32.mrb[13].mxu1 }
 0x123   : > { %v5493_v26 = vadd.f32 %v2090_v13, %v5135_v18  ;;  %v5496_v27 = vadd.f32 %v2091_v36, %v5138_v51  ;;  %v3982_v58 = vunpack.i.h.bf16 %v3980_v25  ;;  %v3981_v14 = vunpack.i.l.bf16 %v3980_v25 }
 0x124   : > { %6482 = vst [vmem:[#allocation24_spill] sm:$0xff] %v5485_v40  ;;  %6484 = vst [vmem:[#allocation54_spill] sm:$0xff] %v5488_v50  ;;  %v2089_v56 = vmul.f32 %v3967_v8, %v6473_v33  ;;  %v2088_v9 = vmul.f32 %v3966_v45, %v6473_v33  ;;  %v3548_v10 = vpop.f32.mrb[16].mxu0  ;;  %v5504_v40 = vpop.f32.mrb[14].mxu1  ;;  %v5510_v25 = vadd.f32 %v3544_v28, %v5274_v57 }
 0x125   : > { %6485 = vst [vmem:[#allocation55_spill] sm:$0xff] %v5493_v26  ;;  %6486 = vst [vmem:[#allocation3_spill] sm:$0xff] %v5496_v27  ;;  %v2095_v18 = vmul.f32 %v3982_v58, %v6473_v33  ;;  %v2094_v51 = vmul.f32 %v3981_v14, %v6473_v33  ;;  %v3975_v36 = vpop.permute.xlu1 %3974  ;;  %v654_v8 = vpop.f32.mrb[17].mxu0  ;;  %v5513_v3 = vadd.f32 %v5274_v57, %v638_v35 }
 0x126   : > { %v3977_v26 = vunpack.i.h.bf16 %v3975_v36  ;;  %v3976_v45 = vunpack.i.l.bf16 %v3975_v36  ;;  %v3990_v27 = vpop.permute.xlu0 %3989  ;;  %v5516_v43 = vadd.f32 %v3545_v12, %v5274_v57  ;;  %v5518_v37 = vpop.f32.mrb[18].mxu0  ;;  %v5531_v35 = vadd.f32 %v2088_v9, %v5126_v0 }
 0x127   : > { %6487 = vst [vmem:[#allocation56_spill] sm:$0xff] %v5513_v3  ;;  %v5521_v58 = vadd.f32 %v2094_v51, %v5149_v1  ;;  %v5524_v14 = vadd.f32 %v2095_v18, %v5155_v42  ;;  %v3992_v28 = vunpack.i.h.bf16 %v3990_v27  ;;  %v3991_v13 = vunpack.i.l.bf16 %v3990_v27  ;;  %v5526_v44 = vpop.f32.mrb[19].mxu0  ;;  %v5528_v36 = vpop.f32.mrb[15].mxu1 }
 0x128   : > { %6490 = vst [vmem:[#allocation59_spill] sm:$0xff] %v5528_v36  ;;  %v5534_v12 = vadd.f32 %v2089_v56, %v6491_v31  ;;  %v2093_v50 = vmul.f32 %v3977_v26, %v6473_v33  ;;  %v2092_v1 = vmul.f32 %v3976_v45, %v6473_v33  ;;  %v5546_v26 = vpop.f32.mrb[16].mxu1 }
 0x129   : > { %6488 = vst [vmem:[#allocation57_spill] sm:$0xff] %v5521_v58  ;;  %6489 = vst [vmem:[#allocation58_spill] sm:$0xff] %v5524_v14  ;;  %v2099_v51 = vmul.f32 %v3992_v28, %v6473_v33  ;;  %v2098_v42 = vmul.f32 %v3991_v13, %v6473_v33  ;;  %v3985_v18 = vpop.permute.xlu1 %3984  ;;  %v5542_v58 = vadd.f32 %v5274_v57, %v641_v38  ;;  %v5554_v14 = vpop.f32.mrb[17].mxu1 }
 0x12a   : > { %v3987_v36 = vunpack.i.h.bf16 %v3985_v18  ;;  %v3986_v0 = vunpack.i.l.bf16 %v3985_v18  ;;  %v4000_v9 = vpop.permute.xlu0 %3999  ;;  %6492 = vst [vmem:[#allocation25_spill] sm:$0xff] %v5546_v26  ;;  %6495 = vst [vmem:[#allocation62_spill] sm:$0xff] %v5554_v14  ;;  %v5557_v38 = vadd.f32 %v2092_v1, %v5144_v63  ;;  %v5560_v18 = vadd.f32 %v2093_v50, %v5141_v59  ;;  %v5564_v26 = vpop.f32.mrb[18].mxu1 }
 0x12b   : > { %v5549_v45 = vadd.f32 %v2098_v42, %v5168_v5  ;;  %v5552_v13 = vadd.f32 %v2099_v51, %v5171_v2  ;;  %v4002_v28 = vunpack.i.h.bf16 %v4000_v9  ;;  %v4001_v27 = vunpack.i.l.bf16 %v4000_v9  ;;  %6496 = vst [vmem:[#allocation63_spill] sm:$0xff] %v5564_v26 }
 0x12c   : > { %v2097_v31 = vmul.f32 %v3987_v36, %v6473_v33  ;;  %v2096_v56 = vmul.f32 %v3986_v0, %v6473_v33  ;;  %v5571_v63 = vadd.f32 %v5366_v11, %v5274_v57  ;;  %v5576_v0 = vadd.f32 %v3548_v10, %v5274_v57 }
 0x12d   : > { %6493 = vst [vmem:[#allocation60_spill] sm:$0xff] %v5549_v45  ;;  %6494 = vst [vmem:[#allocation61_spill] sm:$0xff] %v5552_v13  ;;  %v2103_v5 = vmul.f32 %v4002_v28, %v6473_v33  ;;  %v2102_v2 = vmul.f32 %v4001_v27, %v6473_v33  ;;  %v3995_v51 = vpop.permute.xlu1 %3994  ;;  %v5573_v1 = vpop.f32.mrb[20].mxu0  ;;  %v5579_v9 = vadd.f32 %v5274_v57, %v654_v8  ;;  %v6501_v45 = vld [vmem:[#allocation27_spill] sm:$0xff]  ;;  %v6502_v13 = vld [vmem:[#allocation26_spill] sm:$0xff] }
 0x12e   : > { %6497 = vst [vmem:[#allocation64_spill] sm:$0xff] %v5571_v63  ;;  %v3997_v59 = vunpack.i.h.bf16 %v3995_v51  ;;  %v3996_v50 = vunpack.i.l.bf16 %v3995_v51  ;;  %v4010_v36 = vpop.permute.xlu0 %4009  ;;  %v5581_v28 = vpop.f32.mrb[21].mxu0  ;;  %v5594_v10 = vadd.f32 %v2096_v56, %v6501_v45  ;;  %v5597_v8 = vadd.f32 %v2097_v31, %v6502_v13 }
 0x12f   : > { %v5584_v27 = vadd.f32 %v2102_v2, %v5182_v23  ;;  %v5587_v42 = vadd.f32 %v2103_v5, %v5186_v16  ;;  %v4012_v11 = vunpack.i.h.bf16 %v4010_v36  ;;  %v4011_v26 = vunpack.i.l.bf16 %v4010_v36  ;;  %v5589_v14 = vpop.f32.mrb[22].mxu0  ;;  %v5591_v51 = vpop.f32.mrb[19].mxu1 }
 0x130   : > { %6500 = vst [vmem:[#allocation67_spill] sm:$0xff] %v5591_v51  ;;  %v2101_v3 = vmul.f32 %v3997_v59, %v6473_v33  ;;  %v2100_v23 = vmul.f32 %v3996_v50, %v6473_v33  ;;  %v5601_v2 = vpop.f32.mrb[23].mxu0  ;;  %v5608_v56 = vadd.f32 %v5274_v57, %v5379_v39  ;;  %v5612_v51 = vpop.f32.mrb[20].mxu1 }
 0x131   : > { %6498 = vst [vmem:[#allocation65_spill] sm:$0xff] %v5584_v27  ;;  %6499 = vst [vmem:[#allocation66_spill] sm:$0xff] %v5587_v42  ;;  %v2107_v16 = vmul.f32 %v4012_v11, %v6473_v33  ;;  %v2106_v5 = vmul.f32 %v4011_v26, %v6473_v33  ;;  %v4005_v36 = vpop.permute.xlu1 %4004  ;;  %v5620_v42 = vpop.f32.mrb[21].mxu1 }
 0x132   : > { %6503 = vst [vmem:[#allocation27_spill] sm:$0xff] %v5608_v56  ;;  %v4007_v45 = vunpack.i.h.bf16 %v4005_v36  ;;  %v4006_v31 = vunpack.i.l.bf16 %v4005_v36  ;;  %v4020_v13 = vpop.permute.xlu0 %4019  ;;  %6504 = vst [vmem:[#allocation26_spill] sm:$0xff] %v5612_v51  ;;  %v5623_v39 = vadd.f32 %v2100_v23, %v5177_v7  ;;  %v5626_v36 = vadd.f32 %v2101_v3, %v5174_v48  ;;  %v5630_v51 = vpop.f32.mrb[22].mxu1  ;;  %v6513_v56 = vld [vmem:[#allocation2_spill] sm:$0xff] }
 0x133   : > { %v5615_v11 = vadd.f32 %v2106_v5, %v5207_v21  ;;  %v5618_v26 = vadd.f32 %v2107_v16, %v5210_v55  ;;  %v4022_v27 = vunpack.i.h.bf16 %v4020_v13  ;;  %v4021_v63 = vunpack.i.l.bf16 %v4020_v13  ;;  %6507 = vst [vmem:[#allocation70_spill] sm:$0xff] %v5620_v42  ;;  %6508 = vst [vmem:[#allocation71_spill] sm:$0xff] %v5630_v51  ;;  %v5659_v51 = vpop.f32.mrb[23].mxu1 }
 0x134   : > { %v2105_v50 = vmul.f32 %v4007_v45, %v6473_v33  ;;  %v2104_v59 = vmul.f32 %v4006_v31, %v6473_v33  ;;  %v5637_v7 = vadd.f32 %v5518_v37, %v5274_v57  ;;  %v5643_v31 = vadd.f32 %v5386_v54, %v5274_v57  ;;  %6512 = vst [vmem:[#allocation75_spill] sm:$0xff] %v5659_v51 }
 0x135   : > { %6505 = vst [vmem:[#allocation68_spill] sm:$0xff] %v5615_v11  ;;  %6506 = vst [vmem:[#allocation69_spill] sm:$0xff] %v5618_v26  ;;  %v2111_v21 = vmul.f32 %v4022_v27, %v6473_v33  ;;  %v2110_v55 = vmul.f32 %v4021_v63, %v6473_v33  ;;  %v4015_v16 = vpop.permute.xlu1 %4014  ;;  %v5639_v23 = vpop.f32.mrb[24].mxu0  ;;  %v5647_v27 = vadd.f32 %v5274_v57, %v5526_v44 }
 0x136   : > { %v4017_v48 = vunpack.i.h.bf16 %v4015_v16  ;;  %v4016_v3 = vunpack.i.l.bf16 %v4015_v16  ;;  %v4030_v45 = vpop.permute.xlu0 %4029  ;;  %6509 = vst [vmem:[#allocation72_spill] sm:$0xff] %v5643_v31  ;;  %v5649_v63 = vpop.f32.mrb[25].mxu0  ;;  %v5662_v54 = vadd.f32 %v2104_v59, %v5196_v47  ;;  %v5665_v44 = vadd.f32 %v2105_v50, %v6513_v56 }
 0x137   : > { %v5652_v13 = vadd.f32 %v2110_v55, %v5223_v22  ;;  %v5655_v37 = vadd.f32 %v2111_v21, %v5226_v34  ;;  %v4032_v5 = vunpack.i.h.bf16 %v4030_v45  ;;  %v4031_v42 = vunpack.i.l.bf16 %v4030_v45  ;;  %v5657_v16 = vpop.f32.mrb[26].mxu0  ;;  %v5680_v51 = vpop.f32.mrb[24].mxu1 }
 0x138   : > { %v2109_v11 = vmul.f32 %v4017_v48, %v6473_v33  ;;  %v2108_v22 = vmul.f32 %v4016_v3, %v6473_v33  ;;  %v5669_v55 = vpop.f32.mrb[27].mxu0  ;;  %v5676_v47 = vadd.f32 %v5274_v57, %v5400_v62  ;;  %6515 = vst [vmem:[#allocation76_spill] sm:$0xff] %v5680_v51  ;;  %v5688_v26 = vpop.f32.mrb[25].mxu1 }
 0x139   : > { %6510 = vst [vmem:[#allocation73_spill] sm:$0xff] %v5652_v13  ;;  %6511 = vst [vmem:[#allocation74_spill] sm:$0xff] %v5655_v37  ;;  %v2115_v34 = vmul.f32 %v4032_v5, %v6473_v33  ;;  %v2114_v21 = vmul.f32 %v4031_v42, %v6473_v33  ;;  %v4025_v45 = vpop.permute.xlu1 %4024  ;;  %v5698_v51 = vpop.f32.mrb[26].mxu1 }
 0x13a   : > { %6514 = vst [vmem:[#allocation2_spill] sm:$0xff] %v5676_v47  ;;  %v4027_v59 = vunpack.i.h.bf16 %v4025_v45  ;;  %v4026_v56 = vunpack.i.l.bf16 %v4025_v45  ;;  %v4040_v50 = vpop.permute.xlu0 %4039  ;;  %6518 = vst [vmem:[#allocation79_spill] sm:$0xff] %v5688_v26  ;;  %v5691_v62 = vadd.f32 %v2108_v22, %v5216_v60  ;;  %v5694_v45 = vadd.f32 %v2109_v11, %v5213_v41 }
 0x13b   : > { %v5683_v5 = vadd.f32 %v2114_v21, %v5236_v30  ;;  %v5686_v42 = vadd.f32 %v2115_v34, %v5239_v4  ;;  %v4042_v37 = vunpack.i.h.bf16 %v4040_v50  ;;  %v4041_v13 = vunpack.i.l.bf16 %v4040_v50  ;;  %6519 = vst [vmem:[#allocation80_spill] sm:$0xff] %v5698_v51 }
 0x13c   : > { %v2113_v48 = vmul.f32 %v4027_v59, %v6473_v33  ;;  %v2112_v3 = vmul.f32 %v4026_v56, %v6473_v33  ;;  %v5705_v60 = vadd.f32 %v5573_v1, %v5274_v57 }
 0x13d   : > { %6516 = vst [vmem:[#allocation77_spill] sm:$0xff] %v5683_v5  ;;  %6517 = vst [vmem:[#allocation78_spill] sm:$0xff] %v5686_v42  ;;  %v2119_v30 = vmul.f32 %v4042_v37, %v6473_v33  ;;  %v2118_v4 = vmul.f32 %v4041_v13, %v6473_v33  ;;  %v4035_v34 = vpop.permute.xlu1 %4034  ;;  %v5707_v22 = vpop.f32.mrb[28].mxu0  ;;  %v6529_v5 = vld [vmem:[#allocation29_spill] sm:$0xff] }
 0x13e   : > { %v5710_v41 = vadd.f32 %v2112_v3, %v5232_v29  ;;  %v5713_v11 = vadd.f32 %v2113_v48, %v5229_v19  ;;  %v4037_v59 = vunpack.i.h.bf16 %v4035_v34  ;;  %v4036_v56 = vunpack.i.l.bf16 %v4035_v34  ;;  %v4050_v37 = vpop.permute.xlu0 %4049  ;;  %v5715_v50 = vpop.f32.mrb[29].mxu0 }
 0x13f   : > { %v5718_v13 = vadd.f32 %v2118_v4, %v5250_v24  ;;  %v5721_v21 = vadd.f32 %v2119_v30, %v5260_v32  ;;  %v4052_v1 = vunpack.i.h.bf16 %v4050_v37  ;;  %v4051_v51 = vunpack.i.l.bf16 %v4050_v37  ;;  %v5723_v26 = vpop.f32.mrb[30].mxu0  ;;  %v5725_v29 = vpop.f32.mrb[27].mxu1 }
 0x140   : > { %6522 = vst [vmem:[#allocation83_spill] sm:$0xff] %v5725_v29  ;;  %v2117_v19 = vmul.f32 %v4037_v59, %v6473_v33  ;;  %v2116_v48 = vmul.f32 %v4036_v56, %v6473_v33  ;;  %v5731_v3 = vadd.f32 %v5274_v57, %v5581_v28  ;;  %v5735_v24 = vadd.f32 %v5589_v14, %v5274_v57  ;;  %v5737_v32 = vpop.f32.mrb[31].mxu0  ;;  %v6525_v56 = vld [vmem:[#allocation5_spill] sm:$0xff] }
 0x141   : > { %6520 = vst [vmem:[#allocation81_spill] sm:$0xff] %v5718_v13  ;;  %6521 = vst [vmem:[#allocation82_spill] sm:$0xff] %v5721_v21  ;;  %v2123_v30 = vmul.f32 %v4052_v1, %v6473_v33  ;;  %v2122_v4 = vmul.f32 %v4051_v51, %v6473_v33  ;;  %v4045_v34 = vpop.permute.xlu1 %4044  ;;  %v5744_v59 = vadd.f32 %v5274_v57, %v5601_v2  ;;  %v5752_v13 = vpop.f32.mrb[28].mxu1  ;;  %v6527_v1 = vld [vmem:[#allocation4_spill] sm:$0xff] }
 0x142   : > { %6523 = vst [vmem:[#allocation84_spill] sm:$0xff] %v5737_v32  ;;  %v5747_v28 = vadd.f32 %v2116_v48, %v5247_v17  ;;  %v5750_v29 = vadd.f32 %v2117_v19, %v6525_v56  ;;  %v4047_v14 = vunpack.i.h.bf16 %v4045_v34  ;;  %v4046_v47 = vunpack.i.l.bf16 %v4045_v34  ;;  %v4060_v21 = vpop.permute.xlu0 %4059  ;;  %6526 = vst [vmem:[#allocation5_spill] sm:$0xff] %v5752_v13  ;;  %v5760_v31 = vpop.f32.mrb[29].mxu1  ;;  %v6537_v48 = vld [vmem:[#allocation28_spill] sm:$0xff] }
 0x143   : > { %v5755_v51 = vadd.f32 %v2122_v4, %v6527_v1  ;;  %v5758_v37 = vadd.f32 %v2123_v30, %v6529_v5  ;;  %v4062_v42 = vunpack.i.h.bf16 %v4060_v21  ;;  %v4061_v2 = vunpack.i.l.bf16 %v4060_v21  ;;  %6531 = vst [vmem:[#allocation86_spill] sm:$0xff] %v5760_v31  ;;  %v5766_v56 = vpop.f32.mrb[30].mxu1 }
 0x144   : > { %6524 = vst [vmem:[#allocation85_spill] sm:$0xff] %v5747_v28  ;;  %v2121_v17 = vmul.f32 %v4047_v14, %v6473_v33  ;;  %v2120_v19 = vmul.f32 %v4046_v47, %v6473_v33  ;;  %6532 = vst [vmem:[#allocation87_spill] sm:$0xff] %v5766_v56  ;;  %v5773_v21 = vadd.f32 %v5432_v53, %v5274_v57  ;;  %v5775_v14 = vpop.f32.mrb[31].mxu1  ;;  %v6535_v47 = vld [vmem:[#allocation7_spill] sm:$0xff] }
 0x145   : > { %6528 = vst [vmem:[#allocation4_spill] sm:$0xff] %v5755_v51  ;;  %6530 = vst [vmem:[#allocation29_spill] sm:$0xff] %v5758_v37  ;;  %v2127_v4 = vmul.f32 %v4062_v42, %v6473_v33  ;;  %v2126_v1 = vmul.f32 %v4061_v2, %v6473_v33  ;;  %v4055_v5 = vpop.permute.xlu1 %4054  ;;  %v6538_v37 = vld [vmem:[#allocation6_spill] sm:$0xff]  ;;  %v6540_v51 = vld [vmem:[#allocation9_spill] sm:$0xff] }
 0x146   : > { %6533 = vst [vmem:[#allocation88_spill] sm:$0xff] %v5773_v21  ;;  %6534 = vst [vmem:[#allocation89_spill] sm:$0xff] %v5775_v14  ;;  %v5778_v31 = vadd.f32 %v2120_v19, %v6535_v47  ;;  %v5781_v34 = vadd.f32 %v2121_v17, %v6537_v48  ;;  %v4057_v56 = vunpack.i.h.bf16 %v4055_v5  ;;  %v4056_v13 = vunpack.i.l.bf16 %v4055_v5  ;;  %v4070_v42 = vpop.permute.xlu0 %4069 }
 0x147   : > { %v5784_v2 = vadd.f32 %v2126_v1, %v6538_v37  ;;  %v5787_v30 = vadd.f32 %v2127_v4, %v6540_v51  ;;  %v4072_v32 = vunpack.i.h.bf16 %v4070_v42  ;;  %v4071_v53 = vunpack.i.l.bf16 %v4070_v42 }
 0x148   : > { %6536 = vst [vmem:[#allocation7_spill] sm:$0xff] %v5778_v31  ;;  %v2125_v28 = vmul.f32 %v4057_v56, %v6473_v33  ;;  %v2124_v14 = vmul.f32 %v4056_v13, %v6473_v33  ;;  %v5793_v19 = vadd.f32 %v5639_v23, %v5274_v57  ;;  %v5797_v17 = vadd.f32 %v5274_v57, %v5649_v63  ;;  %v6543_v13 = vld [vmem:[#allocation32_spill] sm:$0xff]  ;;  %v6544_v23 = vld [vmem:[#allocation34_spill] sm:$0xff] }
 0x149   : > { %6539 = vst [vmem:[#allocation28_spill] sm:$0xff] %v5784_v2  ;;  %6541 = vst [vmem:[#allocation6_spill] sm:$0xff] %v5787_v30  ;;  %v2131_v37 = vmul.f32 %v4072_v32, %v6473_v33  ;;  %v2130_v48 = vmul.f32 %v4071_v53, %v6473_v33  ;;  %v4065_v51 = vpop.permute.xlu1 %4064  ;;  %v5804_v56 = vadd.f32 %v5274_v57, %v5440_v46  ;;  %v6546_v30 = vld [vmem:[#allocation15_spill] sm:$0xff] }
 0x14a   : > { %v5807_v1 = vadd.f32 %v2124_v14, %v6543_v13  ;;  %v5810_v5 = vadd.f32 %v2125_v28, %v6544_v23  ;;  %v4067_v47 = vunpack.i.h.bf16 %v4065_v51  ;;  %v4066_v63 = vunpack.i.l.bf16 %v4065_v51  ;;  %v4080_v42 = vpop.permute.xlu0 %4079  ;;  %v6548_v53 = vld [vmem:[#allocation31_spill] sm:$0xff] }
 0x14b   : > { %6542 = vst [vmem:[#allocation9_spill] sm:$0xff] %v5804_v56  ;;  %v5813_v32 = vadd.f32 %v2130_v48, %v6546_v30  ;;  %v5816_v2 = vadd.f32 %v2131_v37, %v6548_v53  ;;  %v4082_v4 = vunpack.i.h.bf16 %v4080_v42  ;;  %v4081_v21 = vunpack.i.l.bf16 %v4080_v42  ;;  %v6550_v48 = vld [vmem:[#allocation13_spill] sm:$0xff] }
 0x14c   : > { %6545 = vst [vmem:[#allocation32_spill] sm:$0xff] %v5810_v5  ;;  %v2129_v46 = vmul.f32 %v4067_v47, %v6473_v33  ;;  %v2128_v31 = vmul.f32 %v4066_v63, %v6473_v33  ;;  %v5827_v37 = vadd.f32 %v5657_v16, %v5274_v57  ;;  %v6552_v47 = vld [vmem:[#allocation10_spill] sm:$0xff] }
 0x14d   : > { %6547 = vst [vmem:[#allocation34_spill] sm:$0xff] %v5813_v32  ;;  %6549 = vst [vmem:[#allocation15_spill] sm:$0xff] %v5816_v2  ;;  %v2135_v13 = vmul.f32 %v4082_v4, %v6473_v33  ;;  %v2134_v51 = vmul.f32 %v4081_v21, %v6473_v33  ;;  %v4075_v23 = vpop.permute.xlu1 %4074  ;;  %v6554_v2 = vld [vmem:[#allocation35_spill] sm:$0xff]  ;;  %v6556_v21 = vld [vmem:[#allocation16_spill] sm:$0xff] }
 0x14e   : > { %v5830_v42 = vadd.f32 %v2128_v31, %v6550_v48  ;;  %v5833_v63 = vadd.f32 %v2129_v46, %v6552_v47  ;;  %v4077_v53 = vunpack.i.h.bf16 %v4075_v23  ;;  %v4076_v14 = vunpack.i.l.bf16 %v4075_v23  ;;  %v4090_v28 = vpop.permute.xlu0 %4089 }
 0x14f   : > { %v5836_v4 = vadd.f32 %v2134_v51, %v6554_v2  ;;  %v5839_v32 = vadd.f32 %v2135_v13, %v6556_v21  ;;  %v4092_v30 = vunpack.i.h.bf16 %v4090_v28  ;;  %v4091_v56 = vunpack.i.l.bf16 %v4090_v28 }
 0x150   : > { %6551 = vst [vmem:[#allocation31_spill] sm:$0xff] %v5830_v42  ;;  %6553 = vst [vmem:[#allocation13_spill] sm:$0xff] %v5833_v63  ;;  %v2133_v16 = vmul.f32 %v4077_v53, %v6473_v33  ;;  %v2132_v5 = vmul.f32 %v4076_v14, %v6473_v33  ;;  %v5845_v31 = vadd.f32 %v5446_v6, %v5274_v57  ;;  %v6558_v14 = vld [vmem:[#allocation14_spill] sm:$0xff] }
 0x151   : > { %6555 = vst [vmem:[#allocation10_spill] sm:$0xff] %v5836_v4  ;;  %6557 = vst [vmem:[#allocation35_spill] sm:$0xff] %v5839_v32  ;;  %v5849_v46 = vadd.f32 %v5274_v57, %v5669_v55  ;;  %v2139_v2 = vmul.f32 %v4092_v30, %v6473_v33  ;;  %v2138_v51 = vmul.f32 %v4091_v56, %v6473_v33  ;;  %v4085_v13 = vpop.permute.xlu1 %4084  ;;  %v6560_v6 = vld [vmem:[#allocation30_spill] sm:$0xff]  ;;  %v6562_v32 = vld [vmem:[#allocation17_spill] sm:$0xff] }
 0x152   : > { %v5856_v28 = vadd.f32 %v5274_v57, %v5467_v15  ;;  %v5859_v48 = vadd.f32 %v2132_v5, %v6558_v14  ;;  %v5862_v47 = vadd.f32 %v2133_v16, %v6560_v6  ;;  %v4087_v53 = vunpack.i.h.bf16 %v4085_v13  ;;  %v4100_v21 = vpop.permute.xlu0 %4099  ;;  %v6564_v56 = vld [vmem:[#allocation20_spill] sm:$0xff] }
 0x153   : > { %v4086_v55 = vunpack.i.l.bf16 %v4085_v13  ;;  %v5865_v30 = vadd.f32 %v2138_v51, %v6562_v32  ;;  %v5868_v4 = vadd.f32 %v2139_v2, %v6564_v56  ;;  %v4102_v23 = vunpack.i.h.bf16 %v4100_v21  ;;  %v6566_v51 = vld [vmem:[#allocation40_spill] sm:$0xff] }
 0x154   : > { %6559 = vst [vmem:[#allocation16_spill] sm:$0xff] %v5859_v48  ;;  %6561 = vst [vmem:[#allocation14_spill] sm:$0xff] %v5862_v47  ;;  %v4101_v42 = vunpack.i.l.bf16 %v4100_v21  ;;  %v2137_v15 = vmul.f32 %v4087_v53, %v6473_v33  ;;  %v5878_v32 = vadd.f32 %v5707_v22, %v5274_v57  ;;  %v5882_v2 = vadd.f32 %v5274_v57, %v5715_v50 }
 0x155   : > { %6563 = vst [vmem:[#allocation30_spill] sm:$0xff] %v5865_v30  ;;  %6565 = vst [vmem:[#allocation17_spill] sm:$0xff] %v5868_v4  ;;  %v2136_v63 = vmul.f32 %v4086_v55, %v6473_v33  ;;  %v2143_v14 = vmul.f32 %v4102_v23, %v6473_v33  ;;  %v4095_v6 = vpop.permute.xlu1 %4094  ;;  %v6568_v55 = vld [vmem:[#allocation18_spill] sm:$0xff]  ;;  %v5899_v50 = vadd.f32 %v5723_v26, %v5274_v57  ;;  %v6575_v26 = vld [vmem:[#allocation43_spill] sm:$0xff] }
 0x156   : > { %v2142_v13 = vmul.f32 %v4101_v42, %v6473_v33  ;;  %v5888_v21 = vadd.f32 %v2137_v15, %v6568_v55  ;;  %v4097_v56 = vunpack.i.h.bf16 %v4095_v6  ;;  %v4096_v5 = vunpack.i.l.bf16 %v4095_v6  ;;  %v6570_v23 = vld [vmem:[#allocation22_spill] sm:$0xff]  ;;  %v6572_v42 = vld [vmem:[#allocation48_spill] sm:$0xff] }
 0x157   : > { %v5885_v53 = vadd.f32 %v2136_v63, %v6566_v51  ;;  %v5894_v30 = vadd.f32 %v2143_v14, %v6572_v42  ;;  %v5907_v14 = vadd.f32 %v5490_v52, %v5274_v57  ;;  %v5911_v42 = vadd.f32 %v5274_v57, %v5498_v61  ;;  %v6580_v52 = vld [vmem:[#allocation8_spill] sm:$0xff] }
 0x158   : > { %6569 = vst [vmem:[#allocation40_spill] sm:$0xff] %v5888_v21  ;;  %v5891_v16 = vadd.f32 %v2142_v13, %v6570_v23  ;;  %v2141_v63 = vmul.f32 %v4097_v56, %v6473_v33  ;;  %v2140_v15 = vmul.f32 %v4096_v5, %v6473_v33  ;;  %v6577_v56 = vld [vmem:[#allocation44_spill] sm:$0xff]  ;;  %v5924_v21 = vadd.f32 %v5504_v40, %v5274_v57 }
 0x159   : > { %6567 = vst [vmem:[#allocation20_spill] sm:$0xff] %v5885_v53  ;;  %6573 = vst [vmem:[#allocation22_spill] sm:$0xff] %v5894_v30  ;;  %v4111_v22 = vpop.permute.xlu0 %4110  ;;  %v6582_v57 = vld [vmem:[#allocation12_spill] sm:$0xff] }
 0x15a   : > { %6571 = vst [vmem:[#allocation18_spill] sm:$0xff] %v5891_v16  ;;  %v4113_v51 = vunpack.i.h.bf16 %v4111_v22  ;;  %v4112_v55 = vunpack.i.l.bf16 %v4111_v22  ;;  %v4105_v6 = vpop.permute.xlu1 %4104  ;;  %6574 = vst [vmem:[#allocation48_spill] sm:$0xff] %v5911_v42  ;;  %v5914_v4 = vadd.f32 %v2140_v15, %v6575_v26  ;;  %v5917_v5 = vadd.f32 %v2141_v63, %v6577_v56  ;;  %v6579_v22 = vld [vmem:[#allocation53_spill] sm:$0xff] }
 0x15b   : > { %v4107_v30 = vunpack.i.h.bf16 %v4105_v6  ;;  %v4106_v23 = vunpack.i.l.bf16 %v4105_v6  ;;  %v6583_v40 = vmax.f32 %v6582_v57, 0.0 }
 0x15c   : > { %6576 = vst [vmem:[#allocation43_spill] sm:$0xff] %v5914_v4  ;;  %6578 = vst [vmem:[#allocation44_spill] sm:$0xff] %v5917_v5  ;;  %v2471_v16 = vmul.f32 %v4113_v51, %v6579_v22  ;;  %v2470_v13 = vmul.f32 %v4112_v55, %v6579_v22  ;;  %v6581_v5 = vmax.f32 %v6580_v52, 0.0 }
 0x15d   : > { %v4127_v53 = vpop.permute.xlu0 %4126  ;;  %v2145_v56 = vmul.f32 %v4107_v30, %v6473_v33  ;;  %v2144_v51 = vmul.f32 %v4106_v23, %v6473_v33  ;;  %v6586_v33 = vld [vmem:[#allocation47_spill] sm:$0xff] }
 0x15e   : > { %v2534_v61 = vadd.f32 %v2470_v13, %v5470_v49  ;;  %v2535_v15 = vadd.f32 %v2471_v16, %v5473_v20  ;;  %v4129_v26 = vunpack.i.h.bf16 %v4127_v53  ;;  %v4128_v63 = vunpack.i.l.bf16 %v4127_v53  ;;  %v6584_v53 = vld [vmem:[#allocation45_spill] sm:$0xff] }
 0x15f   : > { %v4117_v16 = vpop.permute.xlu1 %4116  ;;  %v5939_v30 = vadd.f32 %v2144_v51, %v6584_v53  ;;  %v5942_v13 = vadd.f32 %v2145_v56, %v6586_v33  ;;  %v6593_v33 = vld [vmem:[#allocation50_spill] sm:$0xff] }
 0x160   : > { %v2598_v4 = vadd.f32 %v2534_v61, %v6581_v5  ;;  %v2599_v47 = vadd.f32 %v2535_v15, %v6583_v40  ;;  %v2477_v49 = vmul.f32 %v4129_v26, %v6579_v22  ;;  %v2476_v20 = vmul.f32 %v4128_v63, %v6579_v22 }
 0x161   : > { %6585 = vst [vmem:[#allocation53_spill] sm:$0xff] %v5939_v30  ;;  %6587 = vst [vmem:[#allocation8_spill] sm:$0xff] %v5942_v13  ;;  %v4119_v23 = vunpack.i.h.bf16 %v4117_v16  ;;  %v4118_v55 = vunpack.i.l.bf16 %v4117_v16  ;;  %v4137_v6 = vpop.permute.xlu0 %4136  ;;  %v6592_v16 = vld [vmem:[#allocation49_spill] sm:$0xff] }
 0x162   : > { %v2662_v42 = vmax.f32 %v2598_v4, 0.0  ;;  %v2663_v52 = vmax.f32 %v2599_v47, 0.0  ;;  %v2540_v5 = vadd.f32 %v2476_v20, %v5531_v35  ;;  %v2541_v61 = vadd.f32 %v2477_v49, %v5534_v12  ;;  %v6588_v4 = vld [vmem:[#allocation36_spill] sm:$0xff]  ;;  %v6590_v35 = vld [vmem:[#allocation37_spill] sm:$0xff] }
 0x163   : > { %v2473_v15 = vmul.f32 %v4119_v23, %v6579_v22  ;;  %v2472_v26 = vmul.f32 %v4118_v55, %v6579_v22  ;;  %v4139_v63 = vunpack.i.h.bf16 %v4137_v6  ;;  %v4138_v56 = vunpack.i.l.bf16 %v4137_v6  ;;  %v4122_v49 = vpop.permute.xlu1 %4121 }
 0x164   : > { %v3286_v51 = vpack.c.bf16 %v2663_v52, %v2662_v42  ;;  %v6589_v47 = vmax.f32 %v6588_v4, 0.0  ;;  %v6591_v40 = vmax.f32 %v6590_v35, 0.0  ;;  %v4124_v52 = vunpack.i.h.bf16 %v4122_v49  ;;  %v6594_v4 = vld [vmem:[#allocation33_spill] sm:$0xff]  ;;  %v6596_v35 = vld [vmem:[#allocation11_spill] sm:$0xff] }
 0x165   : > { %v2536_v53 = vadd.f32 %v2472_v26, %v6592_v16  ;;  %v2537_v30 = vadd.f32 %v2473_v15, %v6593_v33  ;;  %v2481_v23 = vmul.f32 %v4139_v63, %v6579_v22  ;;  %v2480_v55 = vmul.f32 %v4138_v56, %v6579_v22  ;;  %v4147_v13 = vpop.permute.xlu0 %4146 }
 0x166   : > { %v2604_v57 = vadd.f32 %v2540_v5, %v6589_v47  ;;  %v2605_v12 = vadd.f32 %v2541_v61, %v6591_v40  ;;  %3287 = vst [vmem:[%s5951_s27] sm:$0xff] %v3286_v51   ;;  %v4123_v5 = vunpack.i.l.bf16 %v4122_v49  ;;  %v6595_v61 = vmax.f32 %v6594_v4, 0.0  ;;  %v6598_v49 = vld [vmem:[#allocation42_spill] sm:$0xff] }
 0x167   : > { %v6597_v40 = vmax.f32 %v6596_v35, 0.0  ;;  %v2544_v26 = vadd.f32 %v2480_v55, %v5557_v38  ;;  %v2545_v15 = vadd.f32 %v2481_v23, %v5560_v18  ;;  %v2475_v56 = vmul.f32 %v4124_v52, %v6579_v22  ;;  %v6602_v38 = vld [vmem:[#allocation54_spill] sm:$0xff]  ;;  %v6603_v23 = vld [vmem:[#allocation24_spill] sm:$0xff] }
 0x168   : > { %v2668_v42 = vmax.f32 %v2604_v57, 0.0  ;;  %v2669_v6 = vmax.f32 %v2605_v12, 0.0  ;;  %v2600_v47 = vadd.f32 %v2536_v53, %v6595_v61  ;;  %v2474_v51 = vmul.f32 %v4123_v5, %v6579_v22  ;;  %v4132_v12 = vpop.permute.xlu1 %4131  ;;  %v6600_v53 = vld [vmem:[#allocation21_spill] sm:$0xff] }
 0x169   : > { %v2601_v20 = vadd.f32 %v2537_v30, %v6597_v40  ;;  %v4149_v57 = vunpack.i.h.bf16 %v4147_v13  ;;  %v6599_v48 = vmax.f32 %v6598_v49, 0.0  ;;  %v6601_v61 = vmax.f32 %v6600_v53, 0.0  ;;  %v4157_v30 = vpop.permute.xlu0 %4156  ;;  %v6604_v40 = vld [vmem:[#allocation39_spill] sm:$0xff] }
 0x16a   : > { %v3301_v63 = vpack.c.bf16 %v2669_v6, %v2668_v42  ;;  %v2664_v16 = vmax.f32 %v2600_v47, 0.0  ;;  %v2538_v18 = vadd.f32 %v2474_v51, %v6602_v38  ;;  %v2539_v55 = vadd.f32 %v2475_v56, %v6603_v23 }
 0x16b   : > { %v2665_v33 = vmax.f32 %v2601_v20, 0.0  ;;  %v2608_v4 = vadd.f32 %v2544_v26, %v6599_v48  ;;  %v2609_v35 = vadd.f32 %v2545_v15, %v6601_v61  ;;  %v2485_v42 = vmul.f32 %v4149_v57, %v6579_v22  ;;  %v6606_v26 = vld [vmem:[#allocation38_spill] sm:$0xff] }
 0x16c   : > { %3445 = vst [vmem:[%s5951_s27 + $0x18] sm:$0xff] %v3301_v63   ;;  %v4148_v6 = vunpack.i.l.bf16 %v4147_v13  ;;  %v4134_v20 = vunpack.i.h.bf16 %v4132_v12  ;;  %v6605_v49 = vmax.f32 %v6604_v40, 0.0  ;;  %v6607_v15 = vmax.f32 %v6606_v26, 0.0  ;;  %v4142_v61 = vpop.permute.xlu1 %4141 }
 0x16d   : > { %v3291_v52 = vpack.c.bf16 %v2665_v33, %v2664_v16  ;;  %v2672_v5 = vmax.f32 %v2608_v4, 0.0  ;;  %v2673_v47 = vmax.f32 %v2609_v35, 0.0  ;;  %v2549_v51 = vadd.f32 %v2485_v42, %v5597_v8  ;;  %v4167_v33 = vpop.permute.xlu0 %4166  ;;  %v6609_v8 = vld [vmem:[#allocation3_spill] sm:$0xff] }
 0x16e   : > { %v2602_v48 = vadd.f32 %v2538_v18, %v6605_v49  ;;  %v2603_v53 = vadd.f32 %v2539_v55, %v6607_v15  ;;  %v2484_v63 = vmul.f32 %v4148_v6, %v6579_v22  ;;  %v2479_v13 = vmul.f32 %v4134_v20, %v6579_v22  ;;  %v6611_v49 = vld [vmem:[#allocation55_spill] sm:$0xff] }
 0x16f   : > { %3443 = vst [vmem:[%s5951_s27 + $0x8] sm:$0xff] %v3291_v52   ;;  %v3311_v56 = vpack.c.bf16 %v2673_v47, %v2672_v5  ;;  %v4133_v57 = vunpack.i.l.bf16 %v4132_v12  ;;  %v4159_v16 = vunpack.i.h.bf16 %v4157_v30  ;;  %v6608_v18 = vmax.f32 %v5516_v43, 0.0 }
 0x170   : > { %v2666_v4 = vmax.f32 %v2602_v48, 0.0  ;;  %v2667_v35 = vmax.f32 %v2603_v53, 0.0  ;;  %v2548_v38 = vadd.f32 %v2484_v63, %v5594_v10  ;;  %v2543_v42 = vadd.f32 %v2479_v13, %v6609_v8  ;;  %v6612_v48 = vld [vmem:[#allocation51_spill] sm:$0xff]  ;;  %v4152_v63 = vpop.permute.xlu1 %4151  ;;  %v6617_v8 = vld [vmem:[#allocation58_spill] sm:$0xff] }
 0x171   : > { %v2613_v23 = vadd.f32 %v2549_v51, %v6608_v18  ;;  %3447 = vst [vmem:[%s5951_s27 + $0x28] sm:$0xff] %v3311_v56   ;;  %v2478_v55 = vmul.f32 %v4133_v57, %v6579_v22  ;;  %v2489_v6 = vmul.f32 %v4159_v16, %v6579_v22  ;;  %v4158_v52 = vunpack.i.l.bf16 %v4157_v30  ;;  %v6614_v13 = vld [vmem:[#allocation19_spill] sm:$0xff] }
 0x172   : > { %v3296_v5 = vpack.c.bf16 %v2667_v35, %v2666_v4  ;;  %v6610_v12 = vmax.f32 %v5510_v25, 0.0  ;;  %v4144_v40 = vunpack.i.h.bf16 %v4142_v61  ;;  %v6613_v43 = vmax.f32 %v6612_v48, 0.0 }
 0x173   : > { %v2677_v20 = vmax.f32 %v2613_v23, 0.0  ;;  %v2542_v10 = vadd.f32 %v2478_v55, %v6611_v49  ;;  %v2488_v15 = vmul.f32 %v4158_v52, %v6579_v22  ;;  %v2553_v53 = vadd.f32 %v2489_v6, %v5626_v36  ;;  %v4177_v23 = vpop.permute.xlu0 %4176 }
 0x174   : > { %v2612_v47 = vadd.f32 %v2548_v38, %v6610_v12  ;;  %v2607_v26 = vadd.f32 %v2543_v42, %v6613_v43  ;;  %3444 = vst [vmem:[%s5951_s27 + $0x10] sm:$0xff] %v3296_v5   ;;  %v2483_v30 = vmul.f32 %v4144_v40, %v6579_v22  ;;  %v4143_v56 = vunpack.i.l.bf16 %v4142_v61 }
 0x175   : > { %v4169_v25 = vunpack.i.h.bf16 %v4167_v33  ;;  %v6615_v57 = vmax.f32 %v6614_v13, 0.0  ;;  %v2552_v35 = vadd.f32 %v2488_v15, %v5623_v39  ;;  %v6616_v38 = vmax.f32 %v5637_v7, 0.0  ;;  %v6619_v39 = vld [vmem:[#allocation57_spill] sm:$0xff] }
 0x176   : > { %v2676_v51 = vmax.f32 %v2612_v47, 0.0  ;;  %v2671_v4 = vmax.f32 %v2607_v26, 0.0  ;;  %v2482_v36 = vmul.f32 %v4143_v56, %v6579_v22  ;;  %v2547_v42 = vadd.f32 %v2483_v30, %v6617_v8  ;;  %v6626_v8 = vld [vmem:[#allocation60_spill] sm:$0xff] }
 0x177   : > { %v2606_v16 = vadd.f32 %v2542_v10, %v6615_v57  ;;  %v2617_v18 = vadd.f32 %v2553_v53, %v6616_v38  ;;  %v2493_v6 = vmul.f32 %v4169_v25, %v6579_v22  ;;  %v6618_v61 = vmax.f32 %v5576_v0, 0.0  ;;  %v4162_v0 = vpop.permute.xlu1 %4161  ;;  %v6621_v53 = vld [vmem:[#allocation56_spill] sm:$0xff]  ;;  %v6624_v38 = vld [vmem:[#allocation61_spill] sm:$0xff] }
 0x178   : > { %v3321_v55 = vpack.c.bf16 %v2677_v20, %v2676_v51  ;;  %v4168_v47 = vunpack.i.l.bf16 %v4167_v33  ;;  %v2546_v40 = vadd.f32 %v2482_v36, %v6619_v39  ;;  %v6620_v7 = vmax.f32 %v5542_v58, 0.0 }
 0x179   : > { %v2670_v52 = vmax.f32 %v2606_v16, 0.0  ;;  %v2616_v5 = vadd.f32 %v2552_v35, %v6618_v61  ;;  %v2681_v12 = vmax.f32 %v2617_v18, 0.0  ;;  %v2557_v20 = vadd.f32 %v2493_v6, %v5665_v44 }
 0x17a   : > { %3449 = vst [vmem:[%s5951_s27 + $0x38] sm:$0xff] %v3321_v55   ;;  %v2611_v49 = vadd.f32 %v2547_v42, %v6620_v7  ;;  %v4154_v10 = vunpack.i.h.bf16 %v4152_v63  ;;  %v2492_v26 = vmul.f32 %v4168_v47, %v6579_v22  ;;  %v4153_v15 = vunpack.i.l.bf16 %v4152_v63 }
 0x17b   : > { %v3306_v48 = vpack.c.bf16 %v2671_v4, %v2670_v52  ;;  %v2680_v43 = vmax.f32 %v2616_v5, 0.0  ;;  %v6622_v51 = vmax.f32 %v6621_v53, 0.0  ;;  %v6623_v56 = vmax.f32 %v5735_v24, 0.0  ;;  %v4187_v4 = vpop.permute.xlu0 %4186 }
 0x17c   : > { %v2675_v33 = vmax.f32 %v2611_v49, 0.0  ;;  %v2487_v58 = vmul.f32 %v4154_v10, %v6579_v22  ;;  %v2556_v44 = vadd.f32 %v2492_v26, %v5662_v54  ;;  %v2486_v57 = vmul.f32 %v4153_v15, %v6579_v22  ;;  %v4172_v49 = vpop.permute.xlu1 %4171 }
 0x17d   : > { %v2610_v30 = vadd.f32 %v2546_v40, %v6622_v51  ;;  %v2621_v25 = vadd.f32 %v2557_v20, %v6623_v56  ;;  %3446 = vst [vmem:[%s5951_s27 + $0x20] sm:$0xff] %v3306_v48   ;;  %v3331_v13 = vpack.c.bf16 %v2681_v12, %v2680_v43  ;;  %v4179_v16 = vunpack.i.h.bf16 %v4177_v23 }
 0x17e   : > { %v2551_v18 = vadd.f32 %v2487_v58, %v6624_v38  ;;  %v4178_v55 = vunpack.i.l.bf16 %v4177_v23  ;;  %v6625_v24 = vmax.f32 %v5705_v60, 0.0  ;;  %v2550_v42 = vadd.f32 %v2486_v57, %v6626_v8 }
 0x17f   : > { %v2674_v63 = vmax.f32 %v2610_v30, 0.0  ;;  %v2685_v35 = vmax.f32 %v2621_v25, 0.0  ;;  %3451 = vst [vmem:[%s5951_s27 + $0x48] sm:$0xff] %v3331_v13   ;;  %v2497_v6 = vmul.f32 %v4179_v16, %v6579_v22  ;;  %v4164_v52 = vunpack.i.h.bf16 %v4162_v0 }
 0x180   : > { %v2620_v36 = vadd.f32 %v2556_v44, %v6625_v24  ;;  %v6627_v61 = vmax.f32 %v5647_v27, 0.0  ;;  %v2496_v12 = vmul.f32 %v4178_v55, %v6579_v22  ;;  %v4163_v47 = vunpack.i.l.bf16 %v4162_v0 }
 0x181   : > { %v3316_v54 = vpack.c.bf16 %v2675_v33, %v2674_v63  ;;  %v6628_v40 = vmax.f32 %v5579_v9, 0.0  ;;  %v2561_v7 = vadd.f32 %v2497_v6, %v5694_v45  ;;  %v2491_v60 = vmul.f32 %v4164_v52, %v6579_v22  ;;  %v6630_v9 = vld [vmem:[#allocation66_spill] sm:$0xff]  ;;  %v4197_v45 = vpop.permute.xlu0 %4196  ;;  %v6632_v33 = vld [vmem:[#allocation65_spill] sm:$0xff] }
 0x182   : > { %v2615_v5 = vadd.f32 %v2551_v18, %v6627_v61  ;;  %v2684_v39 = vmax.f32 %v2620_v36, 0.0  ;;  %v2560_v10 = vadd.f32 %v2496_v12, %v5691_v62  ;;  %v2490_v27 = vmul.f32 %v4163_v47, %v6579_v22  ;;  %v4182_v36 = vpop.permute.xlu1 %4181 }
 0x183   : > { %v2614_v23 = vadd.f32 %v2550_v42, %v6628_v40  ;;  %3448 = vst [vmem:[%s5951_s27 + $0x30] sm:$0xff] %v3316_v54   ;;  %v4189_v48 = vunpack.i.h.bf16 %v4187_v4  ;;  %v6629_v15 = vmax.f32 %v5827_v37, 0.0  ;;  %v2555_v53 = vadd.f32 %v2491_v60, %v6630_v9  ;;  %v6636_v54 = vld [vmem:[#allocation69_spill] sm:$0xff] }
 0x184   : > { %v2679_v20 = vmax.f32 %v2615_v5, 0.0  ;;  %v3341_v43 = vpack.c.bf16 %v2685_v35, %v2684_v39  ;;  %v6631_v51 = vmax.f32 %v5793_v19, 0.0  ;;  %v2554_v56 = vadd.f32 %v2490_v27, %v6632_v33  ;;  %v6641_v9 = vld [vmem:[#allocation85_spill] sm:$0xff] }
 0x185   : > { %v2678_v26 = vmax.f32 %v2614_v23, 0.0  ;;  %v2625_v0 = vadd.f32 %v2561_v7, %v6629_v15  ;;  %v2501_v25 = vmul.f32 %v4189_v48, %v6579_v22  ;;  %v4188_v62 = vunpack.i.l.bf16 %v4187_v4  ;;  %v4207_v12 = vpop.permute.xlu0 %4206 }
 0x186   : > { %v2624_v30 = vadd.f32 %v2560_v10, %v6631_v51  ;;  %3453 = vst [vmem:[%s5951_s27 + $0x58] sm:$0xff] %v3341_v43   ;;  %v6633_v44 = vmax.f32 %v5744_v59, 0.0  ;;  %v4174_v37 = vunpack.i.h.bf16 %v4172_v49  ;;  %v6634_v63 = vmax.f32 %v5731_v3, 0.0 }
 0x187   : > { %v3326_v58 = vpack.c.bf16 %v2679_v20, %v2678_v26  ;;  %v2689_v13 = vmax.f32 %v2625_v0, 0.0  ;;  %v2500_v38 = vmul.f32 %v4188_v62, %v6579_v22  ;;  %v2565_v19 = vadd.f32 %v2501_v25, %v5713_v11  ;;  %v6644_v62 = vld [vmem:[#allocation41_spill] sm:$0xff] }
 0x188   : > { %v2619_v57 = vadd.f32 %v2555_v53, %v6633_v44  ;;  %v2688_v16 = vmax.f32 %v2624_v30, 0.0  ;;  %v2618_v35 = vadd.f32 %v2554_v56, %v6634_v63  ;;  %v2495_v4 = vmul.f32 %v4174_v37, %v6579_v22  ;;  %v6647_v63 = vld [vmem:[#allocation73_spill] sm:$0xff] }
 0x189   : > { %3450 = vst [vmem:[%s5951_s27 + $0x40] sm:$0xff] %v3326_v58   ;;  %v4173_v55 = vunpack.i.l.bf16 %v4172_v49  ;;  %v4199_v24 = vunpack.i.h.bf16 %v4197_v45  ;;  %v2564_v42 = vadd.f32 %v2500_v38, %v5710_v41  ;;  %v6635_v6 = vmax.f32 %v5899_v50, 0.0  ;;  %v6638_v41 = vld [vmem:[#allocation68_spill] sm:$0xff] }
 0x18a   : > { %v2683_v18 = vmax.f32 %v2619_v57, 0.0  ;;  %v3351_v8 = vpack.c.bf16 %v2689_v13, %v2688_v16  ;;  %v2682_v59 = vmax.f32 %v2618_v35, 0.0  ;;  %v2559_v11 = vadd.f32 %v2495_v4, %v6636_v54  ;;  %v6646_v57 = vld [vmem:[#allocation84_spill] sm:$0xff]  ;;  %v4192_v16 = vpop.permute.xlu1 %4191 }
 0x18b   : > { %v2629_v3 = vadd.f32 %v2565_v19, %v6635_v6  ;;  %v2494_v52 = vmul.f32 %v4173_v55, %v6579_v22  ;;  %v2505_v61 = vmul.f32 %v4199_v24, %v6579_v22  ;;  %v4198_v5 = vunpack.i.l.bf16 %v4197_v45  ;;  %v6642_v45 = vld [vmem:[#allocation52_spill] sm:$0xff] }
 0x18c   : > { %3455 = vst [vmem:[%s5951_s27 + $0x68] sm:$0xff] %v3351_v8   ;;  %v3336_v47 = vpack.c.bf16 %v2683_v18, %v2682_v59  ;;  %v6637_v39 = vmax.f32 %v5878_v32, 0.0  ;;  %v4184_v7 = vunpack.i.h.bf16 %v4182_v36  ;;  %v6639_v50 = vmax.f32 %v5849_v46, 0.0  ;;  %v6648_v18 = vld [vmem:[#allocation74_spill] sm:$0xff] }
 0x18d   : > { %v2693_v23 = vmax.f32 %v2629_v3, 0.0  ;;  %v2558_v60 = vadd.f32 %v2494_v52, %v6638_v41  ;;  %v2504_v20 = vmul.f32 %v4198_v5, %v6579_v22  ;;  %v2569_v10 = vadd.f32 %v2505_v61, %v5750_v29  ;;  %v6651_v52 = vld [vmem:[#allocation7_spill] sm:$0xff] }
 0x18e   : > { %v2628_v40 = vadd.f32 %v2564_v42, %v6637_v39  ;;  %v2623_v49 = vadd.f32 %v2559_v11, %v6639_v50  ;;  %3452 = vst [vmem:[%s5951_s27 + $0x50] sm:$0xff] %v3336_v47   ;;  %v2499_v48 = vmul.f32 %v4184_v7, %v6579_v22  ;;  %v4183_v43 = vunpack.i.l.bf16 %v4182_v36  ;;  %v6649_v36 = vld [vmem:[#allocation59_spill] sm:$0xff]  ;;  %v4217_v42 = vpop.permute.xlu0 %4216  ;;  %v6652_v11 = vld [vmem:[#allocation72_spill] sm:$0xff]  ;;  %v6654_v39 = vld [vmem:[#allocation25_spill] sm:$0xff] }
 0x18f   : > { %v4209_v26 = vunpack.i.h.bf16 %v4207_v12  ;;  %v6640_v32 = vmax.f32 %v5797_v17, 0.0  ;;  %v2568_v53 = vadd.f32 %v2504_v20, %v6641_v9  ;;  %v6643_v46 = vmax.f32 %v6642_v45, 0.0  ;;  %v6089_v17 = vld [vmem:[%s6274_s3] ss:$0 sm:$0xff]  ;;  %v6655_v7 = vld [vmem:[#allocation64_spill] sm:$0xff] }
 0x190   : > { %v2692_v27 = vmax.f32 %v2628_v40, 0.0  ;;  %v2687_v0 = vmax.f32 %v2623_v49, 0.0  ;;  %v2498_v33 = vmul.f32 %v4183_v43, %v6579_v22  ;;  %v4208_v56 = vunpack.i.l.bf16 %v4207_v12  ;;  %v4202_v43 = vpop.permute.xlu1 %4201 }
 0x191   : > { %v2622_v15 = vadd.f32 %v2558_v60, %v6640_v32  ;;  %v2633_v51 = vadd.f32 %v2569_v10, %v6643_v46  ;;  %v2509_v29 = vmul.f32 %v4209_v26, %v6579_v22  ;;  %v6645_v58 = vmax.f32 %v6644_v62, 0.0  ;;  %v6657_v32 = vld [vmem:[#allocation78_spill] sm:$0xff] }
 0x192   : > { %v3361_v30 = vpack.c.bf16 %v2693_v23, %v2692_v27  ;;  %v706_v37 = vadd.f32 %v6089_v17, %v6646_v57  ;;  %v2562_v35 = vadd.f32 %v2498_v33, %v6647_v63  ;;  %v2508_v38 = vmul.f32 %v4208_v56, %v6579_v22  ;;  %v4227_v56 = vpop.permute.xlu0 %4226 }
 0x193   : > { %v2686_v25 = vmax.f32 %v2622_v15, 0.0  ;;  %v2632_v13 = vadd.f32 %v2568_v53, %v6645_v58  ;;  %v2697_v44 = vmax.f32 %v2633_v51, 0.0  ;;  %v2573_v19 = vadd.f32 %v2509_v29, %v5781_v34  ;;  %v6659_v53 = vld [vmem:[#allocation63_spill] sm:$0xff]  ;;  %v6660_v51 = vld [vmem:[#allocation77_spill] sm:$0xff] }
 0x194   : > { %3457 = vst [vmem:[%s5951_s27 + $0x78] sm:$0xff] %v3361_v30   ;;  %v2563_v4 = vadd.f32 %v2499_v48, %v6648_v18  ;;  %v6100_v8 = vadd.f32 %v6089_v17, %v6649_v36  ;;  %v874_v59 = vmax.f32 %v706_v37, 0.0  ;;  %v6650_v6 = vmax.f32 %v5882_v2, 0.0  ;;  %v6663_v37 = vld [vmem:[#allocation46_spill] sm:$0xff] }
 0x195   : > { %v3346_v55 = vpack.c.bf16 %v2687_v0, %v2686_v25  ;;  %v2696_v24 = vmax.f32 %v2632_v13, 0.0  ;;  %v2572_v54 = vadd.f32 %v2508_v38, %v6651_v52  ;;  %v6653_v61 = vmax.f32 %v6652_v11, 0.0  ;;  %v6658_v0 = vld [vmem:[#allocation62_spill] sm:$0xff]  ;;  %v6661_v13 = vld [vmem:[#allocation23_spill] sm:$0xff]  ;;  %v6665_v38 = vld [vmem:[#allocation32_spill] sm:$0xff] }
 0x196   : > { %v2626_v3 = vadd.f32 %v2562_v35, %v6650_v6  ;;  %v4194_v34 = vunpack.i.h.bf16 %v4192_v16  ;;  %v2627_v47 = vadd.f32 %v2563_v4, %v874_v59  ;;  %v6110_v40 = vadd.f32 %v6089_v17, %v6654_v39 }
 0x197   : > { %v2637_v5 = vadd.f32 %v2573_v19, %v6653_v61  ;;  %3454 = vst [vmem:[%s5951_s27 + $0x60] sm:$0xff] %v3346_v55   ;;  %v3371_v12 = vpack.c.bf16 %v2697_v44, %v2696_v24  ;;  %v4193_v23 = vunpack.i.l.bf16 %v4192_v16  ;;  %v6656_v41 = vmax.f32 %v6655_v7, 0.0  ;;  %v6669_v7 = vld [vmem:[#allocation67_spill] sm:$0xff] }
 0x198   : > { %v2690_v2 = vmax.f32 %v2626_v3, 0.0  ;;  %v2503_v49 = vmul.f32 %v4194_v34, %v6579_v22  ;;  %v2691_v20 = vmax.f32 %v2627_v47, 0.0  ;;  %v4219_v27 = vunpack.i.h.bf16 %v4217_v42 }
 0x199   : > { %v2636_v60 = vadd.f32 %v2572_v54, %v6656_v41  ;;  %v2701_v50 = vmax.f32 %v2637_v5, 0.0  ;;  %3459 = vst [vmem:[%s5951_s27 + $0x88] sm:$0xff] %v3371_v12   ;;  %v2502_v10 = vmul.f32 %v4193_v23, %v6579_v22  ;;  %v4218_v48 = vunpack.i.l.bf16 %v4217_v42  ;;  %v6666_v42 = vld [vmem:[#allocation88_spill] sm:$0xff] }
 0x19a   : > { %v2567_v15 = vadd.f32 %v2503_v49, %v6657_v32  ;;  %v6120_v9 = vadd.f32 %v6089_v17, %v6658_v0  ;;  %v6124_v45 = vadd.f32 %v6089_v17, %v6659_v53  ;;  %v3356_v46 = vpack.c.bf16 %v2691_v20, %v2690_v2  ;;  %v6672_v20 = vld [vmem:[#allocation13_spill] sm:$0xff]  ;;  %v6674_v0 = vld [vmem:[#allocation27_spill] sm:$0xff] }
 0x19b   : > { %v2700_v26 = vmax.f32 %v2636_v60, 0.0  ;;  %v2566_v30 = vadd.f32 %v2502_v10, %v6660_v51  ;;  %v2513_v33 = vmul.f32 %v4219_v27, %v6579_v22  ;;  %v2512_v29 = vmul.f32 %v4218_v48, %v6579_v22  ;;  %v4237_v27 = vpop.permute.xlu0 %4236 }
 0x19c   : > { %v890_v25 = vmax.f32 %v6100_v8, 0.0  ;;  %v895_v58 = vmax.f32 %v6110_v40, 0.0  ;;  %v6662_v44 = vmax.f32 %v6661_v13, 0.0  ;;  %3456 = vst [vmem:[%s5951_s27 + $0x70] sm:$0xff] %v3356_v46   ;;  %v6664_v16 = vmax.f32 %v6663_v37, 0.0  ;;  %v6676_v46 = vld [vmem:[#allocation2_spill] sm:$0xff] }
 0x19d   : > { %v3381_v62 = vpack.c.bf16 %v2701_v50, %v2700_v26  ;;  %v2576_v35 = vadd.f32 %v2512_v29, %v5807_v1  ;;  %v2577_v19 = vadd.f32 %v2513_v33, %v6665_v38  ;;  %v893_v18 = vmax.f32 %v6120_v9, 0.0  ;;  %v4212_v1 = vpop.permute.xlu1 %4211  ;;  %v6671_v50 = vld [vmem:[#allocation82_spill] sm:$0xff]  ;;  %v6678_v33 = vld [vmem:[#allocation31_spill] sm:$0xff] }
 0x19e   : > { %v2631_v57 = vadd.f32 %v2567_v15, %v6662_v44  ;;  %v2630_v63 = vadd.f32 %v2566_v30, %v6664_v16  ;;  %v4204_v55 = vunpack.i.h.bf16 %v4202_v43  ;;  %v4203_v24 = vunpack.i.l.bf16 %v4202_v43  ;;  %v6673_v43 = vld [vmem:[#allocation26_spill] sm:$0xff] }
 0x19f   : > { %3461 = vst [vmem:[%s5951_s27 + $0x98] sm:$0xff] %v3381_v62   ;;  %v4229_v36 = vunpack.i.h.bf16 %v4227_v56  ;;  %v6667_v6 = vmax.f32 %v6666_v42, 0.0  ;;  %v6668_v52 = vmax.f32 %v5845_v31, 0.0  ;;  %v896_v11 = vmax.f32 %v6124_v45, 0.0  ;;  %v6670_v31 = vld [vmem:[#allocation81_spill] sm:$0xff] }
 0x1a0   : > { %v2695_v4 = vmax.f32 %v2631_v57, 0.0  ;;  %v2694_v59 = vmax.f32 %v2630_v63, 0.0  ;;  %v2507_v61 = vmul.f32 %v4204_v55, %v6579_v22  ;;  %v2506_v5 = vmul.f32 %v4203_v24, %v6579_v22  ;;  %v6681_v55 = vld [vmem:[#allocation4_spill] sm:$0xff] }
 0x1a1   : > { %v2640_v3 = vadd.f32 %v2576_v35, %v6667_v6  ;;  %v2641_v54 = vadd.f32 %v2577_v19, %v6668_v52  ;;  %v2517_v34 = vmul.f32 %v4229_v36, %v6579_v22  ;;  %v4228_v12 = vunpack.i.l.bf16 %v4227_v56  ;;  %v4222_v16 = vpop.permute.xlu1 %4221  ;;  %v6682_v36 = vld [vmem:[#allocation29_spill] sm:$0xff] }
 0x1a2   : > { %v3366_v47 = vpack.c.bf16 %v2695_v4, %v2694_v59  ;;  %v6150_v41 = vadd.f32 %v6089_v17, %v6669_v7  ;;  %v2570_v60 = vadd.f32 %v2506_v5, %v6670_v31  ;;  %v2571_v2 = vadd.f32 %v2507_v61, %v6671_v50  ;;  %v6684_v61 = vld [vmem:[#allocation9_spill] sm:$0xff]  ;;  %v6688_v7 = vld [vmem:[#allocation14_spill] sm:$0xff] }
 0x1a3   : > { %v2704_v39 = vmax.f32 %v2640_v3, 0.0  ;;  %v2705_v23 = vmax.f32 %v2641_v54, 0.0  ;;  %v2516_v49 = vmul.f32 %v4228_v12, %v6579_v22  ;;  %v2581_v10 = vadd.f32 %v2517_v34, %v6672_v20  ;;  %v6683_v54 = vld [vmem:[#allocation71_spill] sm:$0xff]  ;;  %v6689_v50 = vld [vmem:[#allocation70_spill] sm:$0xff] }
 0x1a4   : > { %3458 = vst [vmem:[%s5951_s27 + $0x80] sm:$0xff] %v3366_v47   ;;  %v6159_v26 = vadd.f32 %v6089_v17, %v6673_v43  ;;  %v4214_v32 = vunpack.i.h.bf16 %v4212_v1  ;;  %v4213_v15 = vunpack.i.l.bf16 %v4212_v1  ;;  %v6675_v53 = vmax.f32 %v6674_v0, 0.0  ;;  %v6690_v43 = vld [vmem:[#allocation75_spill] sm:$0xff] }
 0x1a5   : > { %v3391_v48 = vpack.c.bf16 %v2705_v23, %v2704_v39  ;;  %v6677_v51 = vmax.f32 %v6676_v46, 0.0  ;;  %v2580_v29 = vadd.f32 %v2516_v49, %v6678_v33  ;;  %v6679_v56 = vmax.f32 %v5924_v21, 0.0  ;;  %v6687_v39 = vld [vmem:[#allocation16_spill] sm:$0xff] }
 0x1a6   : > { %v2634_v45 = vadd.f32 %v2570_v60, %v6675_v53  ;;  %v2511_v13 = vmul.f32 %v4214_v32, %v6579_v22  ;;  %v2510_v44 = vmul.f32 %v4213_v15, %v6579_v22  ;;  %v4239_v57 = vunpack.i.h.bf16 %v4237_v27 }
 0x1a7   : > { %v2635_v30 = vadd.f32 %v2571_v2, %v6677_v51  ;;  %v2645_v62 = vadd.f32 %v2581_v10, %v6679_v56  ;;  %3463 = vst [vmem:[%s5951_s27 + $0xa8] sm:$0xff] %v3391_v48   ;;  %v4238_v37 = vunpack.i.l.bf16 %v4237_v27  ;;  %v6680_v38 = vmax.f32 %v5907_v14, 0.0  ;;  %v4247_v14 = vpop.permute.xlu0 %4246  ;;  %v4232_v48 = vpop.permute.xlu1 %4231 }
 0x1a8   : > { %v2698_v63 = vmax.f32 %v2634_v45, 0.0  ;;  %v2574_v24 = vadd.f32 %v2510_v44, %v6681_v55  ;;  %v2575_v21 = vadd.f32 %v2511_v13, %v6682_v36  ;;  %v2521_v59 = vmul.f32 %v4239_v57, %v6579_v22  ;;  %v6692_v57 = vld [vmem:[#allocation28_spill] sm:$0xff] }
 0x1a9   : > { %v2699_v35 = vmax.f32 %v2635_v30, 0.0  ;;  %v2644_v19 = vadd.f32 %v2580_v29, %v6680_v38  ;;  %v2709_v4 = vmax.f32 %v2645_v62, 0.0  ;;  %v2520_v42 = vmul.f32 %v4238_v37, %v6579_v22 }
 0x1aa   : > { %v894_v6 = vmax.f32 %v6150_v41, 0.0  ;;  %v810_v1 = vadd.f32 %v6089_v17, %v6683_v54  ;;  %v6685_v5 = vmax.f32 %v6684_v61, 0.0  ;;  %v6686_v12 = vmax.f32 %v5856_v28, 0.0 }
 0x1ab   : > { %v3376_v3 = vpack.c.bf16 %v2699_v35, %v2698_v63  ;;  %v2708_v52 = vmax.f32 %v2644_v19, 0.0  ;;  %v2584_v23 = vadd.f32 %v2520_v42, %v6687_v39  ;;  %v2585_v31 = vadd.f32 %v2521_v59, %v6688_v7  ;;  %v4257_v29 = vpop.permute.xlu0 %4256  ;;  %v6694_v35 = vld [vmem:[#allocation40_spill] sm:$0xff]  ;;  %v4242_v59 = vpop.permute.xlu1 %4241 }
 0x1ac   : > { %v2638_v34 = vadd.f32 %v2574_v24, %v6685_v5  ;;  %v2639_v47 = vadd.f32 %v2575_v21, %v6686_v12  ;;  %v899_v41 = vmax.f32 %v6159_v26, 0.0  ;;  %v6190_v2 = vadd.f32 %v6089_v17, %v6689_v50  ;;  %v6696_v42 = vld [vmem:[#allocation48_spill] sm:$0xff]  ;;  %v6698_v5 = vld [vmem:[#allocation34_spill] sm:$0xff]  ;;  %v6699_v12 = vld [vmem:[#allocation15_spill] sm:$0xff] }
 0x1ad   : > { %3460 = vst [vmem:[%s5951_s27 + $0x90] sm:$0xff] %v3376_v3   ;;  %v3401_v60 = vpack.c.bf16 %v2709_v4, %v2708_v52  ;;  %v900_v49 = vmax.f32 %v810_v1, 0.0  ;;  %v2648_v27 = vadd.f32 %v2584_v23, %v895_v58  ;;  %v2649_v28 = vadd.f32 %v2585_v31, %v896_v11  ;;  %v6691_v11 = vld [vmem:[#allocation76_spill] sm:$0xff] }
 0x1ae   : > { %v2702_v20 = vmax.f32 %v2638_v34, 0.0  ;;  %v2703_v10 = vmax.f32 %v2639_v47, 0.0  ;;  %v6197_v32 = vadd.f32 %v6089_v17, %v6690_v43  ;;  %v4224_v15 = vunpack.i.h.bf16 %v4222_v16  ;;  %v6695_v4 = vld [vmem:[#allocation20_spill] sm:$0xff] }
 0x1af   : > { %3465 = vst [vmem:[%s5951_s27 + $0xb8] sm:$0xff] %v3401_v60   ;;  %v4223_v26 = vunpack.i.l.bf16 %v4222_v16  ;;  %v4249_v0 = vunpack.i.h.bf16 %v4247_v14  ;;  %v2712_v45 = vmax.f32 %v2648_v27, 0.0  ;;  %v2713_v46 = vmax.f32 %v2649_v28, 0.0  ;;  %v6693_v16 = vld [vmem:[#allocation6_spill] sm:$0xff]  ;;  %v6702_v28 = vld [vmem:[#allocation80_spill] sm:$0xff] }
 0x1b0   : > { %v3386_v53 = vpack.c.bf16 %v2703_v10, %v2702_v20  ;;  %v4248_v51 = vunpack.i.l.bf16 %v4247_v14  ;;  %v2515_v30 = vmul.f32 %v4224_v15, %v6579_v22  ;;  %v823_v33 = vadd.f32 %v6089_v17, %v6691_v11  ;;  %v6701_v10 = vld [vmem:[#allocation43_spill] sm:$0xff]  ;;  %v6703_v43 = vld [vmem:[#allocation44_spill] sm:$0xff] }
 0x1b1   : > { %v2514_v40 = vmul.f32 %v4223_v26, %v6579_v22  ;;  %v2525_v58 = vmul.f32 %v4249_v0, %v6579_v22  ;;  %v3411_v56 = vpack.c.bf16 %v2713_v46, %v2712_v45  ;;  %v4234_v13 = vunpack.i.h.bf16 %v4232_v48  ;;  %v4267_v26 = vpop.permute.xlu0 %4266 }
 0x1b2   : > { %3462 = vst [vmem:[%s5951_s27 + $0xa0] sm:$0xff] %v3386_v53   ;;  %v2524_v62 = vmul.f32 %v4248_v51, %v6579_v22  ;;  %v4233_v44 = vunpack.i.l.bf16 %v4232_v48  ;;  %v2579_v63 = vadd.f32 %v2515_v30, %v6693_v16  ;;  %v903_v19 = vmax.f32 %v823_v33, 0.0  ;;  %v6704_v30 = vld [vmem:[#allocation5_spill] sm:$0xff] }
 0x1b3   : > { %v2578_v37 = vadd.f32 %v2514_v40, %v6692_v57  ;;  %v2589_v38 = vadd.f32 %v2525_v58, %v6694_v35  ;;  %3467 = vst [vmem:[%s5951_s27 + $0xc8] sm:$0xff] %v3411_v56   ;;  %v2519_v24 = vmul.f32 %v4234_v13, %v6579_v22  ;;  %v4259_v21 = vunpack.i.h.bf16 %v4257_v29  ;;  %v6705_v13 = vld [vmem:[#allocation83_spill] sm:$0xff] }
 0x1b4   : > { %v2588_v55 = vadd.f32 %v2524_v62, %v6695_v4  ;;  %v2518_v36 = vmul.f32 %v4233_v44, %v6579_v22  ;;  %v6697_v3 = vmax.f32 %v6696_v42, 0.0  ;;  %v2643_v54 = vadd.f32 %v2579_v63, %v890_v25  ;;  %v6709_v42 = vld [vmem:[#allocation8_spill] sm:$0xff] }
 0x1b5   : > { %v2653_v1 = vadd.f32 %v2589_v38, %v900_v49  ;;  %v4258_v14 = vunpack.i.l.bf16 %v4257_v29  ;;  %v2583_v47 = vadd.f32 %v2519_v24, %v6699_v12  ;;  %v2529_v39 = vmul.f32 %v4259_v21, %v6579_v22  ;;  %v6700_v49 = vld [vmem:[#allocation79_spill] sm:$0xff]  ;;  %v6710_v12 = vld [vmem:[#allocation53_spill] sm:$0xff] }
 0x1b6   : > { %v2642_v52 = vadd.f32 %v2578_v37, %v6697_v3  ;;  %v2652_v61 = vadd.f32 %v2588_v55, %v899_v41  ;;  %v2582_v34 = vadd.f32 %v2518_v36, %v6698_v5  ;;  %v2707_v7 = vmax.f32 %v2643_v54, 0.0  ;;  %v6706_v38 = vld [vmem:[#allocation87_spill] sm:$0xff]  ;;  %v6707_v55 = vld [vmem:[#allocation10_spill] sm:$0xff] }
 0x1b7   : > { %v2717_v31 = vmax.f32 %v2653_v1, 0.0  ;;  %v2528_v60 = vmul.f32 %v4258_v14, %v6579_v22  ;;  %v2647_v25 = vadd.f32 %v2583_v47, %v894_v6  ;;  %v6225_v41 = vadd.f32 %v6089_v17, %v6700_v49  ;;  %v4252_v6 = vpop.permute.xlu1 %4251  ;;  %v6708_v36 = vld [vmem:[#allocation35_spill] sm:$0xff] }
 0x1b8   : > { %v2706_v23 = vmax.f32 %v2642_v52, 0.0  ;;  %v2716_v50 = vmax.f32 %v2652_v61, 0.0  ;;  %v2646_v8 = vadd.f32 %v2582_v34, %v893_v18  ;;  %v826_v48 = vadd.f32 %v6089_v17, %v6702_v28 }
 0x1b9   : > { %v2592_v27 = vadd.f32 %v2528_v60, %v6701_v10  ;;  %v2593_v15 = vadd.f32 %v2529_v39, %v6703_v43  ;;  %v897_v0 = vmax.f32 %v6190_v2, 0.0  ;;  %v2711_v18 = vmax.f32 %v2647_v25, 0.0  ;;  %v6712_v60 = vld [vmem:[#allocation89_spill] sm:$0xff]  ;;  %v6713_v10 = vld [vmem:[#allocation86_spill] sm:$0xff] }
 0x1ba   : > { %v3396_v20 = vpack.c.bf16 %v2707_v7, %v2706_v23  ;;  %v3421_v53 = vpack.c.bf16 %v2717_v31, %v2716_v50  ;;  %v2710_v9 = vmax.f32 %v2646_v8, 0.0  ;;  %v898_v45 = vmax.f32 %v6197_v32, 0.0  ;;  %v6711_v7 = vld [vmem:[#allocation17_spill] sm:$0xff] }
 0x1bb   : > { %v2656_v46 = vadd.f32 %v2592_v27, %v903_v19  ;;  %v904_v51 = vmax.f32 %v826_v48, 0.0  ;;  %v839_v40 = vadd.f32 %v6089_v17, %v6704_v30  ;;  %v4244_v11 = vunpack.i.h.bf16 %v4242_v59  ;;  %v4262_v52 = vpop.permute.xlu1 %4261 }
 0x1bc   : > { %3464 = vst [vmem:[%s5951_s27 + $0xb0] sm:$0xff] %v3396_v20   ;;  %3469 = vst [vmem:[%s5951_s27 + $0xd8] sm:$0xff] %v3421_v53   ;;  %v3406_v58 = vpack.c.bf16 %v2711_v18, %v2710_v9  ;;  %v4243_v33 = vunpack.i.l.bf16 %v4242_v59  ;;  %v4269_v29 = vunpack.i.h.bf16 %v4267_v26  ;;  %v901_v2 = vmax.f32 %v6225_v41, 0.0 }
 0x1bd   : > { %v2657_v56 = vadd.f32 %v2593_v15, %v904_v51  ;;  %v2720_v62 = vmax.f32 %v2656_v46, 0.0  ;;  %v818_v44 = vadd.f32 %v6089_v17, %v6705_v13  ;;  %v2523_v32 = vmul.f32 %v4244_v11, %v6579_v22 }
 0x1be   : > { %3466 = vst [vmem:[%s5951_s27 + $0xc0] sm:$0xff] %v3406_v58   ;;  %v2522_v57 = vmul.f32 %v4243_v33, %v6579_v22  ;;  %v2533_v37 = vmul.f32 %v4269_v29, %v6579_v22  ;;  %v4268_v16 = vunpack.i.l.bf16 %v4267_v26  ;;  %v907_v35 = vmax.f32 %v839_v40, 0.0  ;;  %v6716_v33 = vld [vmem:[#allocation18_spill] sm:$0xff] }
 0x1bf   : > { %v2721_v63 = vmax.f32 %v2657_v56, 0.0  ;;  %v842_v19 = vadd.f32 %v6089_v17, %v6706_v38  ;;  %v4254_v4 = vunpack.i.h.bf16 %v4252_v6  ;;  %v2587_v21 = vadd.f32 %v2523_v32, %v6708_v36 }
 0x1c0   : > { %v2586_v24 = vadd.f32 %v2522_v57, %v6707_v55  ;;  %v2532_v59 = vmul.f32 %v4268_v16, %v6579_v22  ;;  %v2597_v3 = vadd.f32 %v2533_v37, %v6709_v42  ;;  %v902_v1 = vmax.f32 %v818_v44, 0.0 }
 0x1c1   : > { %v3431_v54 = vpack.c.bf16 %v2721_v63, %v2720_v62  ;;  %v908_v14 = vmax.f32 %v842_v19, 0.0  ;;  %v2527_v61 = vmul.f32 %v4254_v4, %v6579_v22  ;;  %v2651_v34 = vadd.f32 %v2587_v21, %v898_v45 }
 0x1c2   : > { %v2650_v5 = vadd.f32 %v2586_v24, %v897_v0  ;;  %v2596_v47 = vadd.f32 %v2532_v59, %v6710_v12  ;;  %v4253_v39 = vunpack.i.l.bf16 %v4252_v6  ;;  %v834_v50 = vadd.f32 %v6089_v17, %v6712_v60  ;;  %v6714_v0 = vld [vmem:[#allocation30_spill] sm:$0xff] }
 0x1c3   : > { %3471 = vst [vmem:[%s5951_s27 + $0xe8] sm:$0xff] %v3431_v54   ;;  %v2661_v23 = vadd.f32 %v2597_v3, %v908_v14  ;;  %v2591_v31 = vadd.f32 %v2527_v61, %v6711_v7  ;;  %v4264_v8 = vunpack.i.h.bf16 %v4262_v52  ;;  %v2715_v49 = vmax.f32 %v2651_v34, 0.0  ;;  %v6715_v6 = vld [vmem:[#allocation22_spill] sm:$0xff] }
 0x1c4   : > { %v2714_v25 = vmax.f32 %v2650_v5, 0.0  ;;  %v2660_v41 = vadd.f32 %v2596_v47, %v907_v35  ;;  %v2526_v20 = vmul.f32 %v4253_v39, %v6579_v22  ;;  %v831_v27 = vadd.f32 %v6089_v17, %v6713_v10 }
 0x1c5   : > { %v2725_v28 = vmax.f32 %v2661_v23, 0.0  ;;  %v2655_v48 = vadd.f32 %v2591_v31, %v902_v1  ;;  %v2531_v43 = vmul.f32 %v4264_v8, %v6579_v22  ;;  %v4263_v9 = vunpack.i.l.bf16 %v4262_v52 }
 0x1c6   : > { %v3416_v15 = vpack.c.bf16 %v2715_v49, %v2714_v25  ;;  %v2724_v26 = vmax.f32 %v2660_v41, 0.0  ;;  %v2590_v53 = vadd.f32 %v2526_v20, %v6714_v0  ;;  %v906_v18 = vmax.f32 %v834_v50, 0.0 }
 0x1c7   : > { %v2595_v45 = vadd.f32 %v2531_v43, %v6715_v6  ;;  %v2719_v30 = vmax.f32 %v2655_v48, 0.0  ;;  %v2530_v17 = vmul.f32 %v4263_v9, %v6579_v22  ;;  %v905_v58 = vmax.f32 %v831_v27, 0.0 }
 0x1c8   : > { %3468 = vst [vmem:[%s5951_s27 + $0xd0] sm:$0xff] %v3416_v15   ;;  %v3441_v46 = vpack.c.bf16 %v2725_v28, %v2724_v26  ;;  %v2654_v51 = vadd.f32 %v2590_v53, %v901_v2 }
 0x1c9   : > { %v2659_v40 = vadd.f32 %v2595_v45, %v906_v18  ;;  %v2594_v29 = vadd.f32 %v2530_v17, %v6716_v33 }
 0x1ca   : > { %3473 = vst [vmem:[%s5951_s27 + $0xf8] sm:$0xff] %v3441_v46   ;;  %v2718_v11 = vmax.f32 %v2654_v51, 0.0 }
 0x1cb   : > { %v2658_v62 = vadd.f32 %v2594_v29, %v905_v58  ;;  %v2723_v13 = vmax.f32 %v2659_v40, 0.0 }
 0x1cc   : > { %v3426_v56 = vpack.c.bf16 %v2719_v30, %v2718_v11 }
 0x1cd   : > { %v2722_v44 = vmax.f32 %v2658_v62, 0.0 }
 0x1ce   : > { %3470 = vst [vmem:[%s5951_s27 + $0xe0] sm:$0xff] %v3426_v56  }
 0x1cf   : > { %v3436_v32 = vpack.c.bf16 %v2723_v13, %v2722_v44 }
 0x1d1   : > { %3472 = vst [vmem:[%s5951_s27 + $0xf0] sm:$0xff] %v3436_v32  }
 0x1d2 PF: > { %s15_s18 = sadd.s32 1, %s4349_s18  }
 0x1d3   : > { %p12_p4 = scmp.ge.s32.totalorder %s15_s18, 4  }
 0x1d5   :  { %14 = sbr.rel (!%p12_p4) target bundleno = 1 (0x1), region = 70 }

</bundles_post_ra>
